<compile_context>
chip_gen: v7x
topology: tpu7x:2x2x1
jax: 0.10.0
libtpu: 0.0.40
codegen_flags: <defaults>
</compile_context>

<pallas_src>
import functools

import jax
import jax.numpy as jnp
import numpy as np
from jax.experimental import pallas as pl
from jax.experimental.pallas import tpu as pltpu

IN_CH = 14          # input planes
BOARD = 8           # 8x8 board
HW = BOARD * BOARD
FC_WIDTH = 64       # hidden width of the FC head (fixed by the module)


# ----------------------------------------------------------------------------
# Fused Pallas kernel: entire ChessCNN forward
# ----------------------------------------------------------------------------
def _chess_cnn_kernel(x_ref, mask_ref, wc_ref, bc_ref, w1_ref, b1_ref,
                      wmid_ref, bmid_ref, w3_ref, b3_ref, sel_ref, o_ref,
                      *, conv_depth, conv_size, n_mid):
    """Layouts (all f32, P = B*H*W lanes):
      x_ref    : (C, P)                 channel-major activations
      mask_ref : (9, 1, P)              border masks, one per 3x3 tap
      wc_ref   : (conv_depth, C, 9*C)   conv weights, (Cout, tap*Cin)
      bc_ref   : (conv_depth, C, 1)
      w1_ref   : (C, 64, P)             FC1 weight, NCHW flatten folded + batch-tiled
      b1_ref   : (64, 1)
      wmid_ref : (n_mid, 64, 64)        hidden FC weights
      bmid_ref : (n_mid, 64, 1)
      w3_ref   : (64, 1)                final FC weight (column)
      b3_ref   : (1, 1)
      sel_ref  : (P, B)                 0/1 per-batch lane-block selector
      o_ref    : (1, B)
    """
    x = x_ref[...]                                    # (C, P)
    P = x.shape[1]

    # ---- conv stack: each layer = ONE (C, 9*C) @ (9*C, P) MXU matmul ----
    for layer in range(conv_depth):
        w = wc_ref[layer]                             # (C, 9*C)
        b = bc_ref[layer]                             # (C, 1)
        taps = []
        for k in range(9):
            dy, dx = k // 3 - 1, k % 3 - 1
            shift = dy * BOARD + dx                   # source lane offset
            src = x if shift == 0 else pltpu.roll(x, (-shift) % P, axis=1)
            taps.append(src * mask_ref[k])            # zero out off-board taps
        cols = jnp.concatenate(taps, axis=0)          # (9*C, P)
        y = jnp.dot(w, cols, preferred_element_type=jnp.float32)
        x = jnp.maximum(y + b, 0.0)                   # (C, P)

    # ---- NCHW flatten + Linear(C*H*W -> 64) + ReLU (flatten folded into w1) ----
    # c1[n, p] = sum_c W1[n, c*HW + p%HW] * x[c, p]    (f32 on the VPU)
    c1 = w1_ref[0] * x[0:1, :]
    for c in range(1, conv_size):
        c1 = c1 + w1_ref[c] * x[c:c + 1, :]           # (64, P)
    # per-batch lane-block sums via a 0/1 selection matmul: (64, P) @ (P, B)
    h = jnp.dot(c1, sel_ref[...], preferred_element_type=jnp.float32) + b1_ref[...]
    h = jnp.maximum(h, 0.0)                           # (64, B)

    # ---- hidden Linear(64 -> 64) + ReLU layers ----
    for m in range(n_mid):
        h = jnp.dot(wmid_ref[m], h, preferred_element_type=jnp.float32) + bmid_ref[m]
        h = jnp.maximum(h, 0.0)                       # (64, B)

    # ---- final Linear(64 -> 1): sublane reduction instead of an M=1 matmul ----
    o_ref[...] = jnp.sum(w3_ref[...] * h, axis=0, keepdims=True) + b3_ref[...]


# ----------------------------------------------------------------------------
# Parameters (deterministic, PyTorch-shaped)
# ----------------------------------------------------------------------------
def init_params(key, conv_size=16, conv_depth=12, fc_depth=2):
    params = {"conv": [], "fc": []}
    in_ch = IN_CH
    for _ in range(conv_depth):
        key, k1, k2 = jax.random.split(key, 3)
        fan_in = in_ch * 9
        w = jax.random.normal(k1, (conv_size, in_ch, 3, 3), jnp.float32) * np.sqrt(2.0 / fan_in)
        b = jax.random.normal(k2, (conv_size,), jnp.float32) * 0.01
        params["conv"].append((w, b))
        in_ch = conv_size
    in_f = conv_size * HW
    for _ in range(fc_depth):
        key, k1, k2 = jax.random.split(key, 3)
        w = jax.random.normal(k1, (FC_WIDTH, in_f), jnp.float32) * np.sqrt(2.0 / in_f)
        b = jax.random.normal(k2, (FC_WIDTH,), jnp.float32) * 0.01
        params["fc"].append((w, b))
        in_f = FC_WIDTH
    key, k1, k2 = jax.random.split(key, 3)
    w = jax.random.normal(k1, (1, in_f), jnp.float32) * np.sqrt(1.0 / in_f)
    b = jax.random.normal(k2, (1,), jnp.float32) * 0.01
    params["fc"].append((w, b))
    return params


def to_kernel_params(params, batch):
    """Convert PyTorch-shaped params into the kernel's VMEM layouts (done once)."""
    conv_size = params["conv"][0][0].shape[0]
    assert conv_size >= IN_CH
    P = batch * HW

    wmats, bmats = [], []
    for (w, b) in params["conv"]:
        cout, cin = w.shape[0], w.shape[1]
        wt = jnp.transpose(w, (0, 2, 3, 1))                            # (cout, ky, kx, cin)
        wt = jnp.pad(wt, ((0, 0), (0, 0), (0, 0), (0, conv_size - cin)))
        wmats.append(wt.reshape(cout, 9 * conv_size))
        bmats.append(b.reshape(cout, 1))
    wconv = jnp.stack(wmats)                                           # (depth, C, 9*C)
    bconv = jnp.stack(bmats)                                           # (depth, C, 1)

    fc = params["fc"]
    assert len(fc) >= 3, "expect fc_depth >= 2 hidden Linear layers plus the final Linear(64,1)"
    w1, b1 = fc[0]                                                     # (64, C*HW), (64,)
    w1big = jnp.transpose(w1.reshape(FC_WIDTH, conv_size, HW), (1, 0, 2))   # (C, 64, HW)
    w1big = jnp.tile(w1big, (1, 1, batch))                             # (C, 64, P): p -> p % HW
    wmid = jnp.stack([w for (w, _) in fc[1:-1]])                       # (n_mid, 64, 64)
    bmid = jnp.stack([b.reshape(FC_WIDTH, 1) for (_, b) in fc[1:-1]])  # (n_mid, 64, 1)
    w3, b3 = fc[-1]                                                    # (1, 64), (1,)

    # Border masks for the 9 taps and the per-batch lane-block selector.
    mask = np.zeros((9, 1, P), np.float32)
    for k in range(9):
        dy, dx = k // 3 - 1, k % 3 - 1
        for p in range(P):
            h, w_ = (p % HW) // BOARD, p % BOARD
            if 0 <= h + dy < BOARD and 0 <= w_ + dx < BOARD:
                mask[k, 0, p] = 1.0
    sel = np.zeros((P, batch), np.float32)
    sel[np.arange(P), np.arange(P) // HW] = 1.0

    return {
        "wconv": wconv, "bconv": bconv,
        "w1": w1big, "b1": b1.reshape(FC_WIDTH, 1),
        "wmid": wmid, "bmid": bmid,
        "w3": jnp.transpose(w3), "b3": b3.reshape(1, 1),
        "mask": jnp.asarray(mask), "sel": jnp.asarray(sel),
    }


# ----------------------------------------------------------------------------
# Forward pass: one fused pallas_call
# ----------------------------------------------------------------------------
def chess_cnn_forward(x_nchw, kp):
    B = x_nchw.shape[0]
    P = B * HW
    conv_depth, conv_size = kp["wconv"].shape[0], kp["wconv"].shape[1]
    n_mid = kp["wmid"].shape[0]

    # One-time input layout prep: NCHW -> channel-major (C, B*H*W), pad C to conv_size.
    xr = x_nchw.reshape(B, IN_CH, HW)
    xr = jnp.transpose(xr, (1, 0, 2)).reshape(IN_CH, P)
    x0 = jnp.pad(xr, ((0, conv_size - IN_CH), (0, 0)))

    kernel = functools.partial(_chess_cnn_kernel, conv_depth=conv_depth,
                               conv_size=conv_size, n_mid=n_mid)
    inputs = (x0, kp["mask"], kp["wconv"], kp["bconv"], kp["w1"], kp["b1"],
              kp["wmid"], kp["bmid"], kp["w3"], kp["b3"], kp["sel"])

    def full_spec(shape):
        return pl.BlockSpec(shape, lambda *_: (0,) * len(shape))

    out = pl.pallas_call(
        kernel,
        out_shape=jax.ShapeDtypeStruct((1, B), jnp.float32),
        grid=(1,),
        in_specs=[full_spec(a.shape) for a in inputs],
        out_specs=full_spec((1, B)),
        compiler_params=pltpu.CompilerParams(dimension_semantics=("arbitrary",)),
    )(*inputs)
    return out.reshape(B, 1)


# ----------------------------------------------------------------------------
# Pure-JAX reference (mirrors the PyTorch forward) for validation
# ----------------------------------------------------------------------------
def reference_forward(x_nchw, params):
    y = x_nchw
    for (w, b) in params["conv"]:
        y = jax.lax.conv_general_dilated(
            y, w, window_strides=(1, 1), padding="SAME",
            dimension_numbers=("NCHW", "OIHW", "NCHW"))
        y = jnp.maximum(y + b.reshape(1, -1, 1, 1), 0.0)
    y = y.reshape(y.shape[0], -1)                      # NCHW flatten: (C, H, W)
    for i, (w, b) in enumerate(params["fc"]):
        y = jnp.matmul(y, w.T) + b
        if i < len(params["fc"]) - 1:
            y = jnp.maximum(y, 0.0)
    return y


if __name__ == "__main__":
    key = jax.random.PRNGKey(0)
    key, pkey, xkey = jax.random.split(key, 3)

    B = 2  # B*H*W = 128 -> every conv intermediate is exactly one lane width
    x = jax.random.normal(xkey, (B, IN_CH, BOARD, BOARD), jnp.float32)

    params = init_params(pkey, conv_size=16, conv_depth=12, fc_depth=2)
    kp = to_kernel_params(params, batch=B)

    fwd = jax.jit(chess_cnn_forward)
    out = jax.block_until_ready(fwd(x, kp))
    ref = jax.block_until_ready(reference_forward(x, params))

    assert out.shape == (B, 1), out.shape
    # 5e-2 tolerance: the kernel uses DEFAULT (single-pass bf16) MXU precision
    # per the perf review; structural bugs would produce O(1) errors.
    np.testing.assert_allclose(np.asarray(out), np.asarray(ref), rtol=5e-2, atol=5e-2)
    print("KERNEL_OK")
</pallas_src>

<mosaic_0001>
module attributes {stable_mosaic.version = 11 : i64} {
  func.func @_chess_cnn_kernel(%arg0: i32, %arg1: memref<16x128xf32, #tpu.memory_space<vmem>>, %arg2: memref<9x1x128xf32, #tpu.memory_space<vmem>>, %arg3: memref<12x16x144xf32, #tpu.memory_space<vmem>>, %arg4: memref<12x16x1xf32, #tpu.memory_space<vmem>>, %arg5: memref<16x64x128xf32, #tpu.memory_space<vmem>>, %arg6: memref<64x1xf32, #tpu.memory_space<vmem>>, %arg7: memref<1x64x64xf32, #tpu.memory_space<vmem>>, %arg8: memref<1x64x1xf32, #tpu.memory_space<vmem>>, %arg9: memref<64x1xf32, #tpu.memory_space<vmem>>, %arg10: memref<1x1xf32, #tpu.memory_space<vmem>>, %arg11: memref<128x2xf32, #tpu.memory_space<vmem>>, %arg12: memref<1x2xf32, #tpu.memory_space<vmem>>) attributes {dimension_semantics = [#tpu.dimension_semantics<arbitrary>], iteration_bounds = array<i64: 1>, scalar_prefetch = 0 : i64, scratch_operands = 0 : i64, tpu.core_type = #tpu.core_type<tc>, window_params = [{pipeline_mode = #tpu.pipeline_mode<synchronous>, transform_indices = @transform_0, window_bounds = array<i64: 16, 128>}, {pipeline_mode = #tpu.pipeline_mode<synchronous>, transform_indices = @transform_1, window_bounds = array<i64: 9, 1, 128>}, {pipeline_mode = #tpu.pipeline_mode<synchronous>, transform_indices = @transform_2, window_bounds = array<i64: 12, 16, 144>}, {pipeline_mode = #tpu.pipeline_mode<synchronous>, transform_indices = @transform_3, window_bounds = array<i64: 12, 16, 1>}, {pipeline_mode = #tpu.pipeline_mode<synchronous>, transform_indices = @transform_4, window_bounds = array<i64: 16, 64, 128>}, {pipeline_mode = #tpu.pipeline_mode<synchronous>, transform_indices = @transform_5, window_bounds = array<i64: 64, 1>}, {pipeline_mode = #tpu.pipeline_mode<synchronous>, transform_indices = @transform_6, window_bounds = array<i64: 1, 64, 64>}, {pipeline_mode = #tpu.pipeline_mode<synchronous>, transform_indices = @transform_7, window_bounds = array<i64: 1, 64, 1>}, {pipeline_mode = #tpu.pipeline_mode<synchronous>, transform_indices = @transform_8, window_bounds = array<i64: 64, 1>}, {pipeline_mode = #tpu.pipeline_mode<synchronous>, transform_indices = @transform_9, window_bounds = array<i64: 1, 1>}, {pipeline_mode = #tpu.pipeline_mode<synchronous>, transform_indices = @transform_10, window_bounds = array<i64: 128, 2>}, {pipeline_mode = #tpu.pipeline_mode<synchronous>, transform_indices = @transform_11, window_bounds = array<i64: 1, 2>}]} {
    %c0 = arith.constant 0 : index
    %c0_0 = arith.constant 0 : index
    %0 = vector.load %arg1[%c0, %c0_0] : memref<16x128xf32, #tpu.memory_space<vmem>>, vector<16x128xf32>
    %c0_1 = arith.constant 0 : index
    %c0_2 = arith.constant 0 : index
    %c0_3 = arith.constant 0 : index
    %1 = vector.load %arg3[%c0_1, %c0_2, %c0_3] : memref<12x16x144xf32, #tpu.memory_space<vmem>>, vector<1x16x144xf32>
    %2 = vector.shape_cast %1 : vector<1x16x144xf32> to vector<16x144xf32>
    %c0_4 = arith.constant 0 : index
    %c0_5 = arith.constant 0 : index
    %c0_6 = arith.constant 0 : index
    %3 = vector.load %arg4[%c0_4, %c0_5, %c0_6] : memref<12x16x1xf32, #tpu.memory_space<vmem>>, vector<1x16x1xf32>
    %4 = vector.shape_cast %3 : vector<1x16x1xf32> to vector<16x1xf32>
    %c9_i32 = arith.constant 9 : i32
    %5 = tpu.dynamic_rotate %0 by %c9_i32 dim 1 : vector<16x128xf32>, i32 -> vector<16x128xf32>
    %c0_7 = arith.constant 0 : index
    %c0_8 = arith.constant 0 : index
    %c0_9 = arith.constant 0 : index
    %6 = vector.load %arg2[%c0_7, %c0_8, %c0_9] : memref<9x1x128xf32, #tpu.memory_space<vmem>>, vector<1x1x128xf32>
    %7 = vector.shape_cast %6 : vector<1x1x128xf32> to vector<1x128xf32>
    %8 = vector.broadcast %7 : vector<1x128xf32> to vector<16x128xf32>
    %9 = arith.mulf %5, %8 : vector<16x128xf32>
    %c8_i32 = arith.constant 8 : i32
    %10 = tpu.dynamic_rotate %0 by %c8_i32 dim 1 : vector<16x128xf32>, i32 -> vector<16x128xf32>
    %c1 = arith.constant 1 : index
    %c0_10 = arith.constant 0 : index
    %c0_11 = arith.constant 0 : index
    %11 = vector.load %arg2[%c1, %c0_10, %c0_11] : memref<9x1x128xf32, #tpu.memory_space<vmem>>, vector<1x1x128xf32>
    %12 = vector.shape_cast %11 : vector<1x1x128xf32> to vector<1x128xf32>
    %13 = vector.broadcast %12 : vector<1x128xf32> to vector<16x128xf32>
    %14 = arith.mulf %10, %13 : vector<16x128xf32>
    %c7_i32 = arith.constant 7 : i32
    %15 = tpu.dynamic_rotate %0 by %c7_i32 dim 1 : vector<16x128xf32>, i32 -> vector<16x128xf32>
    %c2 = arith.constant 2 : index
    %c0_12 = arith.constant 0 : index
    %c0_13 = arith.constant 0 : index
    %16 = vector.load %arg2[%c2, %c0_12, %c0_13] : memref<9x1x128xf32, #tpu.memory_space<vmem>>, vector<1x1x128xf32>
    %17 = vector.shape_cast %16 : vector<1x1x128xf32> to vector<1x128xf32>
    %18 = vector.broadcast %17 : vector<1x128xf32> to vector<16x128xf32>
    %19 = arith.mulf %15, %18 : vector<16x128xf32>
    %c1_i32 = arith.constant 1 : i32
    %20 = tpu.dynamic_rotate %0 by %c1_i32 dim 1 : vector<16x128xf32>, i32 -> vector<16x128xf32>
    %c3 = arith.constant 3 : index
    %c0_14 = arith.constant 0 : index
    %c0_15 = arith.constant 0 : index
    %21 = vector.load %arg2[%c3, %c0_14, %c0_15] : memref<9x1x128xf32, #tpu.memory_space<vmem>>, vector<1x1x128xf32>
    %22 = vector.shape_cast %21 : vector<1x1x128xf32> to vector<1x128xf32>
    %23 = vector.broadcast %22 : vector<1x128xf32> to vector<16x128xf32>
    %24 = arith.mulf %20, %23 : vector<16x128xf32>
    %c4 = arith.constant 4 : index
    %c0_16 = arith.constant 0 : index
    %c0_17 = arith.constant 0 : index
    %25 = vector.load %arg2[%c4, %c0_16, %c0_17] : memref<9x1x128xf32, #tpu.memory_space<vmem>>, vector<1x1x128xf32>
    %26 = vector.shape_cast %25 : vector<1x1x128xf32> to vector<1x128xf32>
    %27 = vector.broadcast %26 : vector<1x128xf32> to vector<16x128xf32>
    %28 = arith.mulf %0, %27 : vector<16x128xf32>
    %c127_i32 = arith.constant 127 : i32
    %29 = tpu.dynamic_rotate %0 by %c127_i32 dim 1 : vector<16x128xf32>, i32 -> vector<16x128xf32>
    %c5 = arith.constant 5 : index
    %c0_18 = arith.constant 0 : index
    %c0_19 = arith.constant 0 : index
    %30 = vector.load %arg2[%c5, %c0_18, %c0_19] : memref<9x1x128xf32, #tpu.memory_space<vmem>>, vector<1x1x128xf32>
    %31 = vector.shape_cast %30 : vector<1x1x128xf32> to vector<1x128xf32>
    %32 = vector.broadcast %31 : vector<1x128xf32> to vector<16x128xf32>
    %33 = arith.mulf %29, %32 : vector<16x128xf32>
    %c121_i32 = arith.constant 121 : i32
    %34 = tpu.dynamic_rotate %0 by %c121_i32 dim 1 : vector<16x128xf32>, i32 -> vector<16x128xf32>
    %c6 = arith.constant 6 : index
    %c0_20 = arith.constant 0 : index
    %c0_21 = arith.constant 0 : index
    %35 = vector.load %arg2[%c6, %c0_20, %c0_21] : memref<9x1x128xf32, #tpu.memory_space<vmem>>, vector<1x1x128xf32>
    %36 = vector.shape_cast %35 : vector<1x1x128xf32> to vector<1x128xf32>
    %37 = vector.broadcast %36 : vector<1x128xf32> to vector<16x128xf32>
    %38 = arith.mulf %34, %37 : vector<16x128xf32>
    %c120_i32 = arith.constant 120 : i32
    %39 = tpu.dynamic_rotate %0 by %c120_i32 dim 1 : vector<16x128xf32>, i32 -> vector<16x128xf32>
    %c7 = arith.constant 7 : index
    %c0_22 = arith.constant 0 : index
    %c0_23 = arith.constant 0 : index
    %40 = vector.load %arg2[%c7, %c0_22, %c0_23] : memref<9x1x128xf32, #tpu.memory_space<vmem>>, vector<1x1x128xf32>
    %41 = vector.shape_cast %40 : vector<1x1x128xf32> to vector<1x128xf32>
    %42 = vector.broadcast %41 : vector<1x128xf32> to vector<16x128xf32>
    %43 = arith.mulf %39, %42 : vector<16x128xf32>
    %c119_i32 = arith.constant 119 : i32
    %44 = tpu.dynamic_rotate %0 by %c119_i32 dim 1 : vector<16x128xf32>, i32 -> vector<16x128xf32>
    %c8 = arith.constant 8 : index
    %c0_24 = arith.constant 0 : index
    %c0_25 = arith.constant 0 : index
    %45 = vector.load %arg2[%c8, %c0_24, %c0_25] : memref<9x1x128xf32, #tpu.memory_space<vmem>>, vector<1x1x128xf32>
    %46 = vector.shape_cast %45 : vector<1x1x128xf32> to vector<1x128xf32>
    %47 = vector.broadcast %46 : vector<1x128xf32> to vector<16x128xf32>
    %48 = arith.mulf %44, %47 : vector<16x128xf32>
    %49 = tpu.concatenate %9, %14, %19, %24, %28, %33, %38, %43, %48 in 0 : vector<16x128xf32>, vector<16x128xf32>, vector<16x128xf32>, vector<16x128xf32>, vector<16x128xf32>, vector<16x128xf32>, vector<16x128xf32>, vector<16x128xf32>, vector<16x128xf32> -> vector<144x128xf32>
    %cst = arith.constant dense<0.000000e+00> : vector<16x128xf32>
    %50 = tpu.matmul %2, %49, %cst {dimension_numbers = #tpu.dot_dimension_numbers<[1], [0], [0], [1], [0, 0, 1, 1], [], []>} : vector<16x144xf32>, vector<144x128xf32>, vector<16x128xf32> -> vector<16x128xf32>
    %51 = vector.broadcast %4 : vector<16x1xf32> to vector<16x128xf32>
    %52 = arith.addf %50, %51 : vector<16x128xf32>
    %cst_26 = arith.constant 0.000000e+00 : f32
    %53 = vector.broadcast %cst_26 : f32 to vector<16x128xf32>
    %54 = arith.maximumf %52, %53 : vector<16x128xf32>
    %c1_27 = arith.constant 1 : index
    %c0_28 = arith.constant 0 : index
    %c0_29 = arith.constant 0 : index
    %55 = vector.load %arg3[%c1_27, %c0_28, %c0_29] : memref<12x16x144xf32, #tpu.memory_space<vmem>>, vector<1x16x144xf32>
    %56 = vector.shape_cast %55 : vector<1x16x144xf32> to vector<16x144xf32>
    %c1_30 = arith.constant 1 : index
    %c0_31 = arith.constant 0 : index
    %c0_32 = arith.constant 0 : index
    %57 = vector.load %arg4[%c1_30, %c0_31, %c0_32] : memref<12x16x1xf32, #tpu.memory_space<vmem>>, vector<1x16x1xf32>
    %58 = vector.shape_cast %57 : vector<1x16x1xf32> to vector<16x1xf32>
    %c9_i32_33 = arith.constant 9 : i32
    %59 = tpu.dynamic_rotate %54 by %c9_i32_33 dim 1 : vector<16x128xf32>, i32 -> vector<16x128xf32>
    %c0_34 = arith.constant 0 : index
    %c0_35 = arith.constant 0 : index
    %c0_36 = arith.constant 0 : index
    %60 = vector.load %arg2[%c0_34, %c0_35, %c0_36] : memref<9x1x128xf32, #tpu.memory_space<vmem>>, vector<1x1x128xf32>
    %61 = vector.shape_cast %60 : vector<1x1x128xf32> to vector<1x128xf32>
    %62 = vector.broadcast %61 : vector<1x128xf32> to vector<16x128xf32>
    %63 = arith.mulf %59, %62 : vector<16x128xf32>
    %c8_i32_37 = arith.constant 8 : i32
    %64 = tpu.dynamic_rotate %54 by %c8_i32_37 dim 1 : vector<16x128xf32>, i32 -> vector<16x128xf32>
    %c1_38 = arith.constant 1 : index
    %c0_39 = arith.constant 0 : index
    %c0_40 = arith.constant 0 : index
    %65 = vector.load %arg2[%c1_38, %c0_39, %c0_40] : memref<9x1x128xf32, #tpu.memory_space<vmem>>, vector<1x1x128xf32>
    %66 = vector.shape_cast %65 : vector<1x1x128xf32> to vector<1x128xf32>
    %67 = vector.broadcast %66 : vector<1x128xf32> to vector<16x128xf32>
    %68 = arith.mulf %64, %67 : vector<16x128xf32>
    %c7_i32_41 = arith.constant 7 : i32
    %69 = tpu.dynamic_rotate %54 by %c7_i32_41 dim 1 : vector<16x128xf32>, i32 -> vector<16x128xf32>
    %c2_42 = arith.constant 2 : index
    %c0_43 = arith.constant 0 : index
    %c0_44 = arith.constant 0 : index
    %70 = vector.load %arg2[%c2_42, %c0_43, %c0_44] : memref<9x1x128xf32, #tpu.memory_space<vmem>>, vector<1x1x128xf32>
    %71 = vector.shape_cast %70 : vector<1x1x128xf32> to vector<1x128xf32>
    %72 = vector.broadcast %71 : vector<1x128xf32> to vector<16x128xf32>
    %73 = arith.mulf %69, %72 : vector<16x128xf32>
    %c1_i32_45 = arith.constant 1 : i32
    %74 = tpu.dynamic_rotate %54 by %c1_i32_45 dim 1 : vector<16x128xf32>, i32 -> vector<16x128xf32>
    %c3_46 = arith.constant 3 : index
    %c0_47 = arith.constant 0 : index
    %c0_48 = arith.constant 0 : index
    %75 = vector.load %arg2[%c3_46, %c0_47, %c0_48] : memref<9x1x128xf32, #tpu.memory_space<vmem>>, vector<1x1x128xf32>
    %76 = vector.shape_cast %75 : vector<1x1x128xf32> to vector<1x128xf32>
    %77 = vector.broadcast %76 : vector<1x128xf32> to vector<16x128xf32>
    %78 = arith.mulf %74, %77 : vector<16x128xf32>
    %c4_49 = arith.constant 4 : index
    %c0_50 = arith.constant 0 : index
    %c0_51 = arith.constant 0 : index
    %79 = vector.load %arg2[%c4_49, %c0_50, %c0_51] : memref<9x1x128xf32, #tpu.memory_space<vmem>>, vector<1x1x128xf32>
    %80 = vector.shape_cast %79 : vector<1x1x128xf32> to vector<1x128xf32>
    %81 = vector.broadcast %80 : vector<1x128xf32> to vector<16x128xf32>
    %82 = arith.mulf %54, %81 : vector<16x128xf32>
    %c127_i32_52 = arith.constant 127 : i32
    %83 = tpu.dynamic_rotate %54 by %c127_i32_52 dim 1 : vector<16x128xf32>, i32 -> vector<16x128xf32>
    %c5_53 = arith.constant 5 : index
    %c0_54 = arith.constant 0 : index
    %c0_55 = arith.constant 0 : index
    %84 = vector.load %arg2[%c5_53, %c0_54, %c0_55] : memref<9x1x128xf32, #tpu.memory_space<vmem>>, vector<1x1x128xf32>
    %85 = vector.shape_cast %84 : vector<1x1x128xf32> to vector<1x128xf32>
    %86 = vector.broadcast %85 : vector<1x128xf32> to vector<16x128xf32>
    %87 = arith.mulf %83, %86 : vector<16x128xf32>
    %c121_i32_56 = arith.constant 121 : i32
    %88 = tpu.dynamic_rotate %54 by %c121_i32_56 dim 1 : vector<16x128xf32>, i32 -> vector<16x128xf32>
    %c6_57 = arith.constant 6 : index
    %c0_58 = arith.constant 0 : index
    %c0_59 = arith.constant 0 : index
    %89 = vector.load %arg2[%c6_57, %c0_58, %c0_59] : memref<9x1x128xf32, #tpu.memory_space<vmem>>, vector<1x1x128xf32>
    %90 = vector.shape_cast %89 : vector<1x1x128xf32> to vector<1x128xf32>
    %91 = vector.broadcast %90 : vector<1x128xf32> to vector<16x128xf32>
    %92 = arith.mulf %88, %91 : vector<16x128xf32>
    %c120_i32_60 = arith.constant 120 : i32
    %93 = tpu.dynamic_rotate %54 by %c120_i32_60 dim 1 : vector<16x128xf32>, i32 -> vector<16x128xf32>
    %c7_61 = arith.constant 7 : index
    %c0_62 = arith.constant 0 : index
    %c0_63 = arith.constant 0 : index
    %94 = vector.load %arg2[%c7_61, %c0_62, %c0_63] : memref<9x1x128xf32, #tpu.memory_space<vmem>>, vector<1x1x128xf32>
    %95 = vector.shape_cast %94 : vector<1x1x128xf32> to vector<1x128xf32>
    %96 = vector.broadcast %95 : vector<1x128xf32> to vector<16x128xf32>
    %97 = arith.mulf %93, %96 : vector<16x128xf32>
    %c119_i32_64 = arith.constant 119 : i32
    %98 = tpu.dynamic_rotate %54 by %c119_i32_64 dim 1 : vector<16x128xf32>, i32 -> vector<16x128xf32>
    %c8_65 = arith.constant 8 : index
    %c0_66 = arith.constant 0 : index
    %c0_67 = arith.constant 0 : index
    %99 = vector.load %arg2[%c8_65, %c0_66, %c0_67] : memref<9x1x128xf32, #tpu.memory_space<vmem>>, vector<1x1x128xf32>
    %100 = vector.shape_cast %99 : vector<1x1x128xf32> to vector<1x128xf32>
    %101 = vector.broadcast %100 : vector<1x128xf32> to vector<16x128xf32>
    %102 = arith.mulf %98, %101 : vector<16x128xf32>
    %103 = tpu.concatenate %63, %68, %73, %78, %82, %87, %92, %97, %102 in 0 : vector<16x128xf32>, vector<16x128xf32>, vector<16x128xf32>, vector<16x128xf32>, vector<16x128xf32>, vector<16x128xf32>, vector<16x128xf32>, vector<16x128xf32>, vector<16x128xf32> -> vector<144x128xf32>
    %cst_68 = arith.constant dense<0.000000e+00> : vector<16x128xf32>
    %104 = tpu.matmul %56, %103, %cst_68 {dimension_numbers = #tpu.dot_dimension_numbers<[1], [0], [0], [1], [0, 0, 1, 1], [], []>} : vector<16x144xf32>, vector<144x128xf32>, vector<16x128xf32> -> vector<16x128xf32>
    %105 = vector.broadcast %58 : vector<16x1xf32> to vector<16x128xf32>
    %106 = arith.addf %104, %105 : vector<16x128xf32>
    %cst_69 = arith.constant 0.000000e+00 : f32
    %107 = vector.broadcast %cst_69 : f32 to vector<16x128xf32>
    %108 = arith.maximumf %106, %107 : vector<16x128xf32>
    %c2_70 = arith.constant 2 : index
    %c0_71 = arith.constant 0 : index
    %c0_72 = arith.constant 0 : index
    %109 = vector.load %arg3[%c2_70, %c0_71, %c0_72] : memref<12x16x144xf32, #tpu.memory_space<vmem>>, vector<1x16x144xf32>
    %110 = vector.shape_cast %109 : vector<1x16x144xf32> to vector<16x144xf32>
    %c2_73 = arith.constant 2 : index
    %c0_74 = arith.constant 0 : index
    %c0_75 = arith.constant 0 : index
    %111 = vector.load %arg4[%c2_73, %c0_74, %c0_75] : memref<12x16x1xf32, #tpu.memory_space<vmem>>, vector<1x16x1xf32>
    %112 = vector.shape_cast %111 : vector<1x16x1xf32> to vector<16x1xf32>
    %c9_i32_76 = arith.constant 9 : i32
    %113 = tpu.dynamic_rotate %108 by %c9_i32_76 dim 1 : vector<16x128xf32>, i32 -> vector<16x128xf32>
    %c0_77 = arith.constant 0 : index
    %c0_78 = arith.constant 0 : index
    %c0_79 = arith.constant 0 : index
    %114 = vector.load %arg2[%c0_77, %c0_78, %c0_79] : memref<9x1x128xf32, #tpu.memory_space<vmem>>, vector<1x1x128xf32>
    %115 = vector.shape_cast %114 : vector<1x1x128xf32> to vector<1x128xf32>
    %116 = vector.broadcast %115 : vector<1x128xf32> to vector<16x128xf32>
    %117 = arith.mulf %113, %116 : vector<16x128xf32>
    %c8_i32_80 = arith.constant 8 : i32
    %118 = tpu.dynamic_rotate %108 by %c8_i32_80 dim 1 : vector<16x128xf32>, i32 -> vector<16x128xf32>
    %c1_81 = arith.constant 1 : index
    %c0_82 = arith.constant 0 : index
    %c0_83 = arith.constant 0 : index
    %119 = vector.load %arg2[%c1_81, %c0_82, %c0_83] : memref<9x1x128xf32, #tpu.memory_space<vmem>>, vector<1x1x128xf32>
    %120 = vector.shape_cast %119 : vector<1x1x128xf32> to vector<1x128xf32>
    %121 = vector.broadcast %120 : vector<1x128xf32> to vector<16x128xf32>
    %122 = arith.mulf %118, %121 : vector<16x128xf32>
    %c7_i32_84 = arith.constant 7 : i32
    %123 = tpu.dynamic_rotate %108 by %c7_i32_84 dim 1 : vector<16x128xf32>, i32 -> vector<16x128xf32>
    %c2_85 = arith.constant 2 : index
    %c0_86 = arith.constant 0 : index
    %c0_87 = arith.constant 0 : index
    %124 = vector.load %arg2[%c2_85, %c0_86, %c0_87] : memref<9x1x128xf32, #tpu.memory_space<vmem>>, vector<1x1x128xf32>
    %125 = vector.shape_cast %124 : vector<1x1x128xf32> to vector<1x128xf32>
    %126 = vector.broadcast %125 : vector<1x128xf32> to vector<16x128xf32>
    %127 = arith.mulf %123, %126 : vector<16x128xf32>
    %c1_i32_88 = arith.constant 1 : i32
    %128 = tpu.dynamic_rotate %108 by %c1_i32_88 dim 1 : vector<16x128xf32>, i32 -> vector<16x128xf32>
    %c3_89 = arith.constant 3 : index
    %c0_90 = arith.constant 0 : index
    %c0_91 = arith.constant 0 : index
    %129 = vector.load %arg2[%c3_89, %c0_90, %c0_91] : memref<9x1x128xf32, #tpu.memory_space<vmem>>, vector<1x1x128xf32>
    %130 = vector.shape_cast %129 : vector<1x1x128xf32> to vector<1x128xf32>
    %131 = vector.broadcast %130 : vector<1x128xf32> to vector<16x128xf32>
    %132 = arith.mulf %128, %131 : vector<16x128xf32>
    %c4_92 = arith.constant 4 : index
    %c0_93 = arith.constant 0 : index
    %c0_94 = arith.constant 0 : index
    %133 = vector.load %arg2[%c4_92, %c0_93, %c0_94] : memref<9x1x128xf32, #tpu.memory_space<vmem>>, vector<1x1x128xf32>
    %134 = vector.shape_cast %133 : vector<1x1x128xf32> to vector<1x128xf32>
    %135 = vector.broadcast %134 : vector<1x128xf32> to vector<16x128xf32>
    %136 = arith.mulf %108, %135 : vector<16x128xf32>
    %c127_i32_95 = arith.constant 127 : i32
    %137 = tpu.dynamic_rotate %108 by %c127_i32_95 dim 1 : vector<16x128xf32>, i32 -> vector<16x128xf32>
    %c5_96 = arith.constant 5 : index
    %c0_97 = arith.constant 0 : index
    %c0_98 = arith.constant 0 : index
    %138 = vector.load %arg2[%c5_96, %c0_97, %c0_98] : memref<9x1x128xf32, #tpu.memory_space<vmem>>, vector<1x1x128xf32>
    %139 = vector.shape_cast %138 : vector<1x1x128xf32> to vector<1x128xf32>
    %140 = vector.broadcast %139 : vector<1x128xf32> to vector<16x128xf32>
    %141 = arith.mulf %137, %140 : vector<16x128xf32>
    %c121_i32_99 = arith.constant 121 : i32
    %142 = tpu.dynamic_rotate %108 by %c121_i32_99 dim 1 : vector<16x128xf32>, i32 -> vector<16x128xf32>
    %c6_100 = arith.constant 6 : index
    %c0_101 = arith.constant 0 : index
    %c0_102 = arith.constant 0 : index
    %143 = vector.load %arg2[%c6_100, %c0_101, %c0_102] : memref<9x1x128xf32, #tpu.memory_space<vmem>>, vector<1x1x128xf32>
    %144 = vector.shape_cast %143 : vector<1x1x128xf32> to vector<1x128xf32>
    %145 = vector.broadcast %144 : vector<1x128xf32> to vector<16x128xf32>
    %146 = arith.mulf %142, %145 : vector<16x128xf32>
    %c120_i32_103 = arith.constant 120 : i32
    %147 = tpu.dynamic_rotate %108 by %c120_i32_103 dim 1 : vector<16x128xf32>, i32 -> vector<16x128xf32>
    %c7_104 = arith.constant 7 : index
    %c0_105 = arith.constant 0 : index
    %c0_106 = arith.constant 0 : index
    %148 = vector.load %arg2[%c7_104, %c0_105, %c0_106] : memref<9x1x128xf32, #tpu.memory_space<vmem>>, vector<1x1x128xf32>
    %149 = vector.shape_cast %148 : vector<1x1x128xf32> to vector<1x128xf32>
    %150 = vector.broadcast %149 : vector<1x128xf32> to vector<16x128xf32>
    %151 = arith.mulf %147, %150 : vector<16x128xf32>
    %c119_i32_107 = arith.constant 119 : i32
    %152 = tpu.dynamic_rotate %108 by %c119_i32_107 dim 1 : vector<16x128xf32>, i32 -> vector<16x128xf32>
    %c8_108 = arith.constant 8 : index
    %c0_109 = arith.constant 0 : index
    %c0_110 = arith.constant 0 : index
    %153 = vector.load %arg2[%c8_108, %c0_109, %c0_110] : memref<9x1x128xf32, #tpu.memory_space<vmem>>, vector<1x1x128xf32>
    %154 = vector.shape_cast %153 : vector<1x1x128xf32> to vector<1x128xf32>
    %155 = vector.broadcast %154 : vector<1x128xf32> to vector<16x128xf32>
    %156 = arith.mulf %152, %155 : vector<16x128xf32>
    %157 = tpu.concatenate %117, %122, %127, %132, %136, %141, %146, %151, %156 in 0 : vector<16x128xf32>, vector<16x128xf32>, vector<16x128xf32>, vector<16x128xf32>, vector<16x128xf32>, vector<16x128xf32>, vector<16x128xf32>, vector<16x128xf32>, vector<16x128xf32> -> vector<144x128xf32>
    %cst_111 = arith.constant dense<0.000000e+00> : vector<16x128xf32>
    %158 = tpu.matmul %110, %157, %cst_111 {dimension_numbers = #tpu.dot_dimension_numbers<[1], [0], [0], [1], [0, 0, 1, 1], [], []>} : vector<16x144xf32>, vector<144x128xf32>, vector<16x128xf32> -> vector<16x128xf32>
    %159 = vector.broadcast %112 : vector<16x1xf32> to vector<16x128xf32>
    %160 = arith.addf %158, %159 : vector<16x128xf32>
    %cst_112 = arith.constant 0.000000e+00 : f32
    %161 = vector.broadcast %cst_112 : f32 to vector<16x128xf32>
    %162 = arith.maximumf %160, %161 : vector<16x128xf32>
    %c3_113 = arith.constant 3 : index
    %c0_114 = arith.constant 0 : index
    %c0_115 = arith.constant 0 : index
    %163 = vector.load %arg3[%c3_113, %c0_114, %c0_115] : memref<12x16x144xf32, #tpu.memory_space<vmem>>, vector<1x16x144xf32>
    %164 = vector.shape_cast %163 : vector<1x16x144xf32> to vector<16x144xf32>
    %c3_116 = arith.constant 3 : index
    %c0_117 = arith.constant 0 : index
    %c0_118 = arith.constant 0 : index
    %165 = vector.load %arg4[%c3_116, %c0_117, %c0_118] : memref<12x16x1xf32, #tpu.memory_space<vmem>>, vector<1x16x1xf32>
    %166 = vector.shape_cast %165 : vector<1x16x1xf32> to vector<16x1xf32>
    %c9_i32_119 = arith.constant 9 : i32
    %167 = tpu.dynamic_rotate %162 by %c9_i32_119 dim 1 : vector<16x128xf32>, i32 -> vector<16x128xf32>
    %c0_120 = arith.constant 0 : index
    %c0_121 = arith.constant 0 : index
    %c0_122 = arith.constant 0 : index
    %168 = vector.load %arg2[%c0_120, %c0_121, %c0_122] : memref<9x1x128xf32, #tpu.memory_space<vmem>>, vector<1x1x128xf32>
    %169 = vector.shape_cast %168 : vector<1x1x128xf32> to vector<1x128xf32>
    %170 = vector.broadcast %169 : vector<1x128xf32> to vector<16x128xf32>
    %171 = arith.mulf %167, %170 : vector<16x128xf32>
    %c8_i32_123 = arith.constant 8 : i32
    %172 = tpu.dynamic_rotate %162 by %c8_i32_123 dim 1 : vector<16x128xf32>, i32 -> vector<16x128xf32>
    %c1_124 = arith.constant 1 : index
    %c0_125 = arith.constant 0 : index
    %c0_126 = arith.constant 0 : index
    %173 = vector.load %arg2[%c1_124, %c0_125, %c0_126] : memref<9x1x128xf32, #tpu.memory_space<vmem>>, vector<1x1x128xf32>
    %174 = vector.shape_cast %173 : vector<1x1x128xf32> to vector<1x128xf32>
    %175 = vector.broadcast %174 : vector<1x128xf32> to vector<16x128xf32>
    %176 = arith.mulf %172, %175 : vector<16x128xf32>
    %c7_i32_127 = arith.constant 7 : i32
    %177 = tpu.dynamic_rotate %162 by %c7_i32_127 dim 1 : vector<16x128xf32>, i32 -> vector<16x128xf32>
    %c2_128 = arith.constant 2 : index
    %c0_129 = arith.constant 0 : index
    %c0_130 = arith.constant 0 : index
    %178 = vector.load %arg2[%c2_128, %c0_129, %c0_130] : memref<9x1x128xf32, #tpu.memory_space<vmem>>, vector<1x1x128xf32>
    %179 = vector.shape_cast %178 : vector<1x1x128xf32> to vector<1x128xf32>
    %180 = vector.broadcast %179 : vector<1x128xf32> to vector<16x128xf32>
    %181 = arith.mulf %177, %180 : vector<16x128xf32>
    %c1_i32_131 = arith.constant 1 : i32
    %182 = tpu.dynamic_rotate %162 by %c1_i32_131 dim 1 : vector<16x128xf32>, i32 -> vector<16x128xf32>
    %c3_132 = arith.constant 3 : index
    %c0_133 = arith.constant 0 : index
    %c0_134 = arith.constant 0 : index
    %183 = vector.load %arg2[%c3_132, %c0_133, %c0_134] : memref<9x1x128xf32, #tpu.memory_space<vmem>>, vector<1x1x128xf32>
    %184 = vector.shape_cast %183 : vector<1x1x128xf32> to vector<1x128xf32>
    %185 = vector.broadcast %184 : vector<1x128xf32> to vector<16x128xf32>
    %186 = arith.mulf %182, %185 : vector<16x128xf32>
    %c4_135 = arith.constant 4 : index
    %c0_136 = arith.constant 0 : index
    %c0_137 = arith.constant 0 : index
    %187 = vector.load %arg2[%c4_135, %c0_136, %c0_137] : memref<9x1x128xf32, #tpu.memory_space<vmem>>, vector<1x1x128xf32>
    %188 = vector.shape_cast %187 : vector<1x1x128xf32> to vector<1x128xf32>
    %189 = vector.broadcast %188 : vector<1x128xf32> to vector<16x128xf32>
    %190 = arith.mulf %162, %189 : vector<16x128xf32>
    %c127_i32_138 = arith.constant 127 : i32
    %191 = tpu.dynamic_rotate %162 by %c127_i32_138 dim 1 : vector<16x128xf32>, i32 -> vector<16x128xf32>
    %c5_139 = arith.constant 5 : index
    %c0_140 = arith.constant 0 : index
    %c0_141 = arith.constant 0 : index
    %192 = vector.load %arg2[%c5_139, %c0_140, %c0_141] : memref<9x1x128xf32, #tpu.memory_space<vmem>>, vector<1x1x128xf32>
    %193 = vector.shape_cast %192 : vector<1x1x128xf32> to vector<1x128xf32>
    %194 = vector.broadcast %193 : vector<1x128xf32> to vector<16x128xf32>
    %195 = arith.mulf %191, %194 : vector<16x128xf32>
    %c121_i32_142 = arith.constant 121 : i32
    %196 = tpu.dynamic_rotate %162 by %c121_i32_142 dim 1 : vector<16x128xf32>, i32 -> vector<16x128xf32>
    %c6_143 = arith.constant 6 : index
    %c0_144 = arith.constant 0 : index
    %c0_145 = arith.constant 0 : index
    %197 = vector.load %arg2[%c6_143, %c0_144, %c0_145] : memref<9x1x128xf32, #tpu.memory_space<vmem>>, vector<1x1x128xf32>
    %198 = vector.shape_cast %197 : vector<1x1x128xf32> to vector<1x128xf32>
    %199 = vector.broadcast %198 : vector<1x128xf32> to vector<16x128xf32>
    %200 = arith.mulf %196, %199 : vector<16x128xf32>
    %c120_i32_146 = arith.constant 120 : i32
    %201 = tpu.dynamic_rotate %162 by %c120_i32_146 dim 1 : vector<16x128xf32>, i32 -> vector<16x128xf32>
    %c7_147 = arith.constant 7 : index
    %c0_148 = arith.constant 0 : index
    %c0_149 = arith.constant 0 : index
    %202 = vector.load %arg2[%c7_147, %c0_148, %c0_149] : memref<9x1x128xf32, #tpu.memory_space<vmem>>, vector<1x1x128xf32>
    %203 = vector.shape_cast %202 : vector<1x1x128xf32> to vector<1x128xf32>
    %204 = vector.broadcast %203 : vector<1x128xf32> to vector<16x128xf32>
    %205 = arith.mulf %201, %204 : vector<16x128xf32>
    %c119_i32_150 = arith.constant 119 : i32
    %206 = tpu.dynamic_rotate %162 by %c119_i32_150 dim 1 : vector<16x128xf32>, i32 -> vector<16x128xf32>
    %c8_151 = arith.constant 8 : index
    %c0_152 = arith.constant 0 : index
    %c0_153 = arith.constant 0 : index
    %207 = vector.load %arg2[%c8_151, %c0_152, %c0_153] : memref<9x1x128xf32, #tpu.memory_space<vmem>>, vector<1x1x128xf32>
    %208 = vector.shape_cast %207 : vector<1x1x128xf32> to vector<1x128xf32>
    %209 = vector.broadcast %208 : vector<1x128xf32> to vector<16x128xf32>
    %210 = arith.mulf %206, %209 : vector<16x128xf32>
    %211 = tpu.concatenate %171, %176, %181, %186, %190, %195, %200, %205, %210 in 0 : vector<16x128xf32>, vector<16x128xf32>, vector<16x128xf32>, vector<16x128xf32>, vector<16x128xf32>, vector<16x128xf32>, vector<16x128xf32>, vector<16x128xf32>, vector<16x128xf32> -> vector<144x128xf32>
    %cst_154 = arith.constant dense<0.000000e+00> : vector<16x128xf32>
    %212 = tpu.matmul %164, %211, %cst_154 {dimension_numbers = #tpu.dot_dimension_numbers<[1], [0], [0], [1], [0, 0, 1, 1], [], []>} : vector<16x144xf32>, vector<144x128xf32>, vector<16x128xf32> -> vector<16x128xf32>
    %213 = vector.broadcast %166 : vector<16x1xf32> to vector<16x128xf32>
    %214 = arith.addf %212, %213 : vector<16x128xf32>
    %cst_155 = arith.constant 0.000000e+00 : f32
    %215 = vector.broadcast %cst_155 : f32 to vector<16x128xf32>
    %216 = arith.maximumf %214, %215 : vector<16x128xf32>
    %c4_156 = arith.constant 4 : index
    %c0_157 = arith.constant 0 : index
    %c0_158 = arith.constant 0 : index
    %217 = vector.load %arg3[%c4_156, %c0_157, %c0_158] : memref<12x16x144xf32, #tpu.memory_space<vmem>>, vector<1x16x144xf32>
    %218 = vector.shape_cast %217 : vector<1x16x144xf32> to vector<16x144xf32>
    %c4_159 = arith.constant 4 : index
    %c0_160 = arith.constant 0 : index
    %c0_161 = arith.constant 0 : index
    %219 = vector.load %arg4[%c4_159, %c0_160, %c0_161] : memref<12x16x1xf32, #tpu.memory_space<vmem>>, vector<1x16x1xf32>
    %220 = vector.shape_cast %219 : vector<1x16x1xf32> to vector<16x1xf32>
    %c9_i32_162 = arith.constant 9 : i32
    %221 = tpu.dynamic_rotate %216 by %c9_i32_162 dim 1 : vector<16x128xf32>, i32 -> vector<16x128xf32>
    %c0_163 = arith.constant 0 : index
    %c0_164 = arith.constant 0 : index
    %c0_165 = arith.constant 0 : index
    %222 = vector.load %arg2[%c0_163, %c0_164, %c0_165] : memref<9x1x128xf32, #tpu.memory_space<vmem>>, vector<1x1x128xf32>
    %223 = vector.shape_cast %222 : vector<1x1x128xf32> to vector<1x128xf32>
    %224 = vector.broadcast %223 : vector<1x128xf32> to vector<16x128xf32>
    %225 = arith.mulf %221, %224 : vector<16x128xf32>
    %c8_i32_166 = arith.constant 8 : i32
    %226 = tpu.dynamic_rotate %216 by %c8_i32_166 dim 1 : vector<16x128xf32>, i32 -> vector<16x128xf32>
    %c1_167 = arith.constant 1 : index
    %c0_168 = arith.constant 0 : index
    %c0_169 = arith.constant 0 : index
    %227 = vector.load %arg2[%c1_167, %c0_168, %c0_169] : memref<9x1x128xf32, #tpu.memory_space<vmem>>, vector<1x1x128xf32>
    %228 = vector.shape_cast %227 : vector<1x1x128xf32> to vector<1x128xf32>
    %229 = vector.broadcast %228 : vector<1x128xf32> to vector<16x128xf32>
    %230 = arith.mulf %226, %229 : vector<16x128xf32>
    %c7_i32_170 = arith.constant 7 : i32
    %231 = tpu.dynamic_rotate %216 by %c7_i32_170 dim 1 : vector<16x128xf32>, i32 -> vector<16x128xf32>
    %c2_171 = arith.constant 2 : index
    %c0_172 = arith.constant 0 : index
    %c0_173 = arith.constant 0 : index
    %232 = vector.load %arg2[%c2_171, %c0_172, %c0_173] : memref<9x1x128xf32, #tpu.memory_space<vmem>>, vector<1x1x128xf32>
    %233 = vector.shape_cast %232 : vector<1x1x128xf32> to vector<1x128xf32>
    %234 = vector.broadcast %233 : vector<1x128xf32> to vector<16x128xf32>
    %235 = arith.mulf %231, %234 : vector<16x128xf32>
    %c1_i32_174 = arith.constant 1 : i32
    %236 = tpu.dynamic_rotate %216 by %c1_i32_174 dim 1 : vector<16x128xf32>, i32 -> vector<16x128xf32>
    %c3_175 = arith.constant 3 : index
    %c0_176 = arith.constant 0 : index
    %c0_177 = arith.constant 0 : index
    %237 = vector.load %arg2[%c3_175, %c0_176, %c0_177] : memref<9x1x128xf32, #tpu.memory_space<vmem>>, vector<1x1x128xf32>
    %238 = vector.shape_cast %237 : vector<1x1x128xf32> to vector<1x128xf32>
    %239 = vector.broadcast %238 : vector<1x128xf32> to vector<16x128xf32>
    %240 = arith.mulf %236, %239 : vector<16x128xf32>
    %c4_178 = arith.constant 4 : index
    %c0_179 = arith.constant 0 : index
    %c0_180 = arith.constant 0 : index
    %241 = vector.load %arg2[%c4_178, %c0_179, %c0_180] : memref<9x1x128xf32, #tpu.memory_space<vmem>>, vector<1x1x128xf32>
    %242 = vector.shape_cast %241 : vector<1x1x128xf32> to vector<1x128xf32>
    %243 = vector.broadcast %242 : vector<1x128xf32> to vector<16x128xf32>
    %244 = arith.mulf %216, %243 : vector<16x128xf32>
    %c127_i32_181 = arith.constant 127 : i32
    %245 = tpu.dynamic_rotate %216 by %c127_i32_181 dim 1 : vector<16x128xf32>, i32 -> vector<16x128xf32>
    %c5_182 = arith.constant 5 : index
    %c0_183 = arith.constant 0 : index
    %c0_184 = arith.constant 0 : index
    %246 = vector.load %arg2[%c5_182, %c0_183, %c0_184] : memref<9x1x128xf32, #tpu.memory_space<vmem>>, vector<1x1x128xf32>
    %247 = vector.shape_cast %246 : vector<1x1x128xf32> to vector<1x128xf32>
    %248 = vector.broadcast %247 : vector<1x128xf32> to vector<16x128xf32>
    %249 = arith.mulf %245, %248 : vector<16x128xf32>
    %c121_i32_185 = arith.constant 121 : i32
    %250 = tpu.dynamic_rotate %216 by %c121_i32_185 dim 1 : vector<16x128xf32>, i32 -> vector<16x128xf32>
    %c6_186 = arith.constant 6 : index
    %c0_187 = arith.constant 0 : index
    %c0_188 = arith.constant 0 : index
    %251 = vector.load %arg2[%c6_186, %c0_187, %c0_188] : memref<9x1x128xf32, #tpu.memory_space<vmem>>, vector<1x1x128xf32>
    %252 = vector.shape_cast %251 : vector<1x1x128xf32> to vector<1x128xf32>
    %253 = vector.broadcast %252 : vector<1x128xf32> to vector<16x128xf32>
    %254 = arith.mulf %250, %253 : vector<16x128xf32>
    %c120_i32_189 = arith.constant 120 : i32
    %255 = tpu.dynamic_rotate %216 by %c120_i32_189 dim 1 : vector<16x128xf32>, i32 -> vector<16x128xf32>
    %c7_190 = arith.constant 7 : index
    %c0_191 = arith.constant 0 : index
    %c0_192 = arith.constant 0 : index
    %256 = vector.load %arg2[%c7_190, %c0_191, %c0_192] : memref<9x1x128xf32, #tpu.memory_space<vmem>>, vector<1x1x128xf32>
    %257 = vector.shape_cast %256 : vector<1x1x128xf32> to vector<1x128xf32>
    %258 = vector.broadcast %257 : vector<1x128xf32> to vector<16x128xf32>
    %259 = arith.mulf %255, %258 : vector<16x128xf32>
    %c119_i32_193 = arith.constant 119 : i32
    %260 = tpu.dynamic_rotate %216 by %c119_i32_193 dim 1 : vector<16x128xf32>, i32 -> vector<16x128xf32>
    %c8_194 = arith.constant 8 : index
    %c0_195 = arith.constant 0 : index
    %c0_196 = arith.constant 0 : index
    %261 = vector.load %arg2[%c8_194, %c0_195, %c0_196] : memref<9x1x128xf32, #tpu.memory_space<vmem>>, vector<1x1x128xf32>
    %262 = vector.shape_cast %261 : vector<1x1x128xf32> to vector<1x128xf32>
    %263 = vector.broadcast %262 : vector<1x128xf32> to vector<16x128xf32>
    %264 = arith.mulf %260, %263 : vector<16x128xf32>
    %265 = tpu.concatenate %225, %230, %235, %240, %244, %249, %254, %259, %264 in 0 : vector<16x128xf32>, vector<16x128xf32>, vector<16x128xf32>, vector<16x128xf32>, vector<16x128xf32>, vector<16x128xf32>, vector<16x128xf32>, vector<16x128xf32>, vector<16x128xf32> -> vector<144x128xf32>
    %cst_197 = arith.constant dense<0.000000e+00> : vector<16x128xf32>
    %266 = tpu.matmul %218, %265, %cst_197 {dimension_numbers = #tpu.dot_dimension_numbers<[1], [0], [0], [1], [0, 0, 1, 1], [], []>} : vector<16x144xf32>, vector<144x128xf32>, vector<16x128xf32> -> vector<16x128xf32>
    %267 = vector.broadcast %220 : vector<16x1xf32> to vector<16x128xf32>
    %268 = arith.addf %266, %267 : vector<16x128xf32>
    %cst_198 = arith.constant 0.000000e+00 : f32
    %269 = vector.broadcast %cst_198 : f32 to vector<16x128xf32>
    %270 = arith.maximumf %268, %269 : vector<16x128xf32>
    %c5_199 = arith.constant 5 : index
    %c0_200 = arith.constant 0 : index
    %c0_201 = arith.constant 0 : index
    %271 = vector.load %arg3[%c5_199, %c0_200, %c0_201] : memref<12x16x144xf32, #tpu.memory_space<vmem>>, vector<1x16x144xf32>
    %272 = vector.shape_cast %271 : vector<1x16x144xf32> to vector<16x144xf32>
    %c5_202 = arith.constant 5 : index
    %c0_203 = arith.constant 0 : index
    %c0_204 = arith.constant 0 : index
    %273 = vector.load %arg4[%c5_202, %c0_203, %c0_204] : memref<12x16x1xf32, #tpu.memory_space<vmem>>, vector<1x16x1xf32>
    %274 = vector.shape_cast %273 : vector<1x16x1xf32> to vector<16x1xf32>
    %c9_i32_205 = arith.constant 9 : i32
    %275 = tpu.dynamic_rotate %270 by %c9_i32_205 dim 1 : vector<16x128xf32>, i32 -> vector<16x128xf32>
    %c0_206 = arith.constant 0 : index
    %c0_207 = arith.constant 0 : index
    %c0_208 = arith.constant 0 : index
    %276 = vector.load %arg2[%c0_206, %c0_207, %c0_208] : memref<9x1x128xf32, #tpu.memory_space<vmem>>, vector<1x1x128xf32>
    %277 = vector.shape_cast %276 : vector<1x1x128xf32> to vector<1x128xf32>
    %278 = vector.broadcast %277 : vector<1x128xf32> to vector<16x128xf32>
    %279 = arith.mulf %275, %278 : vector<16x128xf32>
    %c8_i32_209 = arith.constant 8 : i32
    %280 = tpu.dynamic_rotate %270 by %c8_i32_209 dim 1 : vector<16x128xf32>, i32 -> vector<16x128xf32>
    %c1_210 = arith.constant 1 : index
    %c0_211 = arith.constant 0 : index
    %c0_212 = arith.constant 0 : index
    %281 = vector.load %arg2[%c1_210, %c0_211, %c0_212] : memref<9x1x128xf32, #tpu.memory_space<vmem>>, vector<1x1x128xf32>
    %282 = vector.shape_cast %281 : vector<1x1x128xf32> to vector<1x128xf32>
    %283 = vector.broadcast %282 : vector<1x128xf32> to vector<16x128xf32>
    %284 = arith.mulf %280, %283 : vector<16x128xf32>
    %c7_i32_213 = arith.constant 7 : i32
    %285 = tpu.dynamic_rotate %270 by %c7_i32_213 dim 1 : vector<16x128xf32>, i32 -> vector<16x128xf32>
    %c2_214 = arith.constant 2 : index
    %c0_215 = arith.constant 0 : index
    %c0_216 = arith.constant 0 : index
    %286 = vector.load %arg2[%c2_214, %c0_215, %c0_216] : memref<9x1x128xf32, #tpu.memory_space<vmem>>, vector<1x1x128xf32>
    %287 = vector.shape_cast %286 : vector<1x1x128xf32> to vector<1x128xf32>
    %288 = vector.broadcast %287 : vector<1x128xf32> to vector<16x128xf32>
    %289 = arith.mulf %285, %288 : vector<16x128xf32>
    %c1_i32_217 = arith.constant 1 : i32
    %290 = tpu.dynamic_rotate %270 by %c1_i32_217 dim 1 : vector<16x128xf32>, i32 -> vector<16x128xf32>
    %c3_218 = arith.constant 3 : index
    %c0_219 = arith.constant 0 : index
    %c0_220 = arith.constant 0 : index
    %291 = vector.load %arg2[%c3_218, %c0_219, %c0_220] : memref<9x1x128xf32, #tpu.memory_space<vmem>>, vector<1x1x128xf32>
    %292 = vector.shape_cast %291 : vector<1x1x128xf32> to vector<1x128xf32>
    %293 = vector.broadcast %292 : vector<1x128xf32> to vector<16x128xf32>
    %294 = arith.mulf %290, %293 : vector<16x128xf32>
    %c4_221 = arith.constant 4 : index
    %c0_222 = arith.constant 0 : index
    %c0_223 = arith.constant 0 : index
    %295 = vector.load %arg2[%c4_221, %c0_222, %c0_223] : memref<9x1x128xf32, #tpu.memory_space<vmem>>, vector<1x1x128xf32>
    %296 = vector.shape_cast %295 : vector<1x1x128xf32> to vector<1x128xf32>
    %297 = vector.broadcast %296 : vector<1x128xf32> to vector<16x128xf32>
    %298 = arith.mulf %270, %297 : vector<16x128xf32>
    %c127_i32_224 = arith.constant 127 : i32
    %299 = tpu.dynamic_rotate %270 by %c127_i32_224 dim 1 : vector<16x128xf32>, i32 -> vector<16x128xf32>
    %c5_225 = arith.constant 5 : index
    %c0_226 = arith.constant 0 : index
    %c0_227 = arith.constant 0 : index
    %300 = vector.load %arg2[%c5_225, %c0_226, %c0_227] : memref<9x1x128xf32, #tpu.memory_space<vmem>>, vector<1x1x128xf32>
    %301 = vector.shape_cast %300 : vector<1x1x128xf32> to vector<1x128xf32>
    %302 = vector.broadcast %301 : vector<1x128xf32> to vector<16x128xf32>
    %303 = arith.mulf %299, %302 : vector<16x128xf32>
    %c121_i32_228 = arith.constant 121 : i32
    %304 = tpu.dynamic_rotate %270 by %c121_i32_228 dim 1 : vector<16x128xf32>, i32 -> vector<16x128xf32>
    %c6_229 = arith.constant 6 : index
    %c0_230 = arith.constant 0 : index
    %c0_231 = arith.constant 0 : index
    %305 = vector.load %arg2[%c6_229, %c0_230, %c0_231] : memref<9x1x128xf32, #tpu.memory_space<vmem>>, vector<1x1x128xf32>
    %306 = vector.shape_cast %305 : vector<1x1x128xf32> to vector<1x128xf32>
    %307 = vector.broadcast %306 : vector<1x128xf32> to vector<16x128xf32>
    %308 = arith.mulf %304, %307 : vector<16x128xf32>
    %c120_i32_232 = arith.constant 120 : i32
    %309 = tpu.dynamic_rotate %270 by %c120_i32_232 dim 1 : vector<16x128xf32>, i32 -> vector<16x128xf32>
    %c7_233 = arith.constant 7 : index
    %c0_234 = arith.constant 0 : index
    %c0_235 = arith.constant 0 : index
    %310 = vector.load %arg2[%c7_233, %c0_234, %c0_235] : memref<9x1x128xf32, #tpu.memory_space<vmem>>, vector<1x1x128xf32>
    %311 = vector.shape_cast %310 : vector<1x1x128xf32> to vector<1x128xf32>
    %312 = vector.broadcast %311 : vector<1x128xf32> to vector<16x128xf32>
    %313 = arith.mulf %309, %312 : vector<16x128xf32>
    %c119_i32_236 = arith.constant 119 : i32
    %314 = tpu.dynamic_rotate %270 by %c119_i32_236 dim 1 : vector<16x128xf32>, i32 -> vector<16x128xf32>
    %c8_237 = arith.constant 8 : index
    %c0_238 = arith.constant 0 : index
    %c0_239 = arith.constant 0 : index
    %315 = vector.load %arg2[%c8_237, %c0_238, %c0_239] : memref<9x1x128xf32, #tpu.memory_space<vmem>>, vector<1x1x128xf32>
    %316 = vector.shape_cast %315 : vector<1x1x128xf32> to vector<1x128xf32>
    %317 = vector.broadcast %316 : vector<1x128xf32> to vector<16x128xf32>
    %318 = arith.mulf %314, %317 : vector<16x128xf32>
    %319 = tpu.concatenate %279, %284, %289, %294, %298, %303, %308, %313, %318 in 0 : vector<16x128xf32>, vector<16x128xf32>, vector<16x128xf32>, vector<16x128xf32>, vector<16x128xf32>, vector<16x128xf32>, vector<16x128xf32>, vector<16x128xf32>, vector<16x128xf32> -> vector<144x128xf32>
    %cst_240 = arith.constant dense<0.000000e+00> : vector<16x128xf32>
    %320 = tpu.matmul %272, %319, %cst_240 {dimension_numbers = #tpu.dot_dimension_numbers<[1], [0], [0], [1], [0, 0, 1, 1], [], []>} : vector<16x144xf32>, vector<144x128xf32>, vector<16x128xf32> -> vector<16x128xf32>
    %321 = vector.broadcast %274 : vector<16x1xf32> to vector<16x128xf32>
    %322 = arith.addf %320, %321 : vector<16x128xf32>
    %cst_241 = arith.constant 0.000000e+00 : f32
    %323 = vector.broadcast %cst_241 : f32 to vector<16x128xf32>
    %324 = arith.maximumf %322, %323 : vector<16x128xf32>
    %c6_242 = arith.constant 6 : index
    %c0_243 = arith.constant 0 : index
    %c0_244 = arith.constant 0 : index
    %325 = vector.load %arg3[%c6_242, %c0_243, %c0_244] : memref<12x16x144xf32, #tpu.memory_space<vmem>>, vector<1x16x144xf32>
    %326 = vector.shape_cast %325 : vector<1x16x144xf32> to vector<16x144xf32>
    %c6_245 = arith.constant 6 : index
    %c0_246 = arith.constant 0 : index
    %c0_247 = arith.constant 0 : index
    %327 = vector.load %arg4[%c6_245, %c0_246, %c0_247] : memref<12x16x1xf32, #tpu.memory_space<vmem>>, vector<1x16x1xf32>
    %328 = vector.shape_cast %327 : vector<1x16x1xf32> to vector<16x1xf32>
    %c9_i32_248 = arith.constant 9 : i32
    %329 = tpu.dynamic_rotate %324 by %c9_i32_248 dim 1 : vector<16x128xf32>, i32 -> vector<16x128xf32>
    %c0_249 = arith.constant 0 : index
    %c0_250 = arith.constant 0 : index
    %c0_251 = arith.constant 0 : index
    %330 = vector.load %arg2[%c0_249, %c0_250, %c0_251] : memref<9x1x128xf32, #tpu.memory_space<vmem>>, vector<1x1x128xf32>
    %331 = vector.shape_cast %330 : vector<1x1x128xf32> to vector<1x128xf32>
    %332 = vector.broadcast %331 : vector<1x128xf32> to vector<16x128xf32>
    %333 = arith.mulf %329, %332 : vector<16x128xf32>
    %c8_i32_252 = arith.constant 8 : i32
    %334 = tpu.dynamic_rotate %324 by %c8_i32_252 dim 1 : vector<16x128xf32>, i32 -> vector<16x128xf32>
    %c1_253 = arith.constant 1 : index
    %c0_254 = arith.constant 0 : index
    %c0_255 = arith.constant 0 : index
    %335 = vector.load %arg2[%c1_253, %c0_254, %c0_255] : memref<9x1x128xf32, #tpu.memory_space<vmem>>, vector<1x1x128xf32>
    %336 = vector.shape_cast %335 : vector<1x1x128xf32> to vector<1x128xf32>
    %337 = vector.broadcast %336 : vector<1x128xf32> to vector<16x128xf32>
    %338 = arith.mulf %334, %337 : vector<16x128xf32>
    %c7_i32_256 = arith.constant 7 : i32
    %339 = tpu.dynamic_rotate %324 by %c7_i32_256 dim 1 : vector<16x128xf32>, i32 -> vector<16x128xf32>
    %c2_257 = arith.constant 2 : index
    %c0_258 = arith.constant 0 : index
    %c0_259 = arith.constant 0 : index
    %340 = vector.load %arg2[%c2_257, %c0_258, %c0_259] : memref<9x1x128xf32, #tpu.memory_space<vmem>>, vector<1x1x128xf32>
    %341 = vector.shape_cast %340 : vector<1x1x128xf32> to vector<1x128xf32>
    %342 = vector.broadcast %341 : vector<1x128xf32> to vector<16x128xf32>
    %343 = arith.mulf %339, %342 : vector<16x128xf32>
    %c1_i32_260 = arith.constant 1 : i32
    %344 = tpu.dynamic_rotate %324 by %c1_i32_260 dim 1 : vector<16x128xf32>, i32 -> vector<16x128xf32>
    %c3_261 = arith.constant 3 : index
    %c0_262 = arith.constant 0 : index
    %c0_263 = arith.constant 0 : index
    %345 = vector.load %arg2[%c3_261, %c0_262, %c0_263] : memref<9x1x128xf32, #tpu.memory_space<vmem>>, vector<1x1x128xf32>
    %346 = vector.shape_cast %345 : vector<1x1x128xf32> to vector<1x128xf32>
    %347 = vector.broadcast %346 : vector<1x128xf32> to vector<16x128xf32>
    %348 = arith.mulf %344, %347 : vector<16x128xf32>
    %c4_264 = arith.constant 4 : index
    %c0_265 = arith.constant 0 : index
    %c0_266 = arith.constant 0 : index
    %349 = vector.load %arg2[%c4_264, %c0_265, %c0_266] : memref<9x1x128xf32, #tpu.memory_space<vmem>>, vector<1x1x128xf32>
    %350 = vector.shape_cast %349 : vector<1x1x128xf32> to vector<1x128xf32>
    %351 = vector.broadcast %350 : vector<1x128xf32> to vector<16x128xf32>
    %352 = arith.mulf %324, %351 : vector<16x128xf32>
    %c127_i32_267 = arith.constant 127 : i32
    %353 = tpu.dynamic_rotate %324 by %c127_i32_267 dim 1 : vector<16x128xf32>, i32 -> vector<16x128xf32>
    %c5_268 = arith.constant 5 : index
    %c0_269 = arith.constant 0 : index
    %c0_270 = arith.constant 0 : index
    %354 = vector.load %arg2[%c5_268, %c0_269, %c0_270] : memref<9x1x128xf32, #tpu.memory_space<vmem>>, vector<1x1x128xf32>
    %355 = vector.shape_cast %354 : vector<1x1x128xf32> to vector<1x128xf32>
    %356 = vector.broadcast %355 : vector<1x128xf32> to vector<16x128xf32>
    %357 = arith.mulf %353, %356 : vector<16x128xf32>
    %c121_i32_271 = arith.constant 121 : i32
    %358 = tpu.dynamic_rotate %324 by %c121_i32_271 dim 1 : vector<16x128xf32>, i32 -> vector<16x128xf32>
    %c6_272 = arith.constant 6 : index
    %c0_273 = arith.constant 0 : index
    %c0_274 = arith.constant 0 : index
    %359 = vector.load %arg2[%c6_272, %c0_273, %c0_274] : memref<9x1x128xf32, #tpu.memory_space<vmem>>, vector<1x1x128xf32>
    %360 = vector.shape_cast %359 : vector<1x1x128xf32> to vector<1x128xf32>
    %361 = vector.broadcast %360 : vector<1x128xf32> to vector<16x128xf32>
    %362 = arith.mulf %358, %361 : vector<16x128xf32>
    %c120_i32_275 = arith.constant 120 : i32
    %363 = tpu.dynamic_rotate %324 by %c120_i32_275 dim 1 : vector<16x128xf32>, i32 -> vector<16x128xf32>
    %c7_276 = arith.constant 7 : index
    %c0_277 = arith.constant 0 : index
    %c0_278 = arith.constant 0 : index
    %364 = vector.load %arg2[%c7_276, %c0_277, %c0_278] : memref<9x1x128xf32, #tpu.memory_space<vmem>>, vector<1x1x128xf32>
    %365 = vector.shape_cast %364 : vector<1x1x128xf32> to vector<1x128xf32>
    %366 = vector.broadcast %365 : vector<1x128xf32> to vector<16x128xf32>
    %367 = arith.mulf %363, %366 : vector<16x128xf32>
    %c119_i32_279 = arith.constant 119 : i32
    %368 = tpu.dynamic_rotate %324 by %c119_i32_279 dim 1 : vector<16x128xf32>, i32 -> vector<16x128xf32>
    %c8_280 = arith.constant 8 : index
    %c0_281 = arith.constant 0 : index
    %c0_282 = arith.constant 0 : index
    %369 = vector.load %arg2[%c8_280, %c0_281, %c0_282] : memref<9x1x128xf32, #tpu.memory_space<vmem>>, vector<1x1x128xf32>
    %370 = vector.shape_cast %369 : vector<1x1x128xf32> to vector<1x128xf32>
    %371 = vector.broadcast %370 : vector<1x128xf32> to vector<16x128xf32>
    %372 = arith.mulf %368, %371 : vector<16x128xf32>
    %373 = tpu.concatenate %333, %338, %343, %348, %352, %357, %362, %367, %372 in 0 : vector<16x128xf32>, vector<16x128xf32>, vector<16x128xf32>, vector<16x128xf32>, vector<16x128xf32>, vector<16x128xf32>, vector<16x128xf32>, vector<16x128xf32>, vector<16x128xf32> -> vector<144x128xf32>
    %cst_283 = arith.constant dense<0.000000e+00> : vector<16x128xf32>
    %374 = tpu.matmul %326, %373, %cst_283 {dimension_numbers = #tpu.dot_dimension_numbers<[1], [0], [0], [1], [0, 0, 1, 1], [], []>} : vector<16x144xf32>, vector<144x128xf32>, vector<16x128xf32> -> vector<16x128xf32>
    %375 = vector.broadcast %328 : vector<16x1xf32> to vector<16x128xf32>
    %376 = arith.addf %374, %375 : vector<16x128xf32>
    %cst_284 = arith.constant 0.000000e+00 : f32
    %377 = vector.broadcast %cst_284 : f32 to vector<16x128xf32>
    %378 = arith.maximumf %376, %377 : vector<16x128xf32>
    %c7_285 = arith.constant 7 : index
    %c0_286 = arith.constant 0 : index
    %c0_287 = arith.constant 0 : index
    %379 = vector.load %arg3[%c7_285, %c0_286, %c0_287] : memref<12x16x144xf32, #tpu.memory_space<vmem>>, vector<1x16x144xf32>
    %380 = vector.shape_cast %379 : vector<1x16x144xf32> to vector<16x144xf32>
    %c7_288 = arith.constant 7 : index
    %c0_289 = arith.constant 0 : index
    %c0_290 = arith.constant 0 : index
    %381 = vector.load %arg4[%c7_288, %c0_289, %c0_290] : memref<12x16x1xf32, #tpu.memory_space<vmem>>, vector<1x16x1xf32>
    %382 = vector.shape_cast %381 : vector<1x16x1xf32> to vector<16x1xf32>
    %c9_i32_291 = arith.constant 9 : i32
    %383 = tpu.dynamic_rotate %378 by %c9_i32_291 dim 1 : vector<16x128xf32>, i32 -> vector<16x128xf32>
    %c0_292 = arith.constant 0 : index
    %c0_293 = arith.constant 0 : index
    %c0_294 = arith.constant 0 : index
    %384 = vector.load %arg2[%c0_292, %c0_293, %c0_294] : memref<9x1x128xf32, #tpu.memory_space<vmem>>, vector<1x1x128xf32>
    %385 = vector.shape_cast %384 : vector<1x1x128xf32> to vector<1x128xf32>
    %386 = vector.broadcast %385 : vector<1x128xf32> to vector<16x128xf32>
    %387 = arith.mulf %383, %386 : vector<16x128xf32>
    %c8_i32_295 = arith.constant 8 : i32
    %388 = tpu.dynamic_rotate %378 by %c8_i32_295 dim 1 : vector<16x128xf32>, i32 -> vector<16x128xf32>
    %c1_296 = arith.constant 1 : index
    %c0_297 = arith.constant 0 : index
    %c0_298 = arith.constant 0 : index
    %389 = vector.load %arg2[%c1_296, %c0_297, %c0_298] : memref<9x1x128xf32, #tpu.memory_space<vmem>>, vector<1x1x128xf32>
    %390 = vector.shape_cast %389 : vector<1x1x128xf32> to vector<1x128xf32>
    %391 = vector.broadcast %390 : vector<1x128xf32> to vector<16x128xf32>
    %392 = arith.mulf %388, %391 : vector<16x128xf32>
    %c7_i32_299 = arith.constant 7 : i32
    %393 = tpu.dynamic_rotate %378 by %c7_i32_299 dim 1 : vector<16x128xf32>, i32 -> vector<16x128xf32>
    %c2_300 = arith.constant 2 : index
    %c0_301 = arith.constant 0 : index
    %c0_302 = arith.constant 0 : index
    %394 = vector.load %arg2[%c2_300, %c0_301, %c0_302] : memref<9x1x128xf32, #tpu.memory_space<vmem>>, vector<1x1x128xf32>
    %395 = vector.shape_cast %394 : vector<1x1x128xf32> to vector<1x128xf32>
    %396 = vector.broadcast %395 : vector<1x128xf32> to vector<16x128xf32>
    %397 = arith.mulf %393, %396 : vector<16x128xf32>
    %c1_i32_303 = arith.constant 1 : i32
    %398 = tpu.dynamic_rotate %378 by %c1_i32_303 dim 1 : vector<16x128xf32>, i32 -> vector<16x128xf32>
    %c3_304 = arith.constant 3 : index
    %c0_305 = arith.constant 0 : index
    %c0_306 = arith.constant 0 : index
    %399 = vector.load %arg2[%c3_304, %c0_305, %c0_306] : memref<9x1x128xf32, #tpu.memory_space<vmem>>, vector<1x1x128xf32>
    %400 = vector.shape_cast %399 : vector<1x1x128xf32> to vector<1x128xf32>
    %401 = vector.broadcast %400 : vector<1x128xf32> to vector<16x128xf32>
    %402 = arith.mulf %398, %401 : vector<16x128xf32>
    %c4_307 = arith.constant 4 : index
    %c0_308 = arith.constant 0 : index
    %c0_309 = arith.constant 0 : index
    %403 = vector.load %arg2[%c4_307, %c0_308, %c0_309] : memref<9x1x128xf32, #tpu.memory_space<vmem>>, vector<1x1x128xf32>
    %404 = vector.shape_cast %403 : vector<1x1x128xf32> to vector<1x128xf32>
    %405 = vector.broadcast %404 : vector<1x128xf32> to vector<16x128xf32>
    %406 = arith.mulf %378, %405 : vector<16x128xf32>
    %c127_i32_310 = arith.constant 127 : i32
    %407 = tpu.dynamic_rotate %378 by %c127_i32_310 dim 1 : vector<16x128xf32>, i32 -> vector<16x128xf32>
    %c5_311 = arith.constant 5 : index
    %c0_312 = arith.constant 0 : index
    %c0_313 = arith.constant 0 : index
    %408 = vector.load %arg2[%c5_311, %c0_312, %c0_313] : memref<9x1x128xf32, #tpu.memory_space<vmem>>, vector<1x1x128xf32>
    %409 = vector.shape_cast %408 : vector<1x1x128xf32> to vector<1x128xf32>
    %410 = vector.broadcast %409 : vector<1x128xf32> to vector<16x128xf32>
    %411 = arith.mulf %407, %410 : vector<16x128xf32>
    %c121_i32_314 = arith.constant 121 : i32
    %412 = tpu.dynamic_rotate %378 by %c121_i32_314 dim 1 : vector<16x128xf32>, i32 -> vector<16x128xf32>
    %c6_315 = arith.constant 6 : index
    %c0_316 = arith.constant 0 : index
    %c0_317 = arith.constant 0 : index
    %413 = vector.load %arg2[%c6_315, %c0_316, %c0_317] : memref<9x1x128xf32, #tpu.memory_space<vmem>>, vector<1x1x128xf32>
    %414 = vector.shape_cast %413 : vector<1x1x128xf32> to vector<1x128xf32>
    %415 = vector.broadcast %414 : vector<1x128xf32> to vector<16x128xf32>
    %416 = arith.mulf %412, %415 : vector<16x128xf32>
    %c120_i32_318 = arith.constant 120 : i32
    %417 = tpu.dynamic_rotate %378 by %c120_i32_318 dim 1 : vector<16x128xf32>, i32 -> vector<16x128xf32>
    %c7_319 = arith.constant 7 : index
    %c0_320 = arith.constant 0 : index
    %c0_321 = arith.constant 0 : index
    %418 = vector.load %arg2[%c7_319, %c0_320, %c0_321] : memref<9x1x128xf32, #tpu.memory_space<vmem>>, vector<1x1x128xf32>
    %419 = vector.shape_cast %418 : vector<1x1x128xf32> to vector<1x128xf32>
    %420 = vector.broadcast %419 : vector<1x128xf32> to vector<16x128xf32>
    %421 = arith.mulf %417, %420 : vector<16x128xf32>
    %c119_i32_322 = arith.constant 119 : i32
    %422 = tpu.dynamic_rotate %378 by %c119_i32_322 dim 1 : vector<16x128xf32>, i32 -> vector<16x128xf32>
    %c8_323 = arith.constant 8 : index
    %c0_324 = arith.constant 0 : index
    %c0_325 = arith.constant 0 : index
    %423 = vector.load %arg2[%c8_323, %c0_324, %c0_325] : memref<9x1x128xf32, #tpu.memory_space<vmem>>, vector<1x1x128xf32>
    %424 = vector.shape_cast %423 : vector<1x1x128xf32> to vector<1x128xf32>
    %425 = vector.broadcast %424 : vector<1x128xf32> to vector<16x128xf32>
    %426 = arith.mulf %422, %425 : vector<16x128xf32>
    %427 = tpu.concatenate %387, %392, %397, %402, %406, %411, %416, %421, %426 in 0 : vector<16x128xf32>, vector<16x128xf32>, vector<16x128xf32>, vector<16x128xf32>, vector<16x128xf32>, vector<16x128xf32>, vector<16x128xf32>, vector<16x128xf32>, vector<16x128xf32> -> vector<144x128xf32>
    %cst_326 = arith.constant dense<0.000000e+00> : vector<16x128xf32>
    %428 = tpu.matmul %380, %427, %cst_326 {dimension_numbers = #tpu.dot_dimension_numbers<[1], [0], [0], [1], [0, 0, 1, 1], [], []>} : vector<16x144xf32>, vector<144x128xf32>, vector<16x128xf32> -> vector<16x128xf32>
    %429 = vector.broadcast %382 : vector<16x1xf32> to vector<16x128xf32>
    %430 = arith.addf %428, %429 : vector<16x128xf32>
    %cst_327 = arith.constant 0.000000e+00 : f32
    %431 = vector.broadcast %cst_327 : f32 to vector<16x128xf32>
    %432 = arith.maximumf %430, %431 : vector<16x128xf32>
    %c8_328 = arith.constant 8 : index
    %c0_329 = arith.constant 0 : index
    %c0_330 = arith.constant 0 : index
    %433 = vector.load %arg3[%c8_328, %c0_329, %c0_330] : memref<12x16x144xf32, #tpu.memory_space<vmem>>, vector<1x16x144xf32>
    %434 = vector.shape_cast %433 : vector<1x16x144xf32> to vector<16x144xf32>
    %c8_331 = arith.constant 8 : index
    %c0_332 = arith.constant 0 : index
    %c0_333 = arith.constant 0 : index
    %435 = vector.load %arg4[%c8_331, %c0_332, %c0_333] : memref<12x16x1xf32, #tpu.memory_space<vmem>>, vector<1x16x1xf32>
    %436 = vector.shape_cast %435 : vector<1x16x1xf32> to vector<16x1xf32>
    %c9_i32_334 = arith.constant 9 : i32
    %437 = tpu.dynamic_rotate %432 by %c9_i32_334 dim 1 : vector<16x128xf32>, i32 -> vector<16x128xf32>
    %c0_335 = arith.constant 0 : index
    %c0_336 = arith.constant 0 : index
    %c0_337 = arith.constant 0 : index
    %438 = vector.load %arg2[%c0_335, %c0_336, %c0_337] : memref<9x1x128xf32, #tpu.memory_space<vmem>>, vector<1x1x128xf32>
    %439 = vector.shape_cast %438 : vector<1x1x128xf32> to vector<1x128xf32>
    %440 = vector.broadcast %439 : vector<1x128xf32> to vector<16x128xf32>
    %441 = arith.mulf %437, %440 : vector<16x128xf32>
    %c8_i32_338 = arith.constant 8 : i32
    %442 = tpu.dynamic_rotate %432 by %c8_i32_338 dim 1 : vector<16x128xf32>, i32 -> vector<16x128xf32>
    %c1_339 = arith.constant 1 : index
    %c0_340 = arith.constant 0 : index
    %c0_341 = arith.constant 0 : index
    %443 = vector.load %arg2[%c1_339, %c0_340, %c0_341] : memref<9x1x128xf32, #tpu.memory_space<vmem>>, vector<1x1x128xf32>
    %444 = vector.shape_cast %443 : vector<1x1x128xf32> to vector<1x128xf32>
    %445 = vector.broadcast %444 : vector<1x128xf32> to vector<16x128xf32>
    %446 = arith.mulf %442, %445 : vector<16x128xf32>
    %c7_i32_342 = arith.constant 7 : i32
    %447 = tpu.dynamic_rotate %432 by %c7_i32_342 dim 1 : vector<16x128xf32>, i32 -> vector<16x128xf32>
    %c2_343 = arith.constant 2 : index
    %c0_344 = arith.constant 0 : index
    %c0_345 = arith.constant 0 : index
    %448 = vector.load %arg2[%c2_343, %c0_344, %c0_345] : memref<9x1x128xf32, #tpu.memory_space<vmem>>, vector<1x1x128xf32>
    %449 = vector.shape_cast %448 : vector<1x1x128xf32> to vector<1x128xf32>
    %450 = vector.broadcast %449 : vector<1x128xf32> to vector<16x128xf32>
    %451 = arith.mulf %447, %450 : vector<16x128xf32>
    %c1_i32_346 = arith.constant 1 : i32
    %452 = tpu.dynamic_rotate %432 by %c1_i32_346 dim 1 : vector<16x128xf32>, i32 -> vector<16x128xf32>
    %c3_347 = arith.constant 3 : index
    %c0_348 = arith.constant 0 : index
    %c0_349 = arith.constant 0 : index
    %453 = vector.load %arg2[%c3_347, %c0_348, %c0_349] : memref<9x1x128xf32, #tpu.memory_space<vmem>>, vector<1x1x128xf32>
    %454 = vector.shape_cast %453 : vector<1x1x128xf32> to vector<1x128xf32>
    %455 = vector.broadcast %454 : vector<1x128xf32> to vector<16x128xf32>
    %456 = arith.mulf %452, %455 : vector<16x128xf32>
    %c4_350 = arith.constant 4 : index
    %c0_351 = arith.constant 0 : index
    %c0_352 = arith.constant 0 : index
    %457 = vector.load %arg2[%c4_350, %c0_351, %c0_352] : memref<9x1x128xf32, #tpu.memory_space<vmem>>, vector<1x1x128xf32>
    %458 = vector.shape_cast %457 : vector<1x1x128xf32> to vector<1x128xf32>
    %459 = vector.broadcast %458 : vector<1x128xf32> to vector<16x128xf32>
    %460 = arith.mulf %432, %459 : vector<16x128xf32>
    %c127_i32_353 = arith.constant 127 : i32
    %461 = tpu.dynamic_rotate %432 by %c127_i32_353 dim 1 : vector<16x128xf32>, i32 -> vector<16x128xf32>
    %c5_354 = arith.constant 5 : index
    %c0_355 = arith.constant 0 : index
    %c0_356 = arith.constant 0 : index
    %462 = vector.load %arg2[%c5_354, %c0_355, %c0_356] : memref<9x1x128xf32, #tpu.memory_space<vmem>>, vector<1x1x128xf32>
    %463 = vector.shape_cast %462 : vector<1x1x128xf32> to vector<1x128xf32>
    %464 = vector.broadcast %463 : vector<1x128xf32> to vector<16x128xf32>
    %465 = arith.mulf %461, %464 : vector<16x128xf32>
    %c121_i32_357 = arith.constant 121 : i32
    %466 = tpu.dynamic_rotate %432 by %c121_i32_357 dim 1 : vector<16x128xf32>, i32 -> vector<16x128xf32>
    %c6_358 = arith.constant 6 : index
    %c0_359 = arith.constant 0 : index
    %c0_360 = arith.constant 0 : index
    %467 = vector.load %arg2[%c6_358, %c0_359, %c0_360] : memref<9x1x128xf32, #tpu.memory_space<vmem>>, vector<1x1x128xf32>
    %468 = vector.shape_cast %467 : vector<1x1x128xf32> to vector<1x128xf32>
    %469 = vector.broadcast %468 : vector<1x128xf32> to vector<16x128xf32>
    %470 = arith.mulf %466, %469 : vector<16x128xf32>
    %c120_i32_361 = arith.constant 120 : i32
    %471 = tpu.dynamic_rotate %432 by %c120_i32_361 dim 1 : vector<16x128xf32>, i32 -> vector<16x128xf32>
    %c7_362 = arith.constant 7 : index
    %c0_363 = arith.constant 0 : index
    %c0_364 = arith.constant 0 : index
    %472 = vector.load %arg2[%c7_362, %c0_363, %c0_364] : memref<9x1x128xf32, #tpu.memory_space<vmem>>, vector<1x1x128xf32>
    %473 = vector.shape_cast %472 : vector<1x1x128xf32> to vector<1x128xf32>
    %474 = vector.broadcast %473 : vector<1x128xf32> to vector<16x128xf32>
    %475 = arith.mulf %471, %474 : vector<16x128xf32>
    %c119_i32_365 = arith.constant 119 : i32
    %476 = tpu.dynamic_rotate %432 by %c119_i32_365 dim 1 : vector<16x128xf32>, i32 -> vector<16x128xf32>
    %c8_366 = arith.constant 8 : index
    %c0_367 = arith.constant 0 : index
    %c0_368 = arith.constant 0 : index
    %477 = vector.load %arg2[%c8_366, %c0_367, %c0_368] : memref<9x1x128xf32, #tpu.memory_space<vmem>>, vector<1x1x128xf32>
    %478 = vector.shape_cast %477 : vector<1x1x128xf32> to vector<1x128xf32>
    %479 = vector.broadcast %478 : vector<1x128xf32> to vector<16x128xf32>
    %480 = arith.mulf %476, %479 : vector<16x128xf32>
    %481 = tpu.concatenate %441, %446, %451, %456, %460, %465, %470, %475, %480 in 0 : vector<16x128xf32>, vector<16x128xf32>, vector<16x128xf32>, vector<16x128xf32>, vector<16x128xf32>, vector<16x128xf32>, vector<16x128xf32>, vector<16x128xf32>, vector<16x128xf32> -> vector<144x128xf32>
    %cst_369 = arith.constant dense<0.000000e+00> : vector<16x128xf32>
    %482 = tpu.matmul %434, %481, %cst_369 {dimension_numbers = #tpu.dot_dimension_numbers<[1], [0], [0], [1], [0, 0, 1, 1], [], []>} : vector<16x144xf32>, vector<144x128xf32>, vector<16x128xf32> -> vector<16x128xf32>
    %483 = vector.broadcast %436 : vector<16x1xf32> to vector<16x128xf32>
    %484 = arith.addf %482, %483 : vector<16x128xf32>
    %cst_370 = arith.constant 0.000000e+00 : f32
    %485 = vector.broadcast %cst_370 : f32 to vector<16x128xf32>
    %486 = arith.maximumf %484, %485 : vector<16x128xf32>
    %c9 = arith.constant 9 : index
    %c0_371 = arith.constant 0 : index
    %c0_372 = arith.constant 0 : index
    %487 = vector.load %arg3[%c9, %c0_371, %c0_372] : memref<12x16x144xf32, #tpu.memory_space<vmem>>, vector<1x16x144xf32>
    %488 = vector.shape_cast %487 : vector<1x16x144xf32> to vector<16x144xf32>
    %c9_373 = arith.constant 9 : index
    %c0_374 = arith.constant 0 : index
    %c0_375 = arith.constant 0 : index
    %489 = vector.load %arg4[%c9_373, %c0_374, %c0_375] : memref<12x16x1xf32, #tpu.memory_space<vmem>>, vector<1x16x1xf32>
    %490 = vector.shape_cast %489 : vector<1x16x1xf32> to vector<16x1xf32>
    %c9_i32_376 = arith.constant 9 : i32
    %491 = tpu.dynamic_rotate %486 by %c9_i32_376 dim 1 : vector<16x128xf32>, i32 -> vector<16x128xf32>
    %c0_377 = arith.constant 0 : index
    %c0_378 = arith.constant 0 : index
    %c0_379 = arith.constant 0 : index
    %492 = vector.load %arg2[%c0_377, %c0_378, %c0_379] : memref<9x1x128xf32, #tpu.memory_space<vmem>>, vector<1x1x128xf32>
    %493 = vector.shape_cast %492 : vector<1x1x128xf32> to vector<1x128xf32>
    %494 = vector.broadcast %493 : vector<1x128xf32> to vector<16x128xf32>
    %495 = arith.mulf %491, %494 : vector<16x128xf32>
    %c8_i32_380 = arith.constant 8 : i32
    %496 = tpu.dynamic_rotate %486 by %c8_i32_380 dim 1 : vector<16x128xf32>, i32 -> vector<16x128xf32>
    %c1_381 = arith.constant 1 : index
    %c0_382 = arith.constant 0 : index
    %c0_383 = arith.constant 0 : index
    %497 = vector.load %arg2[%c1_381, %c0_382, %c0_383] : memref<9x1x128xf32, #tpu.memory_space<vmem>>, vector<1x1x128xf32>
    %498 = vector.shape_cast %497 : vector<1x1x128xf32> to vector<1x128xf32>
    %499 = vector.broadcast %498 : vector<1x128xf32> to vector<16x128xf32>
    %500 = arith.mulf %496, %499 : vector<16x128xf32>
    %c7_i32_384 = arith.constant 7 : i32
    %501 = tpu.dynamic_rotate %486 by %c7_i32_384 dim 1 : vector<16x128xf32>, i32 -> vector<16x128xf32>
    %c2_385 = arith.constant 2 : index
    %c0_386 = arith.constant 0 : index
    %c0_387 = arith.constant 0 : index
    %502 = vector.load %arg2[%c2_385, %c0_386, %c0_387] : memref<9x1x128xf32, #tpu.memory_space<vmem>>, vector<1x1x128xf32>
    %503 = vector.shape_cast %502 : vector<1x1x128xf32> to vector<1x128xf32>
    %504 = vector.broadcast %503 : vector<1x128xf32> to vector<16x128xf32>
    %505 = arith.mulf %501, %504 : vector<16x128xf32>
    %c1_i32_388 = arith.constant 1 : i32
    %506 = tpu.dynamic_rotate %486 by %c1_i32_388 dim 1 : vector<16x128xf32>, i32 -> vector<16x128xf32>
    %c3_389 = arith.constant 3 : index
    %c0_390 = arith.constant 0 : index
    %c0_391 = arith.constant 0 : index
    %507 = vector.load %arg2[%c3_389, %c0_390, %c0_391] : memref<9x1x128xf32, #tpu.memory_space<vmem>>, vector<1x1x128xf32>
    %508 = vector.shape_cast %507 : vector<1x1x128xf32> to vector<1x128xf32>
    %509 = vector.broadcast %508 : vector<1x128xf32> to vector<16x128xf32>
    %510 = arith.mulf %506, %509 : vector<16x128xf32>
    %c4_392 = arith.constant 4 : index
    %c0_393 = arith.constant 0 : index
    %c0_394 = arith.constant 0 : index
    %511 = vector.load %arg2[%c4_392, %c0_393, %c0_394] : memref<9x1x128xf32, #tpu.memory_space<vmem>>, vector<1x1x128xf32>
    %512 = vector.shape_cast %511 : vector<1x1x128xf32> to vector<1x128xf32>
    %513 = vector.broadcast %512 : vector<1x128xf32> to vector<16x128xf32>
    %514 = arith.mulf %486, %513 : vector<16x128xf32>
    %c127_i32_395 = arith.constant 127 : i32
    %515 = tpu.dynamic_rotate %486 by %c127_i32_395 dim 1 : vector<16x128xf32>, i32 -> vector<16x128xf32>
    %c5_396 = arith.constant 5 : index
    %c0_397 = arith.constant 0 : index
    %c0_398 = arith.constant 0 : index
    %516 = vector.load %arg2[%c5_396, %c0_397, %c0_398] : memref<9x1x128xf32, #tpu.memory_space<vmem>>, vector<1x1x128xf32>
    %517 = vector.shape_cast %516 : vector<1x1x128xf32> to vector<1x128xf32>
    %518 = vector.broadcast %517 : vector<1x128xf32> to vector<16x128xf32>
    %519 = arith.mulf %515, %518 : vector<16x128xf32>
    %c121_i32_399 = arith.constant 121 : i32
    %520 = tpu.dynamic_rotate %486 by %c121_i32_399 dim 1 : vector<16x128xf32>, i32 -> vector<16x128xf32>
    %c6_400 = arith.constant 6 : index
    %c0_401 = arith.constant 0 : index
    %c0_402 = arith.constant 0 : index
    %521 = vector.load %arg2[%c6_400, %c0_401, %c0_402] : memref<9x1x128xf32, #tpu.memory_space<vmem>>, vector<1x1x128xf32>
    %522 = vector.shape_cast %521 : vector<1x1x128xf32> to vector<1x128xf32>
    %523 = vector.broadcast %522 : vector<1x128xf32> to vector<16x128xf32>
    %524 = arith.mulf %520, %523 : vector<16x128xf32>
    %c120_i32_403 = arith.constant 120 : i32
    %525 = tpu.dynamic_rotate %486 by %c120_i32_403 dim 1 : vector<16x128xf32>, i32 -> vector<16x128xf32>
    %c7_404 = arith.constant 7 : index
    %c0_405 = arith.constant 0 : index
    %c0_406 = arith.constant 0 : index
    %526 = vector.load %arg2[%c7_404, %c0_405, %c0_406] : memref<9x1x128xf32, #tpu.memory_space<vmem>>, vector<1x1x128xf32>
    %527 = vector.shape_cast %526 : vector<1x1x128xf32> to vector<1x128xf32>
    %528 = vector.broadcast %527 : vector<1x128xf32> to vector<16x128xf32>
    %529 = arith.mulf %525, %528 : vector<16x128xf32>
    %c119_i32_407 = arith.constant 119 : i32
    %530 = tpu.dynamic_rotate %486 by %c119_i32_407 dim 1 : vector<16x128xf32>, i32 -> vector<16x128xf32>
    %c8_408 = arith.constant 8 : index
    %c0_409 = arith.constant 0 : index
    %c0_410 = arith.constant 0 : index
    %531 = vector.load %arg2[%c8_408, %c0_409, %c0_410] : memref<9x1x128xf32, #tpu.memory_space<vmem>>, vector<1x1x128xf32>
    %532 = vector.shape_cast %531 : vector<1x1x128xf32> to vector<1x128xf32>
    %533 = vector.broadcast %532 : vector<1x128xf32> to vector<16x128xf32>
    %534 = arith.mulf %530, %533 : vector<16x128xf32>
    %535 = tpu.concatenate %495, %500, %505, %510, %514, %519, %524, %529, %534 in 0 : vector<16x128xf32>, vector<16x128xf32>, vector<16x128xf32>, vector<16x128xf32>, vector<16x128xf32>, vector<16x128xf32>, vector<16x128xf32>, vector<16x128xf32>, vector<16x128xf32> -> vector<144x128xf32>
    %cst_411 = arith.constant dense<0.000000e+00> : vector<16x128xf32>
    %536 = tpu.matmul %488, %535, %cst_411 {dimension_numbers = #tpu.dot_dimension_numbers<[1], [0], [0], [1], [0, 0, 1, 1], [], []>} : vector<16x144xf32>, vector<144x128xf32>, vector<16x128xf32> -> vector<16x128xf32>
    %537 = vector.broadcast %490 : vector<16x1xf32> to vector<16x128xf32>
    %538 = arith.addf %536, %537 : vector<16x128xf32>
    %cst_412 = arith.constant 0.000000e+00 : f32
    %539 = vector.broadcast %cst_412 : f32 to vector<16x128xf32>
    %540 = arith.maximumf %538, %539 : vector<16x128xf32>
    %c10 = arith.constant 10 : index
    %c0_413 = arith.constant 0 : index
    %c0_414 = arith.constant 0 : index
    %541 = vector.load %arg3[%c10, %c0_413, %c0_414] : memref<12x16x144xf32, #tpu.memory_space<vmem>>, vector<1x16x144xf32>
    %542 = vector.shape_cast %541 : vector<1x16x144xf32> to vector<16x144xf32>
    %c10_415 = arith.constant 10 : index
    %c0_416 = arith.constant 0 : index
    %c0_417 = arith.constant 0 : index
    %543 = vector.load %arg4[%c10_415, %c0_416, %c0_417] : memref<12x16x1xf32, #tpu.memory_space<vmem>>, vector<1x16x1xf32>
    %544 = vector.shape_cast %543 : vector<1x16x1xf32> to vector<16x1xf32>
    %c9_i32_418 = arith.constant 9 : i32
    %545 = tpu.dynamic_rotate %540 by %c9_i32_418 dim 1 : vector<16x128xf32>, i32 -> vector<16x128xf32>
    %c0_419 = arith.constant 0 : index
    %c0_420 = arith.constant 0 : index
    %c0_421 = arith.constant 0 : index
    %546 = vector.load %arg2[%c0_419, %c0_420, %c0_421] : memref<9x1x128xf32, #tpu.memory_space<vmem>>, vector<1x1x128xf32>
    %547 = vector.shape_cast %546 : vector<1x1x128xf32> to vector<1x128xf32>
    %548 = vector.broadcast %547 : vector<1x128xf32> to vector<16x128xf32>
    %549 = arith.mulf %545, %548 : vector<16x128xf32>
    %c8_i32_422 = arith.constant 8 : i32
    %550 = tpu.dynamic_rotate %540 by %c8_i32_422 dim 1 : vector<16x128xf32>, i32 -> vector<16x128xf32>
    %c1_423 = arith.constant 1 : index
    %c0_424 = arith.constant 0 : index
    %c0_425 = arith.constant 0 : index
    %551 = vector.load %arg2[%c1_423, %c0_424, %c0_425] : memref<9x1x128xf32, #tpu.memory_space<vmem>>, vector<1x1x128xf32>
    %552 = vector.shape_cast %551 : vector<1x1x128xf32> to vector<1x128xf32>
    %553 = vector.broadcast %552 : vector<1x128xf32> to vector<16x128xf32>
    %554 = arith.mulf %550, %553 : vector<16x128xf32>
    %c7_i32_426 = arith.constant 7 : i32
    %555 = tpu.dynamic_rotate %540 by %c7_i32_426 dim 1 : vector<16x128xf32>, i32 -> vector<16x128xf32>
    %c2_427 = arith.constant 2 : index
    %c0_428 = arith.constant 0 : index
    %c0_429 = arith.constant 0 : index
    %556 = vector.load %arg2[%c2_427, %c0_428, %c0_429] : memref<9x1x128xf32, #tpu.memory_space<vmem>>, vector<1x1x128xf32>
    %557 = vector.shape_cast %556 : vector<1x1x128xf32> to vector<1x128xf32>
    %558 = vector.broadcast %557 : vector<1x128xf32> to vector<16x128xf32>
    %559 = arith.mulf %555, %558 : vector<16x128xf32>
    %c1_i32_430 = arith.constant 1 : i32
    %560 = tpu.dynamic_rotate %540 by %c1_i32_430 dim 1 : vector<16x128xf32>, i32 -> vector<16x128xf32>
    %c3_431 = arith.constant 3 : index
    %c0_432 = arith.constant 0 : index
    %c0_433 = arith.constant 0 : index
    %561 = vector.load %arg2[%c3_431, %c0_432, %c0_433] : memref<9x1x128xf32, #tpu.memory_space<vmem>>, vector<1x1x128xf32>
    %562 = vector.shape_cast %561 : vector<1x1x128xf32> to vector<1x128xf32>
    %563 = vector.broadcast %562 : vector<1x128xf32> to vector<16x128xf32>
    %564 = arith.mulf %560, %563 : vector<16x128xf32>
    %c4_434 = arith.constant 4 : index
    %c0_435 = arith.constant 0 : index
    %c0_436 = arith.constant 0 : index
    %565 = vector.load %arg2[%c4_434, %c0_435, %c0_436] : memref<9x1x128xf32, #tpu.memory_space<vmem>>, vector<1x1x128xf32>
    %566 = vector.shape_cast %565 : vector<1x1x128xf32> to vector<1x128xf32>
    %567 = vector.broadcast %566 : vector<1x128xf32> to vector<16x128xf32>
    %568 = arith.mulf %540, %567 : vector<16x128xf32>
    %c127_i32_437 = arith.constant 127 : i32
    %569 = tpu.dynamic_rotate %540 by %c127_i32_437 dim 1 : vector<16x128xf32>, i32 -> vector<16x128xf32>
    %c5_438 = arith.constant 5 : index
    %c0_439 = arith.constant 0 : index
    %c0_440 = arith.constant 0 : index
    %570 = vector.load %arg2[%c5_438, %c0_439, %c0_440] : memref<9x1x128xf32, #tpu.memory_space<vmem>>, vector<1x1x128xf32>
    %571 = vector.shape_cast %570 : vector<1x1x128xf32> to vector<1x128xf32>
    %572 = vector.broadcast %571 : vector<1x128xf32> to vector<16x128xf32>
    %573 = arith.mulf %569, %572 : vector<16x128xf32>
    %c121_i32_441 = arith.constant 121 : i32
    %574 = tpu.dynamic_rotate %540 by %c121_i32_441 dim 1 : vector<16x128xf32>, i32 -> vector<16x128xf32>
    %c6_442 = arith.constant 6 : index
    %c0_443 = arith.constant 0 : index
    %c0_444 = arith.constant 0 : index
    %575 = vector.load %arg2[%c6_442, %c0_443, %c0_444] : memref<9x1x128xf32, #tpu.memory_space<vmem>>, vector<1x1x128xf32>
    %576 = vector.shape_cast %575 : vector<1x1x128xf32> to vector<1x128xf32>
    %577 = vector.broadcast %576 : vector<1x128xf32> to vector<16x128xf32>
    %578 = arith.mulf %574, %577 : vector<16x128xf32>
    %c120_i32_445 = arith.constant 120 : i32
    %579 = tpu.dynamic_rotate %540 by %c120_i32_445 dim 1 : vector<16x128xf32>, i32 -> vector<16x128xf32>
    %c7_446 = arith.constant 7 : index
    %c0_447 = arith.constant 0 : index
    %c0_448 = arith.constant 0 : index
    %580 = vector.load %arg2[%c7_446, %c0_447, %c0_448] : memref<9x1x128xf32, #tpu.memory_space<vmem>>, vector<1x1x128xf32>
    %581 = vector.shape_cast %580 : vector<1x1x128xf32> to vector<1x128xf32>
    %582 = vector.broadcast %581 : vector<1x128xf32> to vector<16x128xf32>
    %583 = arith.mulf %579, %582 : vector<16x128xf32>
    %c119_i32_449 = arith.constant 119 : i32
    %584 = tpu.dynamic_rotate %540 by %c119_i32_449 dim 1 : vector<16x128xf32>, i32 -> vector<16x128xf32>
    %c8_450 = arith.constant 8 : index
    %c0_451 = arith.constant 0 : index
    %c0_452 = arith.constant 0 : index
    %585 = vector.load %arg2[%c8_450, %c0_451, %c0_452] : memref<9x1x128xf32, #tpu.memory_space<vmem>>, vector<1x1x128xf32>
    %586 = vector.shape_cast %585 : vector<1x1x128xf32> to vector<1x128xf32>
    %587 = vector.broadcast %586 : vector<1x128xf32> to vector<16x128xf32>
    %588 = arith.mulf %584, %587 : vector<16x128xf32>
    %589 = tpu.concatenate %549, %554, %559, %564, %568, %573, %578, %583, %588 in 0 : vector<16x128xf32>, vector<16x128xf32>, vector<16x128xf32>, vector<16x128xf32>, vector<16x128xf32>, vector<16x128xf32>, vector<16x128xf32>, vector<16x128xf32>, vector<16x128xf32> -> vector<144x128xf32>
    %cst_453 = arith.constant dense<0.000000e+00> : vector<16x128xf32>
    %590 = tpu.matmul %542, %589, %cst_453 {dimension_numbers = #tpu.dot_dimension_numbers<[1], [0], [0], [1], [0, 0, 1, 1], [], []>} : vector<16x144xf32>, vector<144x128xf32>, vector<16x128xf32> -> vector<16x128xf32>
    %591 = vector.broadcast %544 : vector<16x1xf32> to vector<16x128xf32>
    %592 = arith.addf %590, %591 : vector<16x128xf32>
    %cst_454 = arith.constant 0.000000e+00 : f32
    %593 = vector.broadcast %cst_454 : f32 to vector<16x128xf32>
    %594 = arith.maximumf %592, %593 : vector<16x128xf32>
    %c11 = arith.constant 11 : index
    %c0_455 = arith.constant 0 : index
    %c0_456 = arith.constant 0 : index
    %595 = vector.load %arg3[%c11, %c0_455, %c0_456] : memref<12x16x144xf32, #tpu.memory_space<vmem>>, vector<1x16x144xf32>
    %596 = vector.shape_cast %595 : vector<1x16x144xf32> to vector<16x144xf32>
    %c11_457 = arith.constant 11 : index
    %c0_458 = arith.constant 0 : index
    %c0_459 = arith.constant 0 : index
    %597 = vector.load %arg4[%c11_457, %c0_458, %c0_459] : memref<12x16x1xf32, #tpu.memory_space<vmem>>, vector<1x16x1xf32>
    %598 = vector.shape_cast %597 : vector<1x16x1xf32> to vector<16x1xf32>
    %c9_i32_460 = arith.constant 9 : i32
    %599 = tpu.dynamic_rotate %594 by %c9_i32_460 dim 1 : vector<16x128xf32>, i32 -> vector<16x128xf32>
    %c0_461 = arith.constant 0 : index
    %c0_462 = arith.constant 0 : index
    %c0_463 = arith.constant 0 : index
    %600 = vector.load %arg2[%c0_461, %c0_462, %c0_463] : memref<9x1x128xf32, #tpu.memory_space<vmem>>, vector<1x1x128xf32>
    %601 = vector.shape_cast %600 : vector<1x1x128xf32> to vector<1x128xf32>
    %602 = vector.broadcast %601 : vector<1x128xf32> to vector<16x128xf32>
    %603 = arith.mulf %599, %602 : vector<16x128xf32>
    %c8_i32_464 = arith.constant 8 : i32
    %604 = tpu.dynamic_rotate %594 by %c8_i32_464 dim 1 : vector<16x128xf32>, i32 -> vector<16x128xf32>
    %c1_465 = arith.constant 1 : index
    %c0_466 = arith.constant 0 : index
    %c0_467 = arith.constant 0 : index
    %605 = vector.load %arg2[%c1_465, %c0_466, %c0_467] : memref<9x1x128xf32, #tpu.memory_space<vmem>>, vector<1x1x128xf32>
    %606 = vector.shape_cast %605 : vector<1x1x128xf32> to vector<1x128xf32>
    %607 = vector.broadcast %606 : vector<1x128xf32> to vector<16x128xf32>
    %608 = arith.mulf %604, %607 : vector<16x128xf32>
    %c7_i32_468 = arith.constant 7 : i32
    %609 = tpu.dynamic_rotate %594 by %c7_i32_468 dim 1 : vector<16x128xf32>, i32 -> vector<16x128xf32>
    %c2_469 = arith.constant 2 : index
    %c0_470 = arith.constant 0 : index
    %c0_471 = arith.constant 0 : index
    %610 = vector.load %arg2[%c2_469, %c0_470, %c0_471] : memref<9x1x128xf32, #tpu.memory_space<vmem>>, vector<1x1x128xf32>
    %611 = vector.shape_cast %610 : vector<1x1x128xf32> to vector<1x128xf32>
    %612 = vector.broadcast %611 : vector<1x128xf32> to vector<16x128xf32>
    %613 = arith.mulf %609, %612 : vector<16x128xf32>
    %c1_i32_472 = arith.constant 1 : i32
    %614 = tpu.dynamic_rotate %594 by %c1_i32_472 dim 1 : vector<16x128xf32>, i32 -> vector<16x128xf32>
    %c3_473 = arith.constant 3 : index
    %c0_474 = arith.constant 0 : index
    %c0_475 = arith.constant 0 : index
    %615 = vector.load %arg2[%c3_473, %c0_474, %c0_475] : memref<9x1x128xf32, #tpu.memory_space<vmem>>, vector<1x1x128xf32>
    %616 = vector.shape_cast %615 : vector<1x1x128xf32> to vector<1x128xf32>
    %617 = vector.broadcast %616 : vector<1x128xf32> to vector<16x128xf32>
    %618 = arith.mulf %614, %617 : vector<16x128xf32>
    %c4_476 = arith.constant 4 : index
    %c0_477 = arith.constant 0 : index
    %c0_478 = arith.constant 0 : index
    %619 = vector.load %arg2[%c4_476, %c0_477, %c0_478] : memref<9x1x128xf32, #tpu.memory_space<vmem>>, vector<1x1x128xf32>
    %620 = vector.shape_cast %619 : vector<1x1x128xf32> to vector<1x128xf32>
    %621 = vector.broadcast %620 : vector<1x128xf32> to vector<16x128xf32>
    %622 = arith.mulf %594, %621 : vector<16x128xf32>
    %c127_i32_479 = arith.constant 127 : i32
    %623 = tpu.dynamic_rotate %594 by %c127_i32_479 dim 1 : vector<16x128xf32>, i32 -> vector<16x128xf32>
    %c5_480 = arith.constant 5 : index
    %c0_481 = arith.constant 0 : index
    %c0_482 = arith.constant 0 : index
    %624 = vector.load %arg2[%c5_480, %c0_481, %c0_482] : memref<9x1x128xf32, #tpu.memory_space<vmem>>, vector<1x1x128xf32>
    %625 = vector.shape_cast %624 : vector<1x1x128xf32> to vector<1x128xf32>
    %626 = vector.broadcast %625 : vector<1x128xf32> to vector<16x128xf32>
    %627 = arith.mulf %623, %626 : vector<16x128xf32>
    %c121_i32_483 = arith.constant 121 : i32
    %628 = tpu.dynamic_rotate %594 by %c121_i32_483 dim 1 : vector<16x128xf32>, i32 -> vector<16x128xf32>
    %c6_484 = arith.constant 6 : index
    %c0_485 = arith.constant 0 : index
    %c0_486 = arith.constant 0 : index
    %629 = vector.load %arg2[%c6_484, %c0_485, %c0_486] : memref<9x1x128xf32, #tpu.memory_space<vmem>>, vector<1x1x128xf32>
    %630 = vector.shape_cast %629 : vector<1x1x128xf32> to vector<1x128xf32>
    %631 = vector.broadcast %630 : vector<1x128xf32> to vector<16x128xf32>
    %632 = arith.mulf %628, %631 : vector<16x128xf32>
    %c120_i32_487 = arith.constant 120 : i32
    %633 = tpu.dynamic_rotate %594 by %c120_i32_487 dim 1 : vector<16x128xf32>, i32 -> vector<16x128xf32>
    %c7_488 = arith.constant 7 : index
    %c0_489 = arith.constant 0 : index
    %c0_490 = arith.constant 0 : index
    %634 = vector.load %arg2[%c7_488, %c0_489, %c0_490] : memref<9x1x128xf32, #tpu.memory_space<vmem>>, vector<1x1x128xf32>
    %635 = vector.shape_cast %634 : vector<1x1x128xf32> to vector<1x128xf32>
    %636 = vector.broadcast %635 : vector<1x128xf32> to vector<16x128xf32>
    %637 = arith.mulf %633, %636 : vector<16x128xf32>
    %c119_i32_491 = arith.constant 119 : i32
    %638 = tpu.dynamic_rotate %594 by %c119_i32_491 dim 1 : vector<16x128xf32>, i32 -> vector<16x128xf32>
    %c8_492 = arith.constant 8 : index
    %c0_493 = arith.constant 0 : index
    %c0_494 = arith.constant 0 : index
    %639 = vector.load %arg2[%c8_492, %c0_493, %c0_494] : memref<9x1x128xf32, #tpu.memory_space<vmem>>, vector<1x1x128xf32>
    %640 = vector.shape_cast %639 : vector<1x1x128xf32> to vector<1x128xf32>
    %641 = vector.broadcast %640 : vector<1x128xf32> to vector<16x128xf32>
    %642 = arith.mulf %638, %641 : vector<16x128xf32>
    %643 = tpu.concatenate %603, %608, %613, %618, %622, %627, %632, %637, %642 in 0 : vector<16x128xf32>, vector<16x128xf32>, vector<16x128xf32>, vector<16x128xf32>, vector<16x128xf32>, vector<16x128xf32>, vector<16x128xf32>, vector<16x128xf32>, vector<16x128xf32> -> vector<144x128xf32>
    %cst_495 = arith.constant dense<0.000000e+00> : vector<16x128xf32>
    %644 = tpu.matmul %596, %643, %cst_495 {dimension_numbers = #tpu.dot_dimension_numbers<[1], [0], [0], [1], [0, 0, 1, 1], [], []>} : vector<16x144xf32>, vector<144x128xf32>, vector<16x128xf32> -> vector<16x128xf32>
    %645 = vector.broadcast %598 : vector<16x1xf32> to vector<16x128xf32>
    %646 = arith.addf %644, %645 : vector<16x128xf32>
    %cst_496 = arith.constant 0.000000e+00 : f32
    %647 = vector.broadcast %cst_496 : f32 to vector<16x128xf32>
    %648 = arith.maximumf %646, %647 : vector<16x128xf32>
    %c0_497 = arith.constant 0 : index
    %c0_498 = arith.constant 0 : index
    %c0_499 = arith.constant 0 : index
    %649 = vector.load %arg5[%c0_497, %c0_498, %c0_499] : memref<16x64x128xf32, #tpu.memory_space<vmem>>, vector<1x64x128xf32>
    %650 = vector.shape_cast %649 : vector<1x64x128xf32> to vector<64x128xf32>
    %651 = vector.extract_strided_slice %648 {offsets = [0, 0], sizes = [1, 128], strides = [1, 1]} : vector<16x128xf32> to vector<1x128xf32>
    %652 = vector.broadcast %651 : vector<1x128xf32> to vector<64x128xf32>
    %653 = arith.mulf %650, %652 : vector<64x128xf32>
    %c1_500 = arith.constant 1 : index
    %c0_501 = arith.constant 0 : index
    %c0_502 = arith.constant 0 : index
    %654 = vector.load %arg5[%c1_500, %c0_501, %c0_502] : memref<16x64x128xf32, #tpu.memory_space<vmem>>, vector<1x64x128xf32>
    %655 = vector.shape_cast %654 : vector<1x64x128xf32> to vector<64x128xf32>
    %656 = vector.extract_strided_slice %648 {offsets = [1, 0], sizes = [1, 128], strides = [1, 1]} : vector<16x128xf32> to vector<1x128xf32>
    %657 = vector.broadcast %656 : vector<1x128xf32> to vector<64x128xf32>
    %658 = arith.mulf %655, %657 : vector<64x128xf32>
    %659 = arith.addf %653, %658 : vector<64x128xf32>
    %c2_503 = arith.constant 2 : index
    %c0_504 = arith.constant 0 : index
    %c0_505 = arith.constant 0 : index
    %660 = vector.load %arg5[%c2_503, %c0_504, %c0_505] : memref<16x64x128xf32, #tpu.memory_space<vmem>>, vector<1x64x128xf32>
    %661 = vector.shape_cast %660 : vector<1x64x128xf32> to vector<64x128xf32>
    %662 = vector.extract_strided_slice %648 {offsets = [2, 0], sizes = [1, 128], strides = [1, 1]} : vector<16x128xf32> to vector<1x128xf32>
    %663 = vector.broadcast %662 : vector<1x128xf32> to vector<64x128xf32>
    %664 = arith.mulf %661, %663 : vector<64x128xf32>
    %665 = arith.addf %659, %664 : vector<64x128xf32>
    %c3_506 = arith.constant 3 : index
    %c0_507 = arith.constant 0 : index
    %c0_508 = arith.constant 0 : index
    %666 = vector.load %arg5[%c3_506, %c0_507, %c0_508] : memref<16x64x128xf32, #tpu.memory_space<vmem>>, vector<1x64x128xf32>
    %667 = vector.shape_cast %666 : vector<1x64x128xf32> to vector<64x128xf32>
    %668 = vector.extract_strided_slice %648 {offsets = [3, 0], sizes = [1, 128], strides = [1, 1]} : vector<16x128xf32> to vector<1x128xf32>
    %669 = vector.broadcast %668 : vector<1x128xf32> to vector<64x128xf32>
    %670 = arith.mulf %667, %669 : vector<64x128xf32>
    %671 = arith.addf %665, %670 : vector<64x128xf32>
    %c4_509 = arith.constant 4 : index
    %c0_510 = arith.constant 0 : index
    %c0_511 = arith.constant 0 : index
    %672 = vector.load %arg5[%c4_509, %c0_510, %c0_511] : memref<16x64x128xf32, #tpu.memory_space<vmem>>, vector<1x64x128xf32>
    %673 = vector.shape_cast %672 : vector<1x64x128xf32> to vector<64x128xf32>
    %674 = vector.extract_strided_slice %648 {offsets = [4, 0], sizes = [1, 128], strides = [1, 1]} : vector<16x128xf32> to vector<1x128xf32>
    %675 = vector.broadcast %674 : vector<1x128xf32> to vector<64x128xf32>
    %676 = arith.mulf %673, %675 : vector<64x128xf32>
    %677 = arith.addf %671, %676 : vector<64x128xf32>
    %c5_512 = arith.constant 5 : index
    %c0_513 = arith.constant 0 : index
    %c0_514 = arith.constant 0 : index
    %678 = vector.load %arg5[%c5_512, %c0_513, %c0_514] : memref<16x64x128xf32, #tpu.memory_space<vmem>>, vector<1x64x128xf32>
    %679 = vector.shape_cast %678 : vector<1x64x128xf32> to vector<64x128xf32>
    %680 = vector.extract_strided_slice %648 {offsets = [5, 0], sizes = [1, 128], strides = [1, 1]} : vector<16x128xf32> to vector<1x128xf32>
    %681 = vector.broadcast %680 : vector<1x128xf32> to vector<64x128xf32>
    %682 = arith.mulf %679, %681 : vector<64x128xf32>
    %683 = arith.addf %677, %682 : vector<64x128xf32>
    %c6_515 = arith.constant 6 : index
    %c0_516 = arith.constant 0 : index
    %c0_517 = arith.constant 0 : index
    %684 = vector.load %arg5[%c6_515, %c0_516, %c0_517] : memref<16x64x128xf32, #tpu.memory_space<vmem>>, vector<1x64x128xf32>
    %685 = vector.shape_cast %684 : vector<1x64x128xf32> to vector<64x128xf32>
    %686 = vector.extract_strided_slice %648 {offsets = [6, 0], sizes = [1, 128], strides = [1, 1]} : vector<16x128xf32> to vector<1x128xf32>
    %687 = vector.broadcast %686 : vector<1x128xf32> to vector<64x128xf32>
    %688 = arith.mulf %685, %687 : vector<64x128xf32>
    %689 = arith.addf %683, %688 : vector<64x128xf32>
    %c7_518 = arith.constant 7 : index
    %c0_519 = arith.constant 0 : index
    %c0_520 = arith.constant 0 : index
    %690 = vector.load %arg5[%c7_518, %c0_519, %c0_520] : memref<16x64x128xf32, #tpu.memory_space<vmem>>, vector<1x64x128xf32>
    %691 = vector.shape_cast %690 : vector<1x64x128xf32> to vector<64x128xf32>
    %692 = vector.extract_strided_slice %648 {offsets = [7, 0], sizes = [1, 128], strides = [1, 1]} : vector<16x128xf32> to vector<1x128xf32>
    %693 = vector.broadcast %692 : vector<1x128xf32> to vector<64x128xf32>
    %694 = arith.mulf %691, %693 : vector<64x128xf32>
    %695 = arith.addf %689, %694 : vector<64x128xf32>
    %c8_521 = arith.constant 8 : index
    %c0_522 = arith.constant 0 : index
    %c0_523 = arith.constant 0 : index
    %696 = vector.load %arg5[%c8_521, %c0_522, %c0_523] : memref<16x64x128xf32, #tpu.memory_space<vmem>>, vector<1x64x128xf32>
    %697 = vector.shape_cast %696 : vector<1x64x128xf32> to vector<64x128xf32>
    %698 = vector.extract_strided_slice %648 {offsets = [8, 0], sizes = [1, 128], strides = [1, 1]} : vector<16x128xf32> to vector<1x128xf32>
    %699 = vector.broadcast %698 : vector<1x128xf32> to vector<64x128xf32>
    %700 = arith.mulf %697, %699 : vector<64x128xf32>
    %701 = arith.addf %695, %700 : vector<64x128xf32>
    %c9_524 = arith.constant 9 : index
    %c0_525 = arith.constant 0 : index
    %c0_526 = arith.constant 0 : index
    %702 = vector.load %arg5[%c9_524, %c0_525, %c0_526] : memref<16x64x128xf32, #tpu.memory_space<vmem>>, vector<1x64x128xf32>
    %703 = vector.shape_cast %702 : vector<1x64x128xf32> to vector<64x128xf32>
    %704 = vector.extract_strided_slice %648 {offsets = [9, 0], sizes = [1, 128], strides = [1, 1]} : vector<16x128xf32> to vector<1x128xf32>
    %705 = vector.broadcast %704 : vector<1x128xf32> to vector<64x128xf32>
    %706 = arith.mulf %703, %705 : vector<64x128xf32>
    %707 = arith.addf %701, %706 : vector<64x128xf32>
    %c10_527 = arith.constant 10 : index
    %c0_528 = arith.constant 0 : index
    %c0_529 = arith.constant 0 : index
    %708 = vector.load %arg5[%c10_527, %c0_528, %c0_529] : memref<16x64x128xf32, #tpu.memory_space<vmem>>, vector<1x64x128xf32>
    %709 = vector.shape_cast %708 : vector<1x64x128xf32> to vector<64x128xf32>
    %710 = vector.extract_strided_slice %648 {offsets = [10, 0], sizes = [1, 128], strides = [1, 1]} : vector<16x128xf32> to vector<1x128xf32>
    %711 = vector.broadcast %710 : vector<1x128xf32> to vector<64x128xf32>
    %712 = arith.mulf %709, %711 : vector<64x128xf32>
    %713 = arith.addf %707, %712 : vector<64x128xf32>
    %c11_530 = arith.constant 11 : index
    %c0_531 = arith.constant 0 : index
    %c0_532 = arith.constant 0 : index
    %714 = vector.load %arg5[%c11_530, %c0_531, %c0_532] : memref<16x64x128xf32, #tpu.memory_space<vmem>>, vector<1x64x128xf32>
    %715 = vector.shape_cast %714 : vector<1x64x128xf32> to vector<64x128xf32>
    %716 = vector.extract_strided_slice %648 {offsets = [11, 0], sizes = [1, 128], strides = [1, 1]} : vector<16x128xf32> to vector<1x128xf32>
    %717 = vector.broadcast %716 : vector<1x128xf32> to vector<64x128xf32>
    %718 = arith.mulf %715, %717 : vector<64x128xf32>
    %719 = arith.addf %713, %718 : vector<64x128xf32>
    %c12 = arith.constant 12 : index
    %c0_533 = arith.constant 0 : index
    %c0_534 = arith.constant 0 : index
    %720 = vector.load %arg5[%c12, %c0_533, %c0_534] : memref<16x64x128xf32, #tpu.memory_space<vmem>>, vector<1x64x128xf32>
    %721 = vector.shape_cast %720 : vector<1x64x128xf32> to vector<64x128xf32>
    %722 = vector.extract_strided_slice %648 {offsets = [12, 0], sizes = [1, 128], strides = [1, 1]} : vector<16x128xf32> to vector<1x128xf32>
    %723 = vector.broadcast %722 : vector<1x128xf32> to vector<64x128xf32>
    %724 = arith.mulf %721, %723 : vector<64x128xf32>
    %725 = arith.addf %719, %724 : vector<64x128xf32>
    %c13 = arith.constant 13 : index
    %c0_535 = arith.constant 0 : index
    %c0_536 = arith.constant 0 : index
    %726 = vector.load %arg5[%c13, %c0_535, %c0_536] : memref<16x64x128xf32, #tpu.memory_space<vmem>>, vector<1x64x128xf32>
    %727 = vector.shape_cast %726 : vector<1x64x128xf32> to vector<64x128xf32>
    %728 = vector.extract_strided_slice %648 {offsets = [13, 0], sizes = [1, 128], strides = [1, 1]} : vector<16x128xf32> to vector<1x128xf32>
    %729 = vector.broadcast %728 : vector<1x128xf32> to vector<64x128xf32>
    %730 = arith.mulf %727, %729 : vector<64x128xf32>
    %731 = arith.addf %725, %730 : vector<64x128xf32>
    %c14 = arith.constant 14 : index
    %c0_537 = arith.constant 0 : index
    %c0_538 = arith.constant 0 : index
    %732 = vector.load %arg5[%c14, %c0_537, %c0_538] : memref<16x64x128xf32, #tpu.memory_space<vmem>>, vector<1x64x128xf32>
    %733 = vector.shape_cast %732 : vector<1x64x128xf32> to vector<64x128xf32>
    %734 = vector.extract_strided_slice %648 {offsets = [14, 0], sizes = [1, 128], strides = [1, 1]} : vector<16x128xf32> to vector<1x128xf32>
    %735 = vector.broadcast %734 : vector<1x128xf32> to vector<64x128xf32>
    %736 = arith.mulf %733, %735 : vector<64x128xf32>
    %737 = arith.addf %731, %736 : vector<64x128xf32>
    %c15 = arith.constant 15 : index
    %c0_539 = arith.constant 0 : index
    %c0_540 = arith.constant 0 : index
    %738 = vector.load %arg5[%c15, %c0_539, %c0_540] : memref<16x64x128xf32, #tpu.memory_space<vmem>>, vector<1x64x128xf32>
    %739 = vector.shape_cast %738 : vector<1x64x128xf32> to vector<64x128xf32>
    %740 = vector.extract_strided_slice %648 {offsets = [15, 0], sizes = [1, 128], strides = [1, 1]} : vector<16x128xf32> to vector<1x128xf32>
    %741 = vector.broadcast %740 : vector<1x128xf32> to vector<64x128xf32>
    %742 = arith.mulf %739, %741 : vector<64x128xf32>
    %743 = arith.addf %737, %742 : vector<64x128xf32>
    %c0_541 = arith.constant 0 : index
    %c0_542 = arith.constant 0 : index
    %744 = vector.load %arg11[%c0_541, %c0_542] : memref<128x2xf32, #tpu.memory_space<vmem>>, vector<128x2xf32>
    %cst_543 = arith.constant dense<0.000000e+00> : vector<64x2xf32>
    %745 = tpu.matmul %743, %744, %cst_543 {dimension_numbers = #tpu.dot_dimension_numbers<[1], [0], [0], [1], [0, 0, 1, 1], [], []>} : vector<64x128xf32>, vector<128x2xf32>, vector<64x2xf32> -> vector<64x2xf32>
    %c0_544 = arith.constant 0 : index
    %c0_545 = arith.constant 0 : index
    %746 = vector.load %arg6[%c0_544, %c0_545] : memref<64x1xf32, #tpu.memory_space<vmem>>, vector<64x1xf32>
    %747 = vector.broadcast %746 : vector<64x1xf32> to vector<64x2xf32>
    %748 = arith.addf %745, %747 : vector<64x2xf32>
    %cst_546 = arith.constant 0.000000e+00 : f32
    %749 = vector.broadcast %cst_546 : f32 to vector<64x2xf32>
    %750 = arith.maximumf %748, %749 : vector<64x2xf32>
    %c0_547 = arith.constant 0 : index
    %c0_548 = arith.constant 0 : index
    %c0_549 = arith.constant 0 : index
    %751 = vector.load %arg7[%c0_547, %c0_548, %c0_549] : memref<1x64x64xf32, #tpu.memory_space<vmem>>, vector<1x64x64xf32>
    %752 = vector.shape_cast %751 : vector<1x64x64xf32> to vector<64x64xf32>
    %cst_550 = arith.constant dense<0.000000e+00> : vector<64x2xf32>
    %753 = tpu.matmul %752, %750, %cst_550 {dimension_numbers = #tpu.dot_dimension_numbers<[1], [0], [0], [1], [0, 0, 1, 1], [], []>} : vector<64x64xf32>, vector<64x2xf32>, vector<64x2xf32> -> vector<64x2xf32>
    %c0_551 = arith.constant 0 : index
    %c0_552 = arith.constant 0 : index
    %c0_553 = arith.constant 0 : index
    %754 = vector.load %arg8[%c0_551, %c0_552, %c0_553] : memref<1x64x1xf32, #tpu.memory_space<vmem>>, vector<1x64x1xf32>
    %755 = vector.shape_cast %754 : vector<1x64x1xf32> to vector<64x1xf32>
    %756 = vector.broadcast %755 : vector<64x1xf32> to vector<64x2xf32>
    %757 = arith.addf %753, %756 : vector<64x2xf32>
    %cst_554 = arith.constant 0.000000e+00 : f32
    %758 = vector.broadcast %cst_554 : f32 to vector<64x2xf32>
    %759 = arith.maximumf %757, %758 : vector<64x2xf32>
    %c0_555 = arith.constant 0 : index
    %c0_556 = arith.constant 0 : index
    %760 = vector.load %arg9[%c0_555, %c0_556] : memref<64x1xf32, #tpu.memory_space<vmem>>, vector<64x1xf32>
    %761 = vector.broadcast %760 : vector<64x1xf32> to vector<64x2xf32>
    %762 = arith.mulf %761, %759 : vector<64x2xf32>
    %cst_557 = arith.constant dense<0.000000e+00> : vector<2xf32>
    %763 = vector.multi_reduction <add>, %762, %cst_557 [0] : vector<64x2xf32> to vector<2xf32>
    %764 = vector.shape_cast %763 : vector<2xf32> to vector<1x2xf32>
    %c0_558 = arith.constant 0 : index
    %c0_559 = arith.constant 0 : index
    %765 = vector.load %arg10[%c0_558, %c0_559] : memref<1x1xf32, #tpu.memory_space<vmem>>, vector<1x1xf32>
    %766 = vector.broadcast %765 : vector<1x1xf32> to vector<1x2xf32>
    %767 = arith.addf %764, %766 : vector<1x2xf32>
    %c0_560 = arith.constant 0 : index
    %c0_561 = arith.constant 0 : index
    %768 = vector.load %arg12[%c0_560, %c0_561] : memref<1x2xf32, #tpu.memory_space<vmem>>, vector<1x2xf32>
    tpu.vector_store %arg12[%c0_560, %c0_561], %767 {strides = array<i32>} : memref<1x2xf32, #tpu.memory_space<vmem>>, vector<1x2xf32>,
    return
  }
  func.func @transform_0(%arg0: i32) -> (i32, i32) {
    %c0_i32 = arith.constant 0 : i32
    %c0_i32_0 = arith.constant 0 : i32
    %c0_i32_1 = arith.constant 0 : i32
    return %c0_i32, %c0_i32_0 : i32, i32
  }
  func.func @transform_1(%arg0: i32) -> (i32, i32, i32) {
    %c0_i32 = arith.constant 0 : i32
    %c0_i32_0 = arith.constant 0 : i32
    %c0_i32_1 = arith.constant 0 : i32
    %c0_i32_2 = arith.constant 0 : i32
    return %c0_i32, %c0_i32_0, %c0_i32_1 : i32, i32, i32
  }
  func.func @transform_2(%arg0: i32) -> (i32, i32, i32) {
    %c0_i32 = arith.constant 0 : i32
    %c0_i32_0 = arith.constant 0 : i32
    %c0_i32_1 = arith.constant 0 : i32
    %c0_i32_2 = arith.constant 0 : i32
    return %c0_i32, %c0_i32_0, %c0_i32_1 : i32, i32, i32
  }
  func.func @transform_3(%arg0: i32) -> (i32, i32, i32) {
    %c0_i32 = arith.constant 0 : i32
    %c0_i32_0 = arith.constant 0 : i32
    %c0_i32_1 = arith.constant 0 : i32
    %c0_i32_2 = arith.constant 0 : i32
    return %c0_i32, %c0_i32_0, %c0_i32_1 : i32, i32, i32
  }
  func.func @transform_4(%arg0: i32) -> (i32, i32, i32) {
    %c0_i32 = arith.constant 0 : i32
    %c0_i32_0 = arith.constant 0 : i32
    %c0_i32_1 = arith.constant 0 : i32
    %c0_i32_2 = arith.constant 0 : i32
    return %c0_i32, %c0_i32_0, %c0_i32_1 : i32, i32, i32
  }
  func.func @transform_5(%arg0: i32) -> (i32, i32) {
    %c0_i32 = arith.constant 0 : i32
    %c0_i32_0 = arith.constant 0 : i32
    %c0_i32_1 = arith.constant 0 : i32
    return %c0_i32, %c0_i32_0 : i32, i32
  }
  func.func @transform_6(%arg0: i32) -> (i32, i32, i32) {
    %c0_i32 = arith.constant 0 : i32
    %c0_i32_0 = arith.constant 0 : i32
    %c0_i32_1 = arith.constant 0 : i32
    %c0_i32_2 = arith.constant 0 : i32
    return %c0_i32, %c0_i32_0, %c0_i32_1 : i32, i32, i32
  }
  func.func @transform_7(%arg0: i32) -> (i32, i32, i32) {
    %c0_i32 = arith.constant 0 : i32
    %c0_i32_0 = arith.constant 0 : i32
    %c0_i32_1 = arith.constant 0 : i32
    %c0_i32_2 = arith.constant 0 : i32
    return %c0_i32, %c0_i32_0, %c0_i32_1 : i32, i32, i32
  }
  func.func @transform_8(%arg0: i32) -> (i32, i32) {
    %c0_i32 = arith.constant 0 : i32
    %c0_i32_0 = arith.constant 0 : i32
    %c0_i32_1 = arith.constant 0 : i32
    return %c0_i32, %c0_i32_0 : i32, i32
  }
  func.func @transform_9(%arg0: i32) -> (i32, i32) {
    %c0_i32 = arith.constant 0 : i32
    %c0_i32_0 = arith.constant 0 : i32
    %c0_i32_1 = arith.constant 0 : i32
    return %c0_i32, %c0_i32_0 : i32, i32
  }
  func.func @transform_10(%arg0: i32) -> (i32, i32) {
    %c0_i32 = arith.constant 0 : i32
    %c0_i32_0 = arith.constant 0 : i32
    %c0_i32_1 = arith.constant 0 : i32
    return %c0_i32, %c0_i32_0 : i32, i32
  }
  func.func @transform_11(%arg0: i32) -> (i32, i32) {
    %c0_i32 = arith.constant 0 : i32
    %c0_i32_0 = arith.constant 0 : i32
    %c0_i32_1 = arith.constant 0 : i32
    return %c0_i32, %c0_i32_0 : i32, i32
  }
}

</mosaic_0001>

<bundles_post_ra>
// kernel: chess_cnn_forward.1
= control target key start
LH: loop header
LB: loop body
LE: loop exit
PB: predicated region body
PF: predicated region fallthrough
CT: control target
= control target key end

     0   :  { %s4887_s0 = inlined_call_operand.vmem [shape: f32[16,128], index: 0, kind: input, shape index: {}]   ;;  %s4888_s1 = inlined_call_operand.vmem [shape: f32[9,1,128], index: 1, kind: input, shape index: {}]   ;;  %s4889_s2 = inlined_call_operand.vmem [shape: f32[12,16,144], index: 2, kind: input, shape index: {}]   ;;  %s4890_s3 = inlined_call_operand.vmem [shape: f32[12,16,1], index: 3, kind: input, shape index: {}]   ;;  %s4891_s4 = inlined_call_operand.hbm [shape: f32[16,64,128], index: 4, kind: input, shape index: {}]   ;;  %s4892_s5 = inlined_call_operand.vmem [shape: f32[64,1], index: 5, kind: input, shape index: {}]   ;;  %s4893_s6 = inlined_call_operand.vmem [shape: f32[1,64,64], index: 6, kind: input, shape index: {}]   ;;  %s4894_s7 = inlined_call_operand.vmem [shape: f32[1,64,1], index: 7, kind: input, shape index: {}]   ;;  %s4895_s8 = inlined_call_operand.vmem [shape: f32[64,1], index: 8, kind: input, shape index: {}]   ;;  %s4896_s9 = inlined_call_operand.<no memory space> [shape: f32[1,1], index: 9, kind: input, shape index: {}]   ;;  %s4897_s10 = inlined_call_operand.vmem [shape: f32[128,2], index: 10, kind: input, shape index: {}]   ;;  %s4898_s11 = inlined_call_operand.hbm [shape: f32[1,2], index: 11, kind: output, shape index: {}]  }
   0x1   :  { %v16_v0 = vstv %s4896_s9 }
   0x2   :  { %17 = vst [vmem:[#allocation2] sm:$0x1] %v16_v0 }
   0x3   :  { %18 = vsyncpa [#allocation4], 0 }
   0x4   :  { %19 = vsyncpa [#allocation5], 0  ;;  %s3551_s19 = smov [#allocation3]   ;;  %s3503_s23 = scalar_lea.hbm %s4891_s4, 16384 }
   0x5   :  { %s33_s20 = sshll.u32 %s3551_s19, 4  ;;  %p3504_p0 = scmp.ne.s32.totalorder %s4891_s4, %s3503_s23  ;;  %s34_s20 = int_to_ptr.vmem [resolvable:$true] %s33_s20 }
   0x6   :  { %p3507_p1 = scmp.lt.u32.totalorder %s3503_s23, %s4891_s4 }
   0x8   :  { %p3509_p2 = pnand %p3507_p1, %p3504_p0 }
   0xa   :  { %3512 = shalt.err (!%p3509_p2)
}
   0xb   :  { %s3513_s9 = scalar_lea.vmem %s34_s20, 16384  ;;  %p3518_p4 = scmp.lt.s32.totalorder %s34_s20, %s34_s20 }
   0xc   :  { %p3514_p3 = scmp.ne.s32.totalorder %s34_s20, %s3513_s9  ;;  %p3519_p5 = scmp.lt.s32.totalorder %s3513_s9, %s3513_s9 }
   0xe   :  { %p3520_p6 = por %p3519_p5, %p3518_p4 }
  0x10   :  { %p3521_p7 = pnand %p3520_p6, %p3514_p3 }
  0x12   :  { %3524 = shalt.err (!%p3521_p7)
}
  0x13   :  { %s3552_s28 = smov 128   ;;  %s3553_s29 = smov 8  }
  0x14   :  { %39 = dma.hbm_to_vmem [thread:$0]  %s4891_s4, 16384, %s34_s20, [#allocation4], %s3552_s28, %s3552_s28, %s3553_s29  }
  0x15   :  { %3547 = dma.done.wait [#allocation4], 16384  }
  0x16   :  { %3548 = vsyncadd [#allocation4], 4294950912  ;;  %v3554_v1 = vmov 0.0|0.0   ;;  %v55_v2 = vld [vmem:[%s4887_s0] sm:$0xff]  ;;  %s3555_s15 = smov 9   ;;  %v56_v3 = vld [vmem:[%s4887_s0 + $0x8] sm:$0xff] }
  0x17   :  { %3098 = vmatprep.subr.bf16.mxu0 %v3554_v1  ;;  %3125 = vmatprep.subr.bf16.mxu1 %v3554_v1  ;;  %v3655_v4 = vld [vmem:[%s4888_s1 + $0x4] ss:$0 sm:$0xff]  ;;  %s3556_s19 = smov 7   ;;  %s3557_s0 = smov 1   ;;  %v58_v8 = vld [vmem:[%s4889_s2 + $0x8] sm:$0xff]  ;;  %vm194_vm0 = vcmask 130048  }
  0x18   :  { %76 = vrot.lane.b32.xlu1 %v55_v2, %s3553_s29  ;;  %63 = vrot.lane.b32.xlu0 %v55_v2, %s3555_s15  ;;  %v3658_v5 = vmul.f32 %v3655_v4, %v55_v2  ;;  %v3661_v6 = vmul.f32 %v3655_v4, %v56_v3  ;;  %s3558_s20 = smov 127   ;;  %s3559_s21 = smov 121   ;;  %v61_v9 = vld [vmem:[%s4890_s3] sm:$0xff]  ;;  %v62_v10 = vld [vmem:[%s4890_s3 + $0x8] sm:$0xff]  ;;  %v3562_v11 = vmov 0   ;;  %vm2627_vm1 = vcmask 523264  }
  0x19   :  { %s3560_s22 = smov 120   ;;  %s3561_s25 = smov 119   ;;  %2888 = vmatprep.mubr.msk.f32.mxu0 %vm194_vm0, %v58_v8  ;;  %3483 = vset.pattern.permute.xlu0 %v3562_v11  ;;  %v3690_v14 = vld [vmem:[%s4888_s1] ss:$0 sm:$0xff]  ;;  %v3695_v15 = vld [vmem:[%s4888_s1 + $0x1] ss:$0 sm:$0xff] }
  0x1a   :  { %v3111_v7 = vpack.c.bf16 %v3661_v6, %v3658_v5  ;;  %3484 = vset.pattern.permute.xlu1 %v3562_v11  ;;  %v3702_v20 = vld [vmem:[%s4888_s1 + $0x2] ss:$0 sm:$0xff]  ;;  %v3712_v28 = vld [vmem:[%s4888_s1 + $0x3] ss:$0 sm:$0xff]  ;;  %v3721_v38 = vld [vmem:[%s4888_s1 + $0x5] ss:$0 sm:$0xff] }
  0x1b   :  { %v3729_v43 = vld [vmem:[%s4888_s1 + $0x6] ss:$0 sm:$0xff]  ;;  %v3740_v49 = vld [vmem:[%s4888_s1 + $0x7] ss:$0 sm:$0xff]  ;;  %v3748_v53 = vld [vmem:[%s4888_s1 + $0x8] ss:$0 sm:$0xff] }
  0x1c   :  { %78 = vrot.lane.b32.xlu1 %v56_v3, %s3553_s29  ;;  %65 = vrot.lane.b32.xlu0 %v56_v3, %s3555_s15  ;;  %v57_v60 = vld [vmem:[%s4889_s2] sm:$0xff]  ;;  %v60_v61 = vld [vmem:[%s4889_s2 + $0x18] sm:$0xff]  ;;  %vm2821_vm2 = vcmask 15360   ;;  %vm2854_vm3 = vcmask 8192  }
  0x1d   :  { %v59_v62 = vld [vmem:[%s4889_s2 + $0x10] sm:$0xff] }
  0x20   :  { %92 = vrot.lane.b32.xlu1 %v56_v3, %s3556_s19  ;;  %90 = vrot.lane.b32.xlu0 %v55_v2, %s3556_s19 }
  0x24   :  { %106 = vrot.lane.b32.xlu1 %v56_v3, %s3557_s0  ;;  %104 = vrot.lane.b32.xlu0 %v55_v2, %s3557_s0 }
  0x28   :  { %130 = vrot.lane.b32.xlu1 %v56_v3, %s3558_s20  ;;  %128 = vrot.lane.b32.xlu0 %v55_v2, %s3558_s20 }
  0x2c   :  { %144 = vrot.lane.b32.xlu1 %v56_v3, %s3559_s21  ;;  %142 = vrot.lane.b32.xlu0 %v55_v2, %s3559_s21 }
  0x30   :  { %158 = vrot.lane.b32.xlu1 %v56_v3, %s3560_s22  ;;  %156 = vrot.lane.b32.xlu0 %v55_v2, %s3560_s22 }
  0x34   :  { %172 = vrot.lane.b32.xlu1 %v56_v3, %s3561_s25  ;;  %170 = vrot.lane.b32.xlu0 %v55_v2, %s3561_s25 }
  0x38   :  { %186 = vperm.xlu0 %3483, %v61_v9   ;;  %191 = vperm.xlu1 %3484, %v62_v10  }
  0x8a   :  { %v77_v12 = vpop.permute.xlu1 %76  ;;  %v64_v13 = vpop.permute.xlu0 %63 }
  0x8b   :  { %v74_v18 = vmul.f32 %v3690_v14, %v64_v13  ;;  %v88_v21 = vmul.f32 %v3695_v15, %v77_v12 }
  0x8e   :  { %v79_v16 = vpop.permute.xlu1 %78  ;;  %v66_v17 = vpop.permute.xlu0 %65 }
  0x8f   :  { %v75_v19 = vmul.f32 %v3690_v14, %v66_v17  ;;  %v89_v22 = vmul.f32 %v3695_v15, %v79_v16  ;;  %v2891_v16 = vld [vmem:[%s4889_s2 + $0x28] sm:$0xff]  ;;  %v2894_v17 = vld [vmem:[%s4890_s3 + $0x10] sm:$0xff] }
  0x90   :  { %2896 = vmatprep.mubr.msk.f32.mxu1 %vm194_vm0, %v2891_v16 }
  0x91   :  { %v3099_v23 = vpack.c.bf16 %v75_v19, %v74_v18  ;;  %v3102_v29 = vpack.c.bf16 %v89_v22, %v88_v21  ;;  %v2895_v18 = vld [vmem:[%s4890_s3 + $0x18] sm:$0xff] }
  0x92   :  { %v93_v24 = vpop.permute.xlu1 %92  ;;  %v91_v25 = vpop.permute.xlu0 %90 }
  0x93   :  { %3100 = vmatpush1.bf16.msra.mxu0 %v3099_v23  ;;  %v103_v26 = vmul.f32 %v3702_v20, %v93_v24  ;;  %v102_v27 = vmul.f32 %v3702_v20, %v91_v25 }
  0x94   :  { %3101 = vmatprep.subr.bf16.mxu0 %v3554_v1 }
  0x95   :  { %v3105_v32 = vpack.c.bf16 %v103_v26, %v102_v27 }
  0x96   :  { %v107_v30 = vpop.permute.xlu1 %106  ;;  %v105_v31 = vpop.permute.xlu0 %104 }
  0x97   :  { %3103 = vmatpush1.bf16.msra.mxu0 %v3102_v29  ;;  %v117_v33 = vmul.f32 %v3712_v28, %v107_v30  ;;  %v116_v34 = vmul.f32 %v3712_v28, %v105_v31 }
  0x98   :  { %3104 = vmatprep.subr.bf16.mxu0 %v3554_v1 }
  0x99   :  { %v3108_v37 = vpack.c.bf16 %v117_v33, %v116_v34 }
  0x9a   :  { %v131_v35 = vpop.permute.xlu1 %130  ;;  %v129_v36 = vpop.permute.xlu0 %128 }
  0x9b   :  { %3106 = vmatpush1.bf16.msra.mxu0 %v3105_v32  ;;  %v141_v41 = vmul.f32 %v3721_v38, %v131_v35  ;;  %v140_v42 = vmul.f32 %v3721_v38, %v129_v36 }
  0x9c   :  { %3107 = vmatprep.subr.bf16.mxu0 %v3554_v1 }
  0x9d   :  { %v3114_v46 = vpack.c.bf16 %v141_v41, %v140_v42 }
  0x9e   :  { %v145_v39 = vpop.permute.xlu1 %144  ;;  %v143_v40 = vpop.permute.xlu0 %142 }
  0x9f   :  { %3109 = vmatpush1.bf16.msra.mxu0 %v3108_v37  ;;  %v155_v47 = vmul.f32 %v3729_v43, %v145_v39  ;;  %v154_v48 = vmul.f32 %v3729_v43, %v143_v40 }
  0xa0   :  { %3110 = vmatprep.subr.bf16.mxu0 %v3554_v1 }
  0xa1   :  { %v3117_v50 = vpack.c.bf16 %v155_v47, %v154_v48 }
  0xa2   :  { %v159_v44 = vpop.permute.xlu1 %158  ;;  %v157_v45 = vpop.permute.xlu0 %156 }
  0xa3   :  { %3112 = vmatpush1.bf16.msra.mxu0 %v3111_v7  ;;  %v169_v51 = vmul.f32 %v3740_v49, %v159_v44  ;;  %v168_v52 = vmul.f32 %v3740_v49, %v157_v45 }
  0xa4   :  { %3113 = vmatprep.subr.bf16.mxu0 %v3554_v1 }
  0xa5   :  { %v3120_v56 = vpack.c.bf16 %v169_v51, %v168_v52 }
  0xa6   :  { %v173_v54 = vpop.permute.xlu1 %172  ;;  %v171_v55 = vpop.permute.xlu0 %170 }
  0xa7   :  { %3115 = vmatpush1.bf16.msra.mxu0 %v3114_v46  ;;  %v183_v57 = vmul.f32 %v3748_v53, %v173_v54  ;;  %v182_v58 = vmul.f32 %v3748_v53, %v171_v55 }
  0xa8   :  { %3116 = vmatprep.subr.bf16.mxu0 %v3554_v1 }
  0xa9   :  { %v3123_v59 = vpack.c.bf16 %v183_v57, %v182_v58 }
  0xab   :  { %3118 = vmatpush1.bf16.msra.mxu0 %v3117_v50 }
  0xac   :  { %3119 = vmatprep.subr.bf16.mxu0 %v3554_v1 }
  0xaf   :  { %3121 = vmatpush1.bf16.msra.mxu0 %v3120_v56 }
  0xb0   :  { %3122 = vmatprep.subr.bf16.mxu0 %v3554_v1 }
  0xb3   :  { %3124 = vmatpush1.bf16.msra.mxu0 %v3123_v59 }
  0xb4   :  { %3152 = vmatprep.subr.bf16.mxu0 %v3554_v1 }
  0xb6   :  { %266 = vmatmul.mubr.f32.vlgmr.msra.gmra.mrb[0].mxu0 %v57_v60 }
  0xb7   :  { %2889 = vmatprep.mubr.msk.f32.mxu0 %vm194_vm0, %v60_v61  ;;  %v187_v63 = vpop.permute.xlu0 %186  ;;  %v192_v5 = vpop.permute.xlu1 %191 }
  0xba   :  { %271 = vmatmul.mubr.f32.gmra.mrb[2].mxu0 %v59_v62 }
 0x189   :  { %v267_v0 = vpop.f32.mrb[0].mxu0 }
 0x18a   :  { %v268_v2 = vadd.f32 %v267_v0, %v187_v63  ;;  %v269_v3 = vpop.f32.mrb[1].mxu0 }
 0x18b   :  { %v2893_v3 = vld [vmem:[%s4889_s2 + $0x38] sm:$0xff] }
 0x18c   :  { %v276_v6 = vmax.f32 %v268_v2, 0.0  ;;  %v2890_v2 = vld [vmem:[%s4889_s2 + $0x20] sm:$0xff] }
 0x18d   :  { %v272_v7 = vpop.f32.mrb[2].mxu0 }
 0x18e   :  { %v273_v8 = vadd.f32 %v272_v7, %v192_v5  ;;  %v274_v9 = vpop.f32.mrb[3].mxu0  ;;  %286 = vrot.lane.b32.xlu1 %v276_v6, %s3555_s15  ;;  %v310_v11 = vmul.f32 %v3655_v4, %v276_v6  ;;  %v2892_v5 = vld [vmem:[%s4889_s2 + $0x30] sm:$0xff] }
 0x190   :  { %v277_v10 = vmax.f32 %v273_v8, 0.0 }
 0x192   :  { %288 = vrot.lane.b32.xlu0 %v277_v10, %s3555_s15  ;;  %292 = vrot.lane.b32.xlu1 %v276_v6, %s3553_s29  ;;  %v311_v12 = vmul.f32 %v3655_v4, %v277_v10 }
 0x194   :  { %v3138_v13 = vpack.c.bf16 %v311_v12, %v310_v11 }
 0x196   :  { %294 = vrot.lane.b32.xlu0 %v277_v10, %s3553_s29  ;;  %298 = vrot.lane.b32.xlu1 %v276_v6, %s3556_s19 }
 0x19a   :  { %300 = vrot.lane.b32.xlu0 %v277_v10, %s3556_s19  ;;  %304 = vrot.lane.b32.xlu1 %v276_v6, %s3557_s0 }
 0x19e   :  { %306 = vrot.lane.b32.xlu0 %v277_v10, %s3557_s0  ;;  %312 = vrot.lane.b32.xlu1 %v276_v6, %s3558_s20 }
 0x1a2   :  { %314 = vrot.lane.b32.xlu0 %v277_v10, %s3558_s20  ;;  %318 = vrot.lane.b32.xlu1 %v276_v6, %s3559_s21 }
 0x1a6   :  { %320 = vrot.lane.b32.xlu0 %v277_v10, %s3559_s21  ;;  %324 = vrot.lane.b32.xlu1 %v276_v6, %s3560_s22 }
 0x1aa   :  { %326 = vrot.lane.b32.xlu0 %v277_v10, %s3560_s22  ;;  %330 = vrot.lane.b32.xlu1 %v276_v6, %s3561_s25 }
 0x1ae   :  { %332 = vrot.lane.b32.xlu0 %v277_v10, %s3561_s25  ;;  %338 = vperm.xlu1 %3484, %v2894_v17  }
 0x1b2   :  { %343 = vperm.xlu0 %3483, %v2895_v18  }
 0x200   :  { %v287_v19 = vpop.permute.xlu1 %286 }
 0x201   :  { %v290_v23 = vmul.f32 %v3690_v14, %v287_v19 }
 0x204   :  { %v289_v21 = vpop.permute.xlu0 %288  ;;  %v293_v22 = vpop.permute.xlu1 %292 }
 0x205   :  { %v291_v24 = vmul.f32 %v3690_v14, %v289_v21  ;;  %v296_v29 = vmul.f32 %v3695_v15, %v293_v22  ;;  %v2899_v22 = vld [vmem:[%s4889_s2 + $0x48] sm:$0xff] }
 0x206   :  { %2904 = vmatprep.mubr.msk.f32.mxu0 %vm194_vm0, %v2899_v22 }
 0x207   :  { %v3126_v25 = vpack.c.bf16 %v291_v24, %v290_v23  ;;  %v2902_v23 = vld [vmem:[%s4890_s3 + $0x20] sm:$0xff]  ;;  %v2903_v24 = vld [vmem:[%s4890_s3 + $0x28] sm:$0xff] }
 0x208   :  { %v295_v26 = vpop.permute.xlu0 %294  ;;  %v299_v27 = vpop.permute.xlu1 %298 }
 0x209   :  { %v297_v30 = vmul.f32 %v3695_v15, %v295_v26  ;;  %3127 = vmatpush1.bf16.msra.mxu1 %v3126_v25  ;;  %v302_v34 = vmul.f32 %v3702_v20, %v299_v27 }
 0x20a   :  { %3128 = vmatprep.subr.bf16.mxu1 %v3554_v1 }
 0x20b   :  { %v3129_v31 = vpack.c.bf16 %v297_v30, %v296_v29 }
 0x20c   :  { %v301_v32 = vpop.permute.xlu0 %300  ;;  %v305_v33 = vpop.permute.xlu1 %304 }
 0x20d   :  { %v303_v35 = vmul.f32 %v3702_v20, %v301_v32  ;;  %3130 = vmatpush1.bf16.msra.mxu1 %v3129_v31  ;;  %v308_v40 = vmul.f32 %v3712_v28, %v305_v33 }
 0x20e   :  { %3131 = vmatprep.subr.bf16.mxu1 %v3554_v1 }
 0x20f   :  { %v3132_v36 = vpack.c.bf16 %v303_v35, %v302_v34 }
 0x210   :  { %v307_v37 = vpop.permute.xlu0 %306  ;;  %v313_v39 = vpop.permute.xlu1 %312 }
 0x211   :  { %v309_v41 = vmul.f32 %v3712_v28, %v307_v37  ;;  %3133 = vmatpush1.bf16.msra.mxu1 %v3132_v36  ;;  %v316_v48 = vmul.f32 %v3721_v38, %v313_v39 }
 0x212   :  { %3134 = vmatprep.subr.bf16.mxu1 %v3554_v1 }
 0x213   :  { %v3135_v42 = vpack.c.bf16 %v309_v41, %v308_v40 }
 0x214   :  { %v315_v44 = vpop.permute.xlu0 %314  ;;  %v319_v45 = vpop.permute.xlu1 %318 }
 0x215   :  { %3136 = vmatpush1.bf16.msra.mxu1 %v3135_v42  ;;  %v317_v46 = vmul.f32 %v3721_v38, %v315_v44  ;;  %v322_v55 = vmul.f32 %v3729_v43, %v319_v45 }
 0x216   :  { %3137 = vmatprep.subr.bf16.mxu1 %v3554_v1 }
 0x217   :  { %v3141_v50 = vpack.c.bf16 %v317_v46, %v316_v48 }
 0x218   :  { %v321_v47 = vpop.permute.xlu0 %320  ;;  %v325_v52 = vpop.permute.xlu1 %324 }
 0x219   :  { %3139 = vmatpush1.bf16.msra.mxu1 %v3138_v13  ;;  %v323_v51 = vmul.f32 %v3729_v43, %v321_v47  ;;  %v328_v59 = vmul.f32 %v3740_v49, %v325_v52 }
 0x21a   :  { %3140 = vmatprep.subr.bf16.mxu1 %v3554_v1 }
 0x21b   :  { %v3144_v56 = vpack.c.bf16 %v323_v51, %v322_v55 }
 0x21c   :  { %v327_v54 = vpop.permute.xlu0 %326  ;;  %v331_v60 = vpop.permute.xlu1 %330 }
 0x21d   :  { %3142 = vmatpush1.bf16.msra.mxu1 %v3141_v50  ;;  %v329_v57 = vmul.f32 %v3740_v49, %v327_v54  ;;  %v334_v63 = vmul.f32 %v3748_v53, %v331_v60 }
 0x21e   :  { %3143 = vmatprep.subr.bf16.mxu1 %v3554_v1 }
 0x21f   :  { %v3147_v61 = vpack.c.bf16 %v329_v57, %v328_v59 }
 0x220   :  { %v333_v58 = vpop.permute.xlu0 %332 }
 0x221   :  { %3145 = vmatpush1.bf16.msra.mxu1 %v3144_v56  ;;  %v335_v62 = vmul.f32 %v3748_v53, %v333_v58 }
 0x222   :  { %3146 = vmatprep.subr.bf16.mxu1 %v3554_v1 }
 0x223   :  { %v3150_v0 = vpack.c.bf16 %v335_v62, %v334_v63 }
 0x225   :  { %3148 = vmatpush1.bf16.msra.mxu1 %v3147_v61 }
 0x226   :  { %3149 = vmatprep.subr.bf16.mxu1 %v3554_v1 }
 0x229   :  { %3151 = vmatpush1.bf16.msra.mxu1 %v3150_v0 }
 0x22a   :  { %3179 = vmatprep.subr.bf16.mxu1 %v3554_v1 }
 0x22c   :  { %417 = vmatmul.mubr.f32.vlgmr.msra.gmra.mrb[0].mxu1 %v2890_v2 }
 0x22d   :  { %2897 = vmatprep.mubr.msk.f32.mxu1 %vm194_vm0, %v2893_v3  ;;  %v339_v6 = vpop.permute.xlu1 %338 }
 0x230   :  { %422 = vmatmul.mubr.f32.gmra.mrb[2].mxu1 %v2892_v5 }
 0x231   :  { %v344_v11 = vpop.permute.xlu0 %343 }
 0x2ff   :  { %v418_v7 = vpop.f32.mrb[0].mxu1 }
 0x300   :  { %v419_v8 = vadd.f32 %v418_v7, %v339_v6  ;;  %v420_v9 = vpop.f32.mrb[1].mxu1 }
 0x301   :  { %v2901_v9 = vld [vmem:[%s4889_s2 + $0x58] sm:$0xff] }
 0x302   :  { %v427_v10 = vmax.f32 %v419_v8, 0.0  ;;  %v2898_v8 = vld [vmem:[%s4889_s2 + $0x40] sm:$0xff] }
 0x303   :  { %v423_v12 = vpop.f32.mrb[2].mxu1 }
 0x304   :  { %v424_v13 = vadd.f32 %v423_v12, %v344_v11  ;;  %v425_v16 = vpop.f32.mrb[3].mxu1  ;;  %437 = vrot.lane.b32.xlu1 %v427_v10, %s3555_s15  ;;  %v461_v18 = vmul.f32 %v3655_v4, %v427_v10 }
 0x306   :  { %v428_v17 = vmax.f32 %v424_v13, 0.0 }
 0x308   :  { %439 = vrot.lane.b32.xlu0 %v428_v17, %s3555_s15  ;;  %443 = vrot.lane.b32.xlu1 %v427_v10, %s3553_s29  ;;  %v462_v19 = vmul.f32 %v3655_v4, %v428_v17 }
 0x30a   :  { %v3165_v21 = vpack.c.bf16 %v462_v19, %v461_v18 }
 0x30c   :  { %445 = vrot.lane.b32.xlu0 %v428_v17, %s3553_s29  ;;  %449 = vrot.lane.b32.xlu1 %v427_v10, %s3556_s19 }
 0x310   :  { %451 = vrot.lane.b32.xlu0 %v428_v17, %s3556_s19  ;;  %455 = vrot.lane.b32.xlu1 %v427_v10, %s3557_s0 }
 0x314   :  { %457 = vrot.lane.b32.xlu0 %v428_v17, %s3557_s0  ;;  %463 = vrot.lane.b32.xlu1 %v427_v10, %s3558_s20 }
 0x318   :  { %465 = vrot.lane.b32.xlu0 %v428_v17, %s3558_s20  ;;  %469 = vrot.lane.b32.xlu1 %v427_v10, %s3559_s21 }
 0x31c   :  { %471 = vrot.lane.b32.xlu0 %v428_v17, %s3559_s21  ;;  %475 = vrot.lane.b32.xlu1 %v427_v10, %s3560_s22 }
 0x320   :  { %477 = vrot.lane.b32.xlu0 %v428_v17, %s3560_s22  ;;  %481 = vrot.lane.b32.xlu1 %v427_v10, %s3561_s25  ;;  %v2900_v10 = vld [vmem:[%s4889_s2 + $0x50] sm:$0xff] }
 0x324   :  { %483 = vrot.lane.b32.xlu0 %v428_v17, %s3561_s25  ;;  %489 = vperm.xlu1 %3484, %v2902_v23  }
 0x328   :  { %494 = vperm.xlu0 %3483, %v2903_v24  }
 0x376   :  { %v438_v25 = vpop.permute.xlu1 %437 }
 0x377   :  { %v441_v29 = vmul.f32 %v3690_v14, %v438_v25 }
 0x37a   :  { %v440_v26 = vpop.permute.xlu0 %439  ;;  %v444_v27 = vpop.permute.xlu1 %443 }
 0x37b   :  { %v442_v30 = vmul.f32 %v3690_v14, %v440_v26  ;;  %v447_v34 = vmul.f32 %v3695_v15, %v444_v27  ;;  %v2907_v27 = vld [vmem:[%s4889_s2 + $0x68] sm:$0xff] }
 0x37c   :  { %2912 = vmatprep.mubr.msk.f32.mxu1 %vm194_vm0, %v2907_v27 }
 0x37d   :  { %v3153_v31 = vpack.c.bf16 %v442_v30, %v441_v29  ;;  %v2910_v29 = vld [vmem:[%s4890_s3 + $0x30] sm:$0xff]  ;;  %v2911_v30 = vld [vmem:[%s4890_s3 + $0x38] sm:$0xff] }
 0x37e   :  { %v446_v32 = vpop.permute.xlu0 %445  ;;  %v450_v33 = vpop.permute.xlu1 %449 }
 0x37f   :  { %v448_v35 = vmul.f32 %v3695_v15, %v446_v32  ;;  %3154 = vmatpush1.bf16.msra.mxu0 %v3153_v31  ;;  %v453_v40 = vmul.f32 %v3702_v20, %v450_v33 }
 0x380   :  { %3155 = vmatprep.subr.bf16.mxu0 %v3554_v1 }
 0x381   :  { %v3156_v36 = vpack.c.bf16 %v448_v35, %v447_v34 }
 0x382   :  { %v452_v37 = vpop.permute.xlu0 %451  ;;  %v456_v39 = vpop.permute.xlu1 %455 }
 0x383   :  { %v454_v41 = vmul.f32 %v3702_v20, %v452_v37  ;;  %3157 = vmatpush1.bf16.msra.mxu0 %v3156_v36  ;;  %v459_v46 = vmul.f32 %v3712_v28, %v456_v39 }
 0x384   :  { %3158 = vmatprep.subr.bf16.mxu0 %v3554_v1 }
 0x385   :  { %v3159_v42 = vpack.c.bf16 %v454_v41, %v453_v40 }
 0x386   :  { %v458_v44 = vpop.permute.xlu0 %457  ;;  %v464_v45 = vpop.permute.xlu1 %463 }
 0x387   :  { %v460_v47 = vmul.f32 %v3712_v28, %v458_v44  ;;  %3160 = vmatpush1.bf16.msra.mxu0 %v3159_v42  ;;  %v467_v55 = vmul.f32 %v3721_v38, %v464_v45 }
 0x388   :  { %3161 = vmatprep.subr.bf16.mxu0 %v3554_v1 }
 0x389   :  { %v3162_v48 = vpack.c.bf16 %v460_v47, %v459_v46 }
 0x38a   :  { %v466_v50 = vpop.permute.xlu0 %465  ;;  %v470_v51 = vpop.permute.xlu1 %469 }
 0x38b   :  { %3163 = vmatpush1.bf16.msra.mxu0 %v3162_v48  ;;  %v468_v52 = vmul.f32 %v3721_v38, %v466_v50  ;;  %v473_v60 = vmul.f32 %v3729_v43, %v470_v51 }
 0x38c   :  { %3164 = vmatprep.subr.bf16.mxu0 %v3554_v1 }
 0x38d   :  { %v3168_v56 = vpack.c.bf16 %v468_v52, %v467_v55 }
 0x38e   :  { %v472_v54 = vpop.permute.xlu0 %471  ;;  %v476_v58 = vpop.permute.xlu1 %475 }
 0x38f   :  { %3166 = vmatpush1.bf16.msra.mxu0 %v3165_v21  ;;  %v474_v57 = vmul.f32 %v3729_v43, %v472_v54  ;;  %v479_v0 = vmul.f32 %v3740_v49, %v476_v58 }
 0x390   :  { %3167 = vmatprep.subr.bf16.mxu0 %v3554_v1 }
 0x391   :  { %v3171_v61 = vpack.c.bf16 %v474_v57, %v473_v60 }
 0x392   :  { %v478_v59 = vpop.permute.xlu0 %477  ;;  %v482_v2 = vpop.permute.xlu1 %481 }
 0x393   :  { %3169 = vmatpush1.bf16.msra.mxu0 %v3168_v56  ;;  %v480_v62 = vmul.f32 %v3740_v49, %v478_v59  ;;  %v485_v6 = vmul.f32 %v3748_v53, %v482_v2 }
 0x394   :  { %3170 = vmatprep.subr.bf16.mxu0 %v3554_v1 }
 0x395   :  { %v3174_v3 = vpack.c.bf16 %v480_v62, %v479_v0 }
 0x396   :  { %v484_v63 = vpop.permute.xlu0 %483 }
 0x397   :  { %3172 = vmatpush1.bf16.msra.mxu0 %v3171_v61  ;;  %v486_v5 = vmul.f32 %v3748_v53, %v484_v63 }
 0x398   :  { %3173 = vmatprep.subr.bf16.mxu0 %v3554_v1 }
 0x399   :  { %v3177_v7 = vpack.c.bf16 %v486_v5, %v485_v6 }
 0x39b   :  { %3175 = vmatpush1.bf16.msra.mxu0 %v3174_v3 }
 0x39c   :  { %3176 = vmatprep.subr.bf16.mxu0 %v3554_v1 }
 0x39f   :  { %3178 = vmatpush1.bf16.msra.mxu0 %v3177_v7 }
 0x3a0   :  { %3206 = vmatprep.subr.bf16.mxu0 %v3554_v1 }
 0x3a2   :  { %568 = vmatmul.mubr.f32.vlgmr.msra.gmra.mrb[4].mxu0 %v2898_v8 }
 0x3a3   :  { %2905 = vmatprep.mubr.msk.f32.mxu0 %vm194_vm0, %v2901_v9  ;;  %v490_v11 = vpop.permute.xlu1 %489 }
 0x3a6   :  { %573 = vmatmul.mubr.f32.gmra.mrb[6].mxu0 %v2900_v10 }
 0x3a7   :  { %v495_v18 = vpop.permute.xlu0 %494 }
 0x475   :  { %v569_v12 = vpop.f32.mrb[4].mxu0 }
 0x476   :  { %v570_v13 = vadd.f32 %v569_v12, %v490_v11  ;;  %v571_v16 = vpop.f32.mrb[5].mxu0 }
 0x477   :  { %v2909_v16 = vld [vmem:[%s4889_s2 + $0x78] sm:$0xff] }
 0x478   :  { %v578_v17 = vmax.f32 %v570_v13, 0.0  ;;  %v2906_v13 = vld [vmem:[%s4889_s2 + $0x60] sm:$0xff] }
 0x479   :  { %v574_v19 = vpop.f32.mrb[6].mxu0 }
 0x47a   :  { %v575_v21 = vadd.f32 %v574_v19, %v495_v18  ;;  %v576_v22 = vpop.f32.mrb[7].mxu0  ;;  %588 = vrot.lane.b32.xlu1 %v578_v17, %s3555_s15  ;;  %v612_v24 = vmul.f32 %v3655_v4, %v578_v17 }
 0x47c   :  { %v579_v23 = vmax.f32 %v575_v21, 0.0 }
 0x47e   :  { %590 = vrot.lane.b32.xlu0 %v579_v23, %s3555_s15  ;;  %594 = vrot.lane.b32.xlu1 %v578_v17, %s3553_s29  ;;  %v613_v25 = vmul.f32 %v3655_v4, %v579_v23 }
 0x480   :  { %v3192_v26 = vpack.c.bf16 %v613_v25, %v612_v24 }
 0x482   :  { %596 = vrot.lane.b32.xlu0 %v579_v23, %s3553_s29  ;;  %600 = vrot.lane.b32.xlu1 %v578_v17, %s3556_s19 }
 0x486   :  { %602 = vrot.lane.b32.xlu0 %v579_v23, %s3556_s19  ;;  %606 = vrot.lane.b32.xlu1 %v578_v17, %s3557_s0 }
 0x48a   :  { %608 = vrot.lane.b32.xlu0 %v579_v23, %s3557_s0  ;;  %614 = vrot.lane.b32.xlu1 %v578_v17, %s3558_s20 }
 0x48e   :  { %616 = vrot.lane.b32.xlu0 %v579_v23, %s3558_s20  ;;  %620 = vrot.lane.b32.xlu1 %v578_v17, %s3559_s21 }
 0x492   :  { %622 = vrot.lane.b32.xlu0 %v579_v23, %s3559_s21  ;;  %626 = vrot.lane.b32.xlu1 %v578_v17, %s3560_s22 }
 0x496   :  { %628 = vrot.lane.b32.xlu0 %v579_v23, %s3560_s22  ;;  %632 = vrot.lane.b32.xlu1 %v578_v17, %s3561_s25  ;;  %v2908_v17 = vld [vmem:[%s4889_s2 + $0x70] sm:$0xff] }
 0x49a   :  { %634 = vrot.lane.b32.xlu0 %v579_v23, %s3561_s25  ;;  %640 = vperm.xlu1 %3484, %v2910_v29  }
 0x49e   :  { %645 = vperm.xlu0 %3483, %v2911_v30  }
 0x4ec   :  { %v589_v31 = vpop.permute.xlu1 %588 }
 0x4ed   :  { %v592_v34 = vmul.f32 %v3690_v14, %v589_v31 }
 0x4f0   :  { %v591_v32 = vpop.permute.xlu0 %590  ;;  %v595_v33 = vpop.permute.xlu1 %594 }
 0x4f1   :  { %v593_v35 = vmul.f32 %v3690_v14, %v591_v32  ;;  %v598_v40 = vmul.f32 %v3695_v15, %v595_v33  ;;  %v2918_v33 = vld [vmem:[%s4890_s3 + $0x40] sm:$0xff] }
 0x4f3   :  { %v3180_v36 = vpack.c.bf16 %v593_v35, %v592_v34  ;;  %v2919_v34 = vld [vmem:[%s4890_s3 + $0x48] sm:$0xff] }
 0x4f4   :  { %v597_v37 = vpop.permute.xlu0 %596  ;;  %v601_v39 = vpop.permute.xlu1 %600 }
 0x4f5   :  { %v599_v41 = vmul.f32 %v3695_v15, %v597_v37  ;;  %3181 = vmatpush1.bf16.msra.mxu1 %v3180_v36  ;;  %v604_v46 = vmul.f32 %v3702_v20, %v601_v39 }
 0x4f6   :  { %3182 = vmatprep.subr.bf16.mxu1 %v3554_v1 }
 0x4f7   :  { %v3183_v42 = vpack.c.bf16 %v599_v41, %v598_v40 }
 0x4f8   :  { %v603_v44 = vpop.permute.xlu0 %602  ;;  %v607_v45 = vpop.permute.xlu1 %606 }
 0x4f9   :  { %v605_v47 = vmul.f32 %v3702_v20, %v603_v44  ;;  %3184 = vmatpush1.bf16.msra.mxu1 %v3183_v42  ;;  %v610_v52 = vmul.f32 %v3712_v28, %v607_v45 }
 0x4fa   :  { %3185 = vmatprep.subr.bf16.mxu1 %v3554_v1 }
 0x4fb   :  { %v3186_v48 = vpack.c.bf16 %v605_v47, %v604_v46 }
 0x4fc   :  { %v609_v50 = vpop.permute.xlu0 %608  ;;  %v615_v51 = vpop.permute.xlu1 %614 }
 0x4fd   :  { %v611_v54 = vmul.f32 %v3712_v28, %v609_v50  ;;  %3187 = vmatpush1.bf16.msra.mxu1 %v3186_v48  ;;  %v618_v60 = vmul.f32 %v3721_v38, %v615_v51 }
 0x4fe   :  { %3188 = vmatprep.subr.bf16.mxu1 %v3554_v1 }
 0x4ff   :  { %v3189_v55 = vpack.c.bf16 %v611_v54, %v610_v52 }
 0x500   :  { %v617_v56 = vpop.permute.xlu0 %616  ;;  %v621_v57 = vpop.permute.xlu1 %620 }
 0x501   :  { %3190 = vmatpush1.bf16.msra.mxu1 %v3189_v55  ;;  %v619_v58 = vmul.f32 %v3721_v38, %v617_v56  ;;  %v624_v2 = vmul.f32 %v3729_v43, %v621_v57 }
 0x502   :  { %3191 = vmatprep.subr.bf16.mxu1 %v3554_v1 }
 0x503   :  { %v3195_v61 = vpack.c.bf16 %v619_v58, %v618_v60 }
 0x504   :  { %v623_v59 = vpop.permute.xlu0 %622  ;;  %v627_v63 = vpop.permute.xlu1 %626 }
 0x505   :  { %3193 = vmatpush1.bf16.msra.mxu1 %v3192_v26  ;;  %v625_v62 = vmul.f32 %v3729_v43, %v623_v59  ;;  %v630_v7 = vmul.f32 %v3740_v49, %v627_v63 }
 0x506   :  { %3194 = vmatprep.subr.bf16.mxu1 %v3554_v1 }
 0x507   :  { %v3198_v3 = vpack.c.bf16 %v625_v62, %v624_v2 }
 0x508   :  { %v629_v0 = vpop.permute.xlu0 %628  ;;  %v633_v8 = vpop.permute.xlu1 %632 }
 0x509   :  { %3196 = vmatpush1.bf16.msra.mxu1 %v3195_v61  ;;  %v631_v5 = vmul.f32 %v3740_v49, %v629_v0  ;;  %v636_v11 = vmul.f32 %v3748_v53, %v633_v8 }
 0x50a   :  { %3197 = vmatprep.subr.bf16.mxu1 %v3554_v1 }
 0x50b   :  { %v3201_v9 = vpack.c.bf16 %v631_v5, %v630_v7 }
 0x50c   :  { %v635_v6 = vpop.permute.xlu0 %634 }
 0x50d   :  { %3199 = vmatpush1.bf16.msra.mxu1 %v3198_v3  ;;  %v637_v10 = vmul.f32 %v3748_v53, %v635_v6 }
 0x50e   :  { %3200 = vmatprep.subr.bf16.mxu1 %v3554_v1 }
 0x50f   :  { %v3204_v12 = vpack.c.bf16 %v637_v10, %v636_v11 }
 0x511   :  { %3202 = vmatpush1.bf16.msra.mxu1 %v3201_v9 }
 0x512   :  { %3203 = vmatprep.subr.bf16.mxu1 %v3554_v1 }
 0x515   :  { %3205 = vmatpush1.bf16.msra.mxu1 %v3204_v12 }
 0x516   :  { %3233 = vmatprep.subr.bf16.mxu1 %v3554_v1 }
 0x518   :  { %719 = vmatmul.mubr.f32.vlgmr.msra.gmra.mrb[4].mxu1 %v2906_v13 }
 0x519   :  { %2913 = vmatprep.mubr.msk.f32.mxu1 %vm194_vm0, %v2909_v16  ;;  %v641_v18 = vpop.permute.xlu1 %640 }
 0x51c   :  { %724 = vmatmul.mubr.f32.gmra.mrb[6].mxu1 %v2908_v17 }
 0x51d   :  { %v646_v24 = vpop.permute.xlu0 %645 }
 0x5eb   :  { %v720_v19 = vpop.f32.mrb[4].mxu1 }
 0x5ec   :  { %v721_v21 = vadd.f32 %v720_v19, %v641_v18  ;;  %v722_v22 = vpop.f32.mrb[5].mxu1  ;;  %v2914_v19 = vld [vmem:[%s4889_s2 + $0x80] sm:$0xff] }
 0x5ed   :  { %v2916_v22 = vld [vmem:[%s4889_s2 + $0x90] sm:$0xff] }
 0x5ee   :  { %v729_v23 = vmax.f32 %v721_v21, 0.0  ;;  %v2917_v21 = vld [vmem:[%s4889_s2 + $0x98] sm:$0xff] }
 0x5ef   :  { %v725_v25 = vpop.f32.mrb[6].mxu1 }
 0x5f0   :  { %v726_v26 = vadd.f32 %v725_v25, %v646_v24  ;;  %v727_v27 = vpop.f32.mrb[7].mxu1  ;;  %739 = vrot.lane.b32.xlu1 %v729_v23, %s3555_s15  ;;  %v763_v30 = vmul.f32 %v3655_v4, %v729_v23 }
 0x5f2   :  { %v730_v29 = vmax.f32 %v726_v26, 0.0 }
 0x5f4   :  { %741 = vrot.lane.b32.xlu0 %v730_v29, %s3555_s15  ;;  %745 = vrot.lane.b32.xlu1 %v729_v23, %s3553_s29  ;;  %v764_v31 = vmul.f32 %v3655_v4, %v730_v29  ;;  %v2915_v4 = vld [vmem:[%s4889_s2 + $0x88] sm:$0xff] }
 0x5f5   :  { %2920 = vmatprep.mubr.msk.f32.mxu0 %vm194_vm0, %v2915_v4 }
 0x5f6   :  { %v3219_v32 = vpack.c.bf16 %v764_v31, %v763_v30 }
 0x5f8   :  { %747 = vrot.lane.b32.xlu0 %v730_v29, %s3553_s29  ;;  %751 = vrot.lane.b32.xlu1 %v729_v23, %s3556_s19 }
 0x5fc   :  { %753 = vrot.lane.b32.xlu0 %v730_v29, %s3556_s19  ;;  %757 = vrot.lane.b32.xlu1 %v729_v23, %s3557_s0 }
 0x600   :  { %759 = vrot.lane.b32.xlu0 %v730_v29, %s3557_s0  ;;  %765 = vrot.lane.b32.xlu1 %v729_v23, %s3558_s20 }
 0x604   :  { %767 = vrot.lane.b32.xlu0 %v730_v29, %s3558_s20  ;;  %771 = vrot.lane.b32.xlu1 %v729_v23, %s3559_s21 }
 0x608   :  { %773 = vrot.lane.b32.xlu0 %v730_v29, %s3559_s21  ;;  %777 = vrot.lane.b32.xlu1 %v729_v23, %s3560_s22 }
 0x60c   :  { %779 = vrot.lane.b32.xlu0 %v730_v29, %s3560_s22  ;;  %783 = vrot.lane.b32.xlu1 %v729_v23, %s3561_s25 }
 0x610   :  { %785 = vrot.lane.b32.xlu0 %v730_v29, %s3561_s25  ;;  %791 = vperm.xlu1 %3484, %v2918_v33   ;;  %v4023_v33 = vld [vmem:[%s4888_s1 + $0x4] ss:$0 sm:$0xff] }
 0x614   :  { %796 = vperm.xlu0 %3483, %v2919_v34  }
 0x662   :  { %v740_v35 = vpop.permute.xlu1 %739 }
 0x663   :  { %v743_v39 = vmul.f32 %v3690_v14, %v740_v35 }
 0x666   :  { %v742_v36 = vpop.permute.xlu0 %741  ;;  %v746_v37 = vpop.permute.xlu1 %745 }
 0x667   :  { %v744_v40 = vmul.f32 %v3690_v14, %v742_v36  ;;  %v749_v45 = vmul.f32 %v3695_v15, %v746_v37  ;;  %v2923_v37 = vld [vmem:[%s4889_s2 + $0xa8] sm:$0xff] }
 0x668   :  { %2928 = vmatprep.mubr.msk.f32.mxu1 %vm194_vm0, %v2923_v37 }
 0x669   :  { %v3207_v41 = vpack.c.bf16 %v744_v40, %v743_v39  ;;  %v2926_v39 = vld [vmem:[%s4890_s3 + $0x50] sm:$0xff]  ;;  %v2927_v40 = vld [vmem:[%s4890_s3 + $0x58] sm:$0xff] }
 0x66a   :  { %v748_v42 = vpop.permute.xlu0 %747  ;;  %v752_v44 = vpop.permute.xlu1 %751 }
 0x66b   :  { %v750_v46 = vmul.f32 %v3695_v15, %v748_v42  ;;  %3208 = vmatpush1.bf16.msra.mxu0 %v3207_v41  ;;  %v755_v51 = vmul.f32 %v3702_v20, %v752_v44 }
 0x66c   :  { %3209 = vmatprep.subr.bf16.mxu0 %v3554_v1 }
 0x66d   :  { %v3210_v47 = vpack.c.bf16 %v750_v46, %v749_v45 }
 0x66e   :  { %v754_v48 = vpop.permute.xlu0 %753  ;;  %v758_v50 = vpop.permute.xlu1 %757 }
 0x66f   :  { %v756_v52 = vmul.f32 %v3702_v20, %v754_v48  ;;  %3211 = vmatpush1.bf16.msra.mxu0 %v3210_v47  ;;  %v761_v57 = vmul.f32 %v3712_v28, %v758_v50 }
 0x670   :  { %3212 = vmatprep.subr.bf16.mxu0 %v3554_v1 }
 0x671   :  { %v3213_v54 = vpack.c.bf16 %v756_v52, %v755_v51 }
 0x672   :  { %v760_v55 = vpop.permute.xlu0 %759  ;;  %v766_v56 = vpop.permute.xlu1 %765 }
 0x673   :  { %v762_v58 = vmul.f32 %v3712_v28, %v760_v55  ;;  %3214 = vmatpush1.bf16.msra.mxu0 %v3213_v54  ;;  %v769_v0 = vmul.f32 %v3721_v38, %v766_v56 }
 0x674   :  { %3215 = vmatprep.subr.bf16.mxu0 %v3554_v1 }
 0x675   :  { %v3216_v59 = vpack.c.bf16 %v762_v58, %v761_v57 }
 0x676   :  { %v768_v60 = vpop.permute.xlu0 %767  ;;  %v772_v61 = vpop.permute.xlu1 %771 }
 0x677   :  { %3217 = vmatpush1.bf16.msra.mxu0 %v3216_v59  ;;  %v770_v62 = vmul.f32 %v3721_v38, %v768_v60  ;;  %v775_v7 = vmul.f32 %v3729_v43, %v772_v61 }
 0x678   :  { %3218 = vmatprep.subr.bf16.mxu0 %v3554_v1 }
 0x679   :  { %v3222_v2 = vpack.c.bf16 %v770_v62, %v769_v0 }
 0x67a   :  { %v774_v63 = vpop.permute.xlu0 %773  ;;  %v778_v5 = vpop.permute.xlu1 %777 }
 0x67b   :  { %3220 = vmatpush1.bf16.msra.mxu0 %v3219_v32  ;;  %v776_v3 = vmul.f32 %v3729_v43, %v774_v63  ;;  %v781_v11 = vmul.f32 %v3740_v49, %v778_v5 }
 0x67c   :  { %3221 = vmatprep.subr.bf16.mxu0 %v3554_v1 }
 0x67d   :  { %v3225_v8 = vpack.c.bf16 %v776_v3, %v775_v7 }
 0x67e   :  { %v780_v6 = vpop.permute.xlu0 %779  ;;  %v784_v12 = vpop.permute.xlu1 %783 }
 0x67f   :  { %3223 = vmatpush1.bf16.msra.mxu0 %v3222_v2  ;;  %v782_v9 = vmul.f32 %v3740_v49, %v780_v6  ;;  %v787_v17 = vmul.f32 %v3748_v53, %v784_v12 }
 0x680   :  { %3224 = vmatprep.subr.bf16.mxu0 %v3554_v1 }
 0x681   :  { %v3228_v13 = vpack.c.bf16 %v782_v9, %v781_v11 }
 0x682   :  { %v786_v10 = vpop.permute.xlu0 %785 }
 0x683   :  { %3226 = vmatpush1.bf16.msra.mxu0 %v3225_v8  ;;  %v788_v16 = vmul.f32 %v3748_v53, %v786_v10 }
 0x684   :  { %3227 = vmatprep.subr.bf16.mxu0 %v3554_v1 }
 0x685   :  { %v3231_v18 = vpack.c.bf16 %v788_v16, %v787_v17 }
 0x687   :  { %3229 = vmatpush1.bf16.msra.mxu0 %v3228_v13 }
 0x688   :  { %3230 = vmatprep.subr.bf16.mxu0 %v3554_v1 }
 0x68b   :  { %3232 = vmatpush1.bf16.msra.mxu0 %v3231_v18  ;;  %v2922_v18 = vld [vmem:[%s4889_s2 + $0xa0] sm:$0xff] }
 0x68c   :  { %3260 = vmatprep.subr.bf16.mxu0 %v3554_v1 }
 0x68e   :  { %870 = vmatmul.mubr.f32.vlgmr.msra.gmra.mrb[8].mxu0 %v2914_v19 }
 0x68f   :  { %2921 = vmatprep.mubr.msk.f32.mxu0 %vm194_vm0, %v2917_v21  ;;  %v792_v23 = vpop.permute.xlu1 %791 }
 0x692   :  { %875 = vmatmul.mubr.f32.gmra.mrb[10].mxu0 %v2916_v22 }
 0x693   :  { %v797_v29 = vpop.permute.xlu0 %796 }
 0x761   :  { %v871_v24 = vpop.f32.mrb[8].mxu0 }
 0x762   :  { %v872_v25 = vadd.f32 %v871_v24, %v792_v23  ;;  %v873_v26 = vpop.f32.mrb[9].mxu0 }
 0x764   :  { %v880_v27 = vmax.f32 %v872_v25, 0.0 }
 0x765   :  { %v876_v30 = vpop.f32.mrb[10].mxu0 }
 0x766   :  { %v877_v31 = vadd.f32 %v876_v30, %v797_v29  ;;  %v878_v32 = vpop.f32.mrb[11].mxu0  ;;  %890 = vrot.lane.b32.xlu1 %v880_v27, %s3555_s15  ;;  %v914_v34 = vmul.f32 %v4023_v33, %v880_v27 }
 0x768   :  { %v881_v4 = vmax.f32 %v877_v31, 0.0 }
 0x76a   :  { %892 = vrot.lane.b32.xlu0 %v881_v4, %s3555_s15  ;;  %896 = vrot.lane.b32.xlu1 %v880_v27, %s3553_s29  ;;  %v915_v35 = vmul.f32 %v4023_v33, %v881_v4 }
 0x76c   :  { %v3246_v36 = vpack.c.bf16 %v915_v35, %v914_v34  ;;  %v2931_v34 = vld [vmem:[%s4889_s2 + $0xc8] sm:$0xff]  ;;  %v2934_v35 = vld [vmem:[%s4890_s3 + $0x60] sm:$0xff] }
 0x76d   :  { %2936 = vmatprep.mubr.msk.f32.mxu0 %vm194_vm0, %v2931_v34 }
 0x76e   :  { %898 = vrot.lane.b32.xlu0 %v881_v4, %s3553_s29  ;;  %902 = vrot.lane.b32.xlu1 %v880_v27, %s3556_s19 }
 0x772   :  { %904 = vrot.lane.b32.xlu0 %v881_v4, %s3556_s19  ;;  %908 = vrot.lane.b32.xlu1 %v880_v27, %s3557_s0 }
 0x776   :  { %910 = vrot.lane.b32.xlu0 %v881_v4, %s3557_s0  ;;  %916 = vrot.lane.b32.xlu1 %v880_v27, %s3558_s20 }
 0x77a   :  { %918 = vrot.lane.b32.xlu0 %v881_v4, %s3558_s20  ;;  %922 = vrot.lane.b32.xlu1 %v880_v27, %s3559_s21 }
 0x77e   :  { %924 = vrot.lane.b32.xlu0 %v881_v4, %s3559_s21  ;;  %928 = vrot.lane.b32.xlu1 %v880_v27, %s3560_s22 }
 0x782   :  { %930 = vrot.lane.b32.xlu0 %v881_v4, %s3560_s22  ;;  %934 = vrot.lane.b32.xlu1 %v880_v27, %s3561_s25 }
 0x786   :  { %936 = vrot.lane.b32.xlu0 %v881_v4, %s3561_s25  ;;  %942 = vperm.xlu1 %3484, %v2926_v39  }
 0x78a   :  { %947 = vperm.xlu0 %3483, %v2927_v40  }
 0x7d8   :  { %v891_v41 = vpop.permute.xlu1 %890 }
 0x7d9   :  { %v894_v45 = vmul.f32 %v3690_v14, %v891_v41  ;;  %v4116_v41 = vld [vmem:[%s4888_s1] ss:$0 sm:$0xff] }
 0x7dc   :  { %v893_v42 = vpop.permute.xlu0 %892  ;;  %v897_v44 = vpop.permute.xlu1 %896 }
 0x7dd   :  { %v895_v46 = vmul.f32 %v3690_v14, %v893_v42  ;;  %v900_v51 = vmul.f32 %v3695_v15, %v897_v44 }
 0x7df   :  { %v3234_v47 = vpack.c.bf16 %v895_v46, %v894_v45 }
 0x7e0   :  { %v899_v48 = vpop.permute.xlu0 %898  ;;  %v903_v50 = vpop.permute.xlu1 %902 }
 0x7e1   :  { %v901_v52 = vmul.f32 %v3695_v15, %v899_v48  ;;  %3235 = vmatpush1.bf16.msra.mxu1 %v3234_v47  ;;  %v906_v57 = vmul.f32 %v3702_v20, %v903_v50  ;;  %v4123_v48 = vld [vmem:[%s4888_s1 + $0x1] ss:$0 sm:$0xff] }
 0x7e2   :  { %3236 = vmatprep.subr.bf16.mxu1 %v3554_v1 }
 0x7e3   :  { %v3237_v54 = vpack.c.bf16 %v901_v52, %v900_v51 }
 0x7e4   :  { %v905_v55 = vpop.permute.xlu0 %904  ;;  %v909_v56 = vpop.permute.xlu1 %908 }
 0x7e5   :  { %v907_v58 = vmul.f32 %v3702_v20, %v905_v55  ;;  %3238 = vmatpush1.bf16.msra.mxu1 %v3237_v54  ;;  %v912_v61 = vmul.f32 %v3712_v28, %v909_v56  ;;  %v4131_v56 = vld [vmem:[%s4888_s1 + $0x2] ss:$0 sm:$0xff] }
 0x7e6   :  { %3239 = vmatprep.subr.bf16.mxu1 %v3554_v1 }
 0x7e7   :  { %v3240_v14 = vpack.c.bf16 %v907_v58, %v906_v57 }
 0x7e8   :  { %v911_v59 = vpop.permute.xlu0 %910  ;;  %v917_v60 = vpop.permute.xlu1 %916 }
 0x7e9   :  { %v913_v15 = vmul.f32 %v3712_v28, %v911_v59  ;;  %3241 = vmatpush1.bf16.msra.mxu1 %v3240_v14  ;;  %v920_v3 = vmul.f32 %v3721_v38, %v917_v60 }
 0x7ea   :  { %3242 = vmatprep.subr.bf16.mxu1 %v3554_v1 }
 0x7eb   :  { %v3243_v62 = vpack.c.bf16 %v913_v15, %v912_v61  ;;  %v4139_v61 = vld [vmem:[%s4888_s1 + $0x3] ss:$0 sm:$0xff] }
 0x7ec   :  { %v919_v63 = vpop.permute.xlu0 %918  ;;  %v923_v0 = vpop.permute.xlu1 %922 }
 0x7ed   :  { %3244 = vmatpush1.bf16.msra.mxu1 %v3243_v62  ;;  %v921_v20 = vmul.f32 %v3721_v38, %v919_v63  ;;  %v926_v8 = vmul.f32 %v3729_v43, %v923_v0 }
 0x7ee   :  { %3245 = vmatprep.subr.bf16.mxu1 %v3554_v1 }
 0x7ef   :  { %v3249_v5 = vpack.c.bf16 %v921_v20, %v920_v3 }
 0x7f0   :  { %v925_v2 = vpop.permute.xlu0 %924  ;;  %v929_v6 = vpop.permute.xlu1 %928 }
 0x7f1   :  { %3247 = vmatpush1.bf16.msra.mxu1 %v3246_v36  ;;  %v927_v28 = vmul.f32 %v3729_v43, %v925_v2  ;;  %v932_v12 = vmul.f32 %v3740_v49, %v929_v6  ;;  %v2935_v36 = vld [vmem:[%s4890_s3 + $0x68] sm:$0xff]  ;;  %v4148_v2 = vld [vmem:[%s4888_s1 + $0x5] ss:$0 sm:$0xff] }
 0x7f2   :  { %3248 = vmatprep.subr.bf16.mxu1 %v3554_v1 }
 0x7f3   :  { %v3252_v9 = vpack.c.bf16 %v927_v28, %v926_v8 }
 0x7f4   :  { %v931_v7 = vpop.permute.xlu0 %930  ;;  %v935_v38 = vpop.permute.xlu1 %934 }
 0x7f5   :  { %3250 = vmatpush1.bf16.msra.mxu1 %v3249_v5  ;;  %v933_v10 = vmul.f32 %v3740_v49, %v931_v7  ;;  %v938_v17 = vmul.f32 %v3748_v53, %v935_v38  ;;  %v2925_v49 = vld [vmem:[%s4889_s2 + $0xb8] sm:$0xff]  ;;  %v4156_v7 = vld [vmem:[%s4888_s1 + $0x6] ss:$0 sm:$0xff]  ;;  %v4164_v38 = vld [vmem:[%s4888_s1 + $0x7] ss:$0 sm:$0xff] }
 0x7f6   :  { %3251 = vmatprep.subr.bf16.mxu1 %v3554_v1 }
 0x7f7   :  { %v3255_v13 = vpack.c.bf16 %v933_v10, %v932_v12 }
 0x7f8   :  { %v937_v11 = vpop.permute.xlu0 %936 }
 0x7f9   :  { %3253 = vmatpush1.bf16.msra.mxu1 %v3252_v9  ;;  %v939_v16 = vmul.f32 %v3748_v53, %v937_v11  ;;  %v2924_v53 = vld [vmem:[%s4889_s2 + $0xb0] sm:$0xff] }
 0x7fa   :  { %3254 = vmatprep.subr.bf16.mxu1 %v3554_v1 }
 0x7fb   :  { %v3258_v43 = vpack.c.bf16 %v939_v16, %v938_v17 }
 0x7fd   :  { %3256 = vmatpush1.bf16.msra.mxu1 %v3255_v13 }
 0x7fe   :  { %3257 = vmatprep.subr.bf16.mxu1 %v3554_v1 }
 0x801   :  { %3259 = vmatpush1.bf16.msra.mxu1 %v3258_v43 }
 0x802   :  { %3287 = vmatprep.subr.bf16.mxu1 %v3554_v1 }
 0x804   :  { %1021 = vmatmul.mubr.f32.vlgmr.msra.gmra.mrb[8].mxu1 %v2922_v18 }
 0x805   :  { %2929 = vmatprep.mubr.msk.f32.mxu1 %vm194_vm0, %v2925_v49  ;;  %v943_v19 = vpop.permute.xlu1 %942  ;;  %v4172_v49 = vld [vmem:[%s4888_s1 + $0x8] ss:$0 sm:$0xff] }
 0x808   :  { %1026 = vmatmul.mubr.f32.gmra.mrb[10].mxu1 %v2924_v53 }
 0x809   :  { %v948_v25 = vpop.permute.xlu0 %947 }
 0x8d7   :  { %v1022_v21 = vpop.f32.mrb[8].mxu1 }
 0x8d8   :  { %v1023_v22 = vadd.f32 %v1022_v21, %v943_v19  ;;  %v1024_v23 = vpop.f32.mrb[9].mxu1 }
 0x8d9   :  { %v2933_v23 = vld [vmem:[%s4889_s2 + $0xd8] sm:$0xff] }
 0x8da   :  { %v1031_v24 = vmax.f32 %v1023_v22, 0.0  ;;  %v2930_v22 = vld [vmem:[%s4889_s2 + $0xc0] sm:$0xff] }
 0x8db   :  { %v1027_v26 = vpop.f32.mrb[10].mxu1 }
 0x8dc   :  { %v1028_v27 = vadd.f32 %v1027_v26, %v948_v25  ;;  %v1029_v29 = vpop.f32.mrb[11].mxu1  ;;  %1041 = vrot.lane.b32.xlu1 %v1031_v24, %s3555_s15  ;;  %v1065_v31 = vmul.f32 %v4023_v33, %v1031_v24 }
 0x8de   :  { %v1032_v30 = vmax.f32 %v1028_v27, 0.0 }
 0x8e0   :  { %1043 = vrot.lane.b32.xlu0 %v1032_v30, %s3555_s15  ;;  %1047 = vrot.lane.b32.xlu1 %v1031_v24, %s3553_s29  ;;  %v1066_v32 = vmul.f32 %v4023_v33, %v1032_v30 }
 0x8e2   :  { %v3273_v4 = vpack.c.bf16 %v1066_v32, %v1065_v31 }
 0x8e4   :  { %1049 = vrot.lane.b32.xlu0 %v1032_v30, %s3553_s29  ;;  %1053 = vrot.lane.b32.xlu1 %v1031_v24, %s3556_s19 }
 0x8e8   :  { %1055 = vrot.lane.b32.xlu0 %v1032_v30, %s3556_s19  ;;  %1059 = vrot.lane.b32.xlu1 %v1031_v24, %s3557_s0 }
 0x8ec   :  { %1061 = vrot.lane.b32.xlu0 %v1032_v30, %s3557_s0  ;;  %1067 = vrot.lane.b32.xlu1 %v1031_v24, %s3558_s20 }
 0x8f0   :  { %1069 = vrot.lane.b32.xlu0 %v1032_v30, %s3558_s20  ;;  %1073 = vrot.lane.b32.xlu1 %v1031_v24, %s3559_s21 }
 0x8f4   :  { %1075 = vrot.lane.b32.xlu0 %v1032_v30, %s3559_s21  ;;  %1079 = vrot.lane.b32.xlu1 %v1031_v24, %s3560_s22 }
 0x8f8   :  { %1081 = vrot.lane.b32.xlu0 %v1032_v30, %s3560_s22  ;;  %1085 = vrot.lane.b32.xlu1 %v1031_v24, %s3561_s25  ;;  %v2932_v24 = vld [vmem:[%s4889_s2 + $0xd0] sm:$0xff] }
 0x8fc   :  { %1087 = vrot.lane.b32.xlu0 %v1032_v30, %s3561_s25  ;;  %1093 = vperm.xlu1 %3484, %v2934_v35  }
 0x900   :  { %1098 = vperm.xlu0 %3483, %v2935_v36  }
 0x94e   :  { %v1042_v37 = vpop.permute.xlu1 %1041 }
 0x94f   :  { %v1045_v42 = vmul.f32 %v4116_v41, %v1042_v37 }
 0x952   :  { %v1044_v39 = vpop.permute.xlu0 %1043  ;;  %v1048_v40 = vpop.permute.xlu1 %1047 }
 0x953   :  { %v1046_v44 = vmul.f32 %v4116_v41, %v1044_v39  ;;  %v1051_v50 = vmul.f32 %v4123_v48, %v1048_v40  ;;  %v2939_v40 = vld [vmem:[%s4889_s2 + $0xe8] sm:$0xff] }
 0x954   :  { %2944 = vmatprep.mubr.msk.f32.mxu1 %vm194_vm0, %v2939_v40 }
 0x955   :  { %v3261_v45 = vpack.c.bf16 %v1046_v44, %v1045_v42  ;;  %v2942_v42 = vld [vmem:[%s4890_s3 + $0x70] sm:$0xff]  ;;  %v2943_v44 = vld [vmem:[%s4890_s3 + $0x78] sm:$0xff] }
 0x956   :  { %v1050_v46 = vpop.permute.xlu0 %1049  ;;  %v1054_v47 = vpop.permute.xlu1 %1053 }
 0x957   :  { %v1052_v51 = vmul.f32 %v4123_v48, %v1050_v46  ;;  %3262 = vmatpush1.bf16.msra.mxu0 %v3261_v45  ;;  %v1057_v57 = vmul.f32 %v4131_v56, %v1054_v47 }
 0x958   :  { %3263 = vmatprep.subr.bf16.mxu0 %v3554_v1 }
 0x959   :  { %v3264_v52 = vpack.c.bf16 %v1052_v51, %v1051_v50 }
 0x95a   :  { %v1056_v54 = vpop.permute.xlu0 %1055  ;;  %v1060_v55 = vpop.permute.xlu1 %1059 }
 0x95b   :  { %v1058_v58 = vmul.f32 %v4131_v56, %v1056_v54  ;;  %3265 = vmatpush1.bf16.msra.mxu0 %v3264_v52  ;;  %v1063_v15 = vmul.f32 %v4139_v61, %v1060_v55 }
 0x95c   :  { %3266 = vmatprep.subr.bf16.mxu0 %v3554_v1 }
 0x95d   :  { %v3267_v14 = vpack.c.bf16 %v1058_v58, %v1057_v57 }
 0x95e   :  { %v1062_v59 = vpop.permute.xlu0 %1061  ;;  %v1068_v60 = vpop.permute.xlu1 %1067 }
 0x95f   :  { %v1064_v62 = vmul.f32 %v4139_v61, %v1062_v59  ;;  %3268 = vmatpush1.bf16.msra.mxu0 %v3267_v14  ;;  %v1071_v28 = vmul.f32 %v4148_v2, %v1068_v60 }
 0x960   :  { %3269 = vmatprep.subr.bf16.mxu0 %v3554_v1 }
 0x961   :  { %v3270_v63 = vpack.c.bf16 %v1064_v62, %v1063_v15 }
 0x962   :  { %v1070_v0 = vpop.permute.xlu0 %1069  ;;  %v1074_v20 = vpop.permute.xlu1 %1073 }
 0x963   :  { %3271 = vmatpush1.bf16.msra.mxu0 %v3270_v63  ;;  %v1072_v3 = vmul.f32 %v4148_v2, %v1070_v0  ;;  %v1077_v11 = vmul.f32 %v4156_v7, %v1074_v20 }
 0x964   :  { %3272 = vmatprep.subr.bf16.mxu0 %v3554_v1 }
 0x965   :  { %v3276_v6 = vpack.c.bf16 %v1072_v3, %v1071_v28 }
 0x966   :  { %v1076_v5 = vpop.permute.xlu0 %1075  ;;  %v1080_v9 = vpop.permute.xlu1 %1079 }
 0x967   :  { %3274 = vmatpush1.bf16.msra.mxu0 %v3273_v4  ;;  %v1078_v8 = vmul.f32 %v4156_v7, %v1076_v5  ;;  %v1083_v17 = vmul.f32 %v4164_v38, %v1080_v9 }
 0x968   :  { %3275 = vmatprep.subr.bf16.mxu0 %v3554_v1 }
 0x969   :  { %v3279_v12 = vpack.c.bf16 %v1078_v8, %v1077_v11 }
 0x96a   :  { %v1082_v10 = vpop.permute.xlu0 %1081  ;;  %v1086_v43 = vpop.permute.xlu1 %1085 }
 0x96b   :  { %3277 = vmatpush1.bf16.msra.mxu0 %v3276_v6  ;;  %v1084_v13 = vmul.f32 %v4164_v38, %v1082_v10  ;;  %v1089_v19 = vmul.f32 %v4172_v49, %v1086_v43 }
 0x96c   :  { %3278 = vmatprep.subr.bf16.mxu0 %v3554_v1 }
 0x96d   :  { %v3282_v18 = vpack.c.bf16 %v1084_v13, %v1083_v17 }
 0x96e   :  { %v1088_v16 = vpop.permute.xlu0 %1087 }
 0x96f   :  { %3280 = vmatpush1.bf16.msra.mxu0 %v3279_v12  ;;  %v1090_v53 = vmul.f32 %v4172_v49, %v1088_v16 }
 0x970   :  { %3281 = vmatprep.subr.bf16.mxu0 %v3554_v1 }
 0x971   :  { %v3285_v21 = vpack.c.bf16 %v1090_v53, %v1089_v19 }
 0x973   :  { %3283 = vmatpush1.bf16.msra.mxu0 %v3282_v18 }
 0x974   :  { %3284 = vmatprep.subr.bf16.mxu0 %v3554_v1 }
 0x977   :  { %3286 = vmatpush1.bf16.msra.mxu0 %v3285_v21 }
 0x978   :  { %3314 = vmatprep.subr.bf16.mxu0 %v3554_v1 }
 0x97a   :  { %1172 = vmatmul.mubr.f32.vlgmr.msra.gmra.mrb[12].mxu0 %v2930_v22 }
 0x97b   :  { %2937 = vmatprep.mubr.msk.f32.mxu0 %vm194_vm0, %v2933_v23  ;;  %v1094_v25 = vpop.permute.xlu1 %1093 }
 0x97e   :  { %1177 = vmatmul.mubr.f32.gmra.mrb[14].mxu0 %v2932_v24 }
 0x97f   :  { %v1099_v31 = vpop.permute.xlu0 %1098 }
 0xa4d   :  { %v1173_v26 = vpop.f32.mrb[12].mxu0 }
 0xa4e   :  { %v1174_v27 = vadd.f32 %v1173_v26, %v1094_v25  ;;  %v1175_v29 = vpop.f32.mrb[13].mxu0 }
 0xa4f   :  { %v2941_v29 = vld [vmem:[%s4889_s2 + $0xf8] sm:$0xff] }
 0xa50   :  { %v1182_v30 = vmax.f32 %v1174_v27, 0.0  ;;  %v2938_v27 = vld [vmem:[%s4889_s2 + $0xe0] sm:$0xff] }
 0xa51   :  { %v1178_v32 = vpop.f32.mrb[14].mxu0 }
 0xa52   :  { %v1179_v4 = vadd.f32 %v1178_v32, %v1099_v31  ;;  %v1180_v34 = vpop.f32.mrb[15].mxu0  ;;  %1192 = vrot.lane.b32.xlu1 %v1182_v30, %s3555_s15  ;;  %v1216_v36 = vmul.f32 %v4023_v33, %v1182_v30 }
 0xa54   :  { %v1183_v35 = vmax.f32 %v1179_v4, 0.0 }
 0xa56   :  { %1194 = vrot.lane.b32.xlu0 %v1183_v35, %s3555_s15  ;;  %1198 = vrot.lane.b32.xlu1 %v1182_v30, %s3553_s29  ;;  %v1217_v37 = vmul.f32 %v4023_v33, %v1183_v35 }
 0xa58   :  { %v3300_v39 = vpack.c.bf16 %v1217_v37, %v1216_v36 }
 0xa5a   :  { %1200 = vrot.lane.b32.xlu0 %v1183_v35, %s3553_s29  ;;  %1204 = vrot.lane.b32.xlu1 %v1182_v30, %s3556_s19 }
 0xa5e   :  { %1206 = vrot.lane.b32.xlu0 %v1183_v35, %s3556_s19  ;;  %1210 = vrot.lane.b32.xlu1 %v1182_v30, %s3557_s0 }
 0xa62   :  { %1212 = vrot.lane.b32.xlu0 %v1183_v35, %s3557_s0  ;;  %1218 = vrot.lane.b32.xlu1 %v1182_v30, %s3558_s20 }
 0xa66   :  { %1220 = vrot.lane.b32.xlu0 %v1183_v35, %s3558_s20  ;;  %1224 = vrot.lane.b32.xlu1 %v1182_v30, %s3559_s21 }
 0xa6a   :  { %1226 = vrot.lane.b32.xlu0 %v1183_v35, %s3559_s21  ;;  %1230 = vrot.lane.b32.xlu1 %v1182_v30, %s3560_s22 }
 0xa6e   :  { %1232 = vrot.lane.b32.xlu0 %v1183_v35, %s3560_s22  ;;  %1236 = vrot.lane.b32.xlu1 %v1182_v30, %s3561_s25  ;;  %v2940_v30 = vld [vmem:[%s4889_s2 + $0xf0] sm:$0xff] }
 0xa72   :  { %1238 = vrot.lane.b32.xlu0 %v1183_v35, %s3561_s25  ;;  %1244 = vperm.xlu1 %3484, %v2942_v42  }
 0xa76   :  { %1249 = vperm.xlu0 %3483, %v2943_v44  }
 0xac4   :  { %v1193_v45 = vpop.permute.xlu1 %1192 }
 0xac5   :  { %v1196_v50 = vmul.f32 %v4116_v41, %v1193_v45 }
 0xac8   :  { %v1195_v46 = vpop.permute.xlu0 %1194  ;;  %v1199_v47 = vpop.permute.xlu1 %1198 }
 0xac9   :  { %v1197_v51 = vmul.f32 %v4116_v41, %v1195_v46  ;;  %v1202_v57 = vmul.f32 %v4123_v48, %v1199_v47  ;;  %v2947_v47 = vld [vmem:[%s4889_s2 + $0x108] sm:$0xff] }
 0xaca   :  { %2952 = vmatprep.mubr.msk.f32.mxu0 %vm194_vm0, %v2947_v47 }
 0xacb   :  { %v3288_v52 = vpack.c.bf16 %v1197_v51, %v1196_v50  ;;  %v2950_v50 = vld [vmem:[%s4890_s3 + $0x80] sm:$0xff]  ;;  %v2951_v51 = vld [vmem:[%s4890_s3 + $0x88] sm:$0xff] }
 0xacc   :  { %v1201_v54 = vpop.permute.xlu0 %1200  ;;  %v1205_v55 = vpop.permute.xlu1 %1204 }
 0xacd   :  { %v1203_v58 = vmul.f32 %v4123_v48, %v1201_v54  ;;  %3289 = vmatpush1.bf16.msra.mxu1 %v3288_v52  ;;  %v1208_v15 = vmul.f32 %v4131_v56, %v1205_v55 }
 0xace   :  { %3290 = vmatprep.subr.bf16.mxu1 %v3554_v1 }
 0xacf   :  { %v3291_v14 = vpack.c.bf16 %v1203_v58, %v1202_v57 }
 0xad0   :  { %v1207_v59 = vpop.permute.xlu0 %1206  ;;  %v1211_v60 = vpop.permute.xlu1 %1210 }
 0xad1   :  { %v1209_v62 = vmul.f32 %v4131_v56, %v1207_v59  ;;  %3292 = vmatpush1.bf16.msra.mxu1 %v3291_v14  ;;  %v1214_v3 = vmul.f32 %v4139_v61, %v1211_v60 }
 0xad2   :  { %3293 = vmatprep.subr.bf16.mxu1 %v3554_v1 }
 0xad3   :  { %v3294_v63 = vpack.c.bf16 %v1209_v62, %v1208_v15 }
 0xad4   :  { %v1213_v0 = vpop.permute.xlu0 %1212  ;;  %v1219_v20 = vpop.permute.xlu1 %1218 }
 0xad5   :  { %v1215_v5 = vmul.f32 %v4139_v61, %v1213_v0  ;;  %3295 = vmatpush1.bf16.msra.mxu1 %v3294_v63  ;;  %v1222_v11 = vmul.f32 %v4148_v2, %v1219_v20 }
 0xad6   :  { %3296 = vmatprep.subr.bf16.mxu1 %v3554_v1 }
 0xad7   :  { %v3297_v28 = vpack.c.bf16 %v1215_v5, %v1214_v3 }
 0xad8   :  { %v1221_v6 = vpop.permute.xlu0 %1220  ;;  %v1225_v8 = vpop.permute.xlu1 %1224 }
 0xad9   :  { %3298 = vmatpush1.bf16.msra.mxu1 %v3297_v28  ;;  %v1223_v9 = vmul.f32 %v4148_v2, %v1221_v6  ;;  %v1228_v43 = vmul.f32 %v4156_v7, %v1225_v8 }
 0xada   :  { %3299 = vmatprep.subr.bf16.mxu1 %v3554_v1 }
 0xadb   :  { %v3303_v12 = vpack.c.bf16 %v1223_v9, %v1222_v11 }
 0xadc   :  { %v1227_v10 = vpop.permute.xlu0 %1226  ;;  %v1231_v16 = vpop.permute.xlu1 %1230 }
 0xadd   :  { %3301 = vmatpush1.bf16.msra.mxu1 %v3300_v39  ;;  %v1229_v13 = vmul.f32 %v4156_v7, %v1227_v10  ;;  %v1234_v21 = vmul.f32 %v4164_v38, %v1231_v16 }
 0xade   :  { %3302 = vmatprep.subr.bf16.mxu1 %v3554_v1 }
 0xadf   :  { %v3306_v18 = vpack.c.bf16 %v1229_v13, %v1228_v43 }
 0xae0   :  { %v1233_v17 = vpop.permute.xlu0 %1232  ;;  %v1237_v22 = vpop.permute.xlu1 %1236 }
 0xae1   :  { %3304 = vmatpush1.bf16.msra.mxu1 %v3303_v12  ;;  %v1235_v53 = vmul.f32 %v4164_v38, %v1233_v17  ;;  %v1240_v25 = vmul.f32 %v4172_v49, %v1237_v22 }
 0xae2   :  { %3305 = vmatprep.subr.bf16.mxu1 %v3554_v1 }
 0xae3   :  { %v3309_v23 = vpack.c.bf16 %v1235_v53, %v1234_v21 }
 0xae4   :  { %v1239_v19 = vpop.permute.xlu0 %1238 }
 0xae5   :  { %3307 = vmatpush1.bf16.msra.mxu1 %v3306_v18  ;;  %v1241_v24 = vmul.f32 %v4172_v49, %v1239_v19 }
 0xae6   :  { %3308 = vmatprep.subr.bf16.mxu1 %v3554_v1 }
 0xae7   :  { %v3312_v26 = vpack.c.bf16 %v1241_v24, %v1240_v25 }
 0xae9   :  { %3310 = vmatpush1.bf16.msra.mxu1 %v3309_v23 }
 0xaea   :  { %3311 = vmatprep.subr.bf16.mxu1 %v3554_v1 }
 0xaed   :  { %3313 = vmatpush1.bf16.msra.mxu1 %v3312_v26 }
 0xaee   :  { %3341 = vmatprep.subr.bf16.mxu1 %v3554_v1 }
 0xaf0   :  { %1323 = vmatmul.mubr.f32.vlgmr.msra.gmra.mrb[12].mxu1 %v2938_v27 }
 0xaf1   :  { %2945 = vmatprep.mubr.msk.f32.mxu1 %vm194_vm0, %v2941_v29  ;;  %v1245_v31 = vpop.permute.xlu1 %1244 }
 0xaf4   :  { %1328 = vmatmul.mubr.f32.gmra.mrb[14].mxu1 %v2940_v30 }
 0xaf5   :  { %v1250_v36 = vpop.permute.xlu0 %1249 }
 0xbc3   :  { %v1324_v32 = vpop.f32.mrb[12].mxu1 }
 0xbc4   :  { %v1325_v4 = vadd.f32 %v1324_v32, %v1245_v31  ;;  %v1326_v34 = vpop.f32.mrb[13].mxu1 }
 0xbc5   :  { %v2949_v34 = vld [vmem:[%s4889_s2 + $0x118] sm:$0xff] }
 0xbc6   :  { %v1333_v35 = vmax.f32 %v1325_v4, 0.0  ;;  %v2946_v4 = vld [vmem:[%s4889_s2 + $0x100] sm:$0xff] }
 0xbc7   :  { %v1329_v37 = vpop.f32.mrb[14].mxu1 }
 0xbc8   :  { %v1330_v39 = vadd.f32 %v1329_v37, %v1250_v36  ;;  %v1331_v40 = vpop.f32.mrb[15].mxu1  ;;  %1343 = vrot.lane.b32.xlu1 %v1333_v35, %s3555_s15  ;;  %v1367_v44 = vmul.f32 %v4023_v33, %v1333_v35 }
 0xbca   :  { %v1334_v42 = vmax.f32 %v1330_v39, 0.0 }
 0xbcc   :  { %1345 = vrot.lane.b32.xlu0 %v1334_v42, %s3555_s15  ;;  %1349 = vrot.lane.b32.xlu1 %v1333_v35, %s3553_s29  ;;  %v1368_v45 = vmul.f32 %v4023_v33, %v1334_v42 }
 0xbce   :  { %v3327_v46 = vpack.c.bf16 %v1368_v45, %v1367_v44 }
 0xbd0   :  { %1351 = vrot.lane.b32.xlu0 %v1334_v42, %s3553_s29  ;;  %1355 = vrot.lane.b32.xlu1 %v1333_v35, %s3556_s19 }
 0xbd4   :  { %1357 = vrot.lane.b32.xlu0 %v1334_v42, %s3556_s19  ;;  %1361 = vrot.lane.b32.xlu1 %v1333_v35, %s3557_s0 }
 0xbd8   :  { %1363 = vrot.lane.b32.xlu0 %v1334_v42, %s3557_s0  ;;  %1369 = vrot.lane.b32.xlu1 %v1333_v35, %s3558_s20 }
 0xbdc   :  { %1371 = vrot.lane.b32.xlu0 %v1334_v42, %s3558_s20  ;;  %1375 = vrot.lane.b32.xlu1 %v1333_v35, %s3559_s21 }
 0xbe0   :  { %1377 = vrot.lane.b32.xlu0 %v1334_v42, %s3559_s21  ;;  %1381 = vrot.lane.b32.xlu1 %v1333_v35, %s3560_s22 }
 0xbe4   :  { %1383 = vrot.lane.b32.xlu0 %v1334_v42, %s3560_s22  ;;  %1387 = vrot.lane.b32.xlu1 %v1333_v35, %s3561_s25  ;;  %v2948_v35 = vld [vmem:[%s4889_s2 + $0x110] sm:$0xff] }
 0xbe8   :  { %1389 = vrot.lane.b32.xlu0 %v1334_v42, %s3561_s25  ;;  %1395 = vperm.xlu1 %3484, %v2950_v50  }
 0xbec   :  { %1400 = vperm.xlu0 %3483, %v2951_v51  }
 0xc3a   :  { %v1344_v52 = vpop.permute.xlu1 %1343 }
 0xc3b   :  { %v1347_v57 = vmul.f32 %v4116_v41, %v1344_v52 }
 0xc3e   :  { %v1346_v54 = vpop.permute.xlu0 %1345  ;;  %v1350_v55 = vpop.permute.xlu1 %1349 }
 0xc3f   :  { %v1348_v58 = vmul.f32 %v4116_v41, %v1346_v54  ;;  %v1353_v15 = vmul.f32 %v4123_v48, %v1350_v55  ;;  %v2955_v55 = vld [vmem:[%s4889_s2 + $0x128] sm:$0xff] }
 0xc40   :  { %2960 = vmatprep.mubr.msk.f32.mxu1 %vm194_vm0, %v2955_v55 }
 0xc41   :  { %v3315_v14 = vpack.c.bf16 %v1348_v58, %v1347_v57  ;;  %v2958_v57 = vld [vmem:[%s4890_s3 + $0x90] sm:$0xff]  ;;  %v2959_v58 = vld [vmem:[%s4890_s3 + $0x98] sm:$0xff] }
 0xc42   :  { %v1352_v59 = vpop.permute.xlu0 %1351  ;;  %v1356_v60 = vpop.permute.xlu1 %1355 }
 0xc43   :  { %v1354_v62 = vmul.f32 %v4123_v48, %v1352_v59  ;;  %3316 = vmatpush1.bf16.msra.mxu0 %v3315_v14  ;;  %v1359_v3 = vmul.f32 %v4131_v56, %v1356_v60 }
 0xc44   :  { %3317 = vmatprep.subr.bf16.mxu0 %v3554_v1 }
 0xc45   :  { %v3318_v63 = vpack.c.bf16 %v1354_v62, %v1353_v15 }
 0xc46   :  { %v1358_v0 = vpop.permute.xlu0 %1357  ;;  %v1362_v20 = vpop.permute.xlu1 %1361 }
 0xc47   :  { %v1360_v5 = vmul.f32 %v4131_v56, %v1358_v0  ;;  %3319 = vmatpush1.bf16.msra.mxu0 %v3318_v63  ;;  %v1365_v9 = vmul.f32 %v4139_v61, %v1362_v20 }
 0xc48   :  { %3320 = vmatprep.subr.bf16.mxu0 %v3554_v1 }
 0xc49   :  { %v3321_v28 = vpack.c.bf16 %v1360_v5, %v1359_v3 }
 0xc4a   :  { %v1364_v6 = vpop.permute.xlu0 %1363  ;;  %v1370_v8 = vpop.permute.xlu1 %1369 }
 0xc4b   :  { %v1366_v10 = vmul.f32 %v4139_v61, %v1364_v6  ;;  %3322 = vmatpush1.bf16.msra.mxu0 %v3321_v28  ;;  %v1373_v43 = vmul.f32 %v4148_v2, %v1370_v8 }
 0xc4c   :  { %3323 = vmatprep.subr.bf16.mxu0 %v3554_v1 }
 0xc4d   :  { %v3324_v11 = vpack.c.bf16 %v1366_v10, %v1365_v9 }
 0xc4e   :  { %v1372_v12 = vpop.permute.xlu0 %1371  ;;  %v1376_v13 = vpop.permute.xlu1 %1375 }
 0xc4f   :  { %3325 = vmatpush1.bf16.msra.mxu0 %v3324_v11  ;;  %v1374_v16 = vmul.f32 %v4148_v2, %v1372_v12  ;;  %v1379_v22 = vmul.f32 %v4156_v7, %v1376_v13 }
 0xc50   :  { %3326 = vmatprep.subr.bf16.mxu0 %v3554_v1 }
 0xc51   :  { %v3330_v18 = vpack.c.bf16 %v1374_v16, %v1373_v43 }
 0xc52   :  { %v1378_v17 = vpop.permute.xlu0 %1377  ;;  %v1382_v19 = vpop.permute.xlu1 %1381 }
 0xc53   :  { %3328 = vmatpush1.bf16.msra.mxu0 %v3327_v46  ;;  %v1380_v53 = vmul.f32 %v4156_v7, %v1378_v17  ;;  %v1385_v26 = vmul.f32 %v4164_v38, %v1382_v19 }
 0xc54   :  { %3329 = vmatprep.subr.bf16.mxu0 %v3554_v1 }
 0xc55   :  { %v3333_v23 = vpack.c.bf16 %v1380_v53, %v1379_v22 }
 0xc56   :  { %v1384_v21 = vpop.permute.xlu0 %1383  ;;  %v1388_v27 = vpop.permute.xlu1 %1387 }
 0xc57   :  { %3331 = vmatpush1.bf16.msra.mxu0 %v3330_v18  ;;  %v1386_v24 = vmul.f32 %v4164_v38, %v1384_v21  ;;  %v1391_v31 = vmul.f32 %v4172_v49, %v1388_v27 }
 0xc58   :  { %3332 = vmatprep.subr.bf16.mxu0 %v3554_v1 }
 0xc59   :  { %v3336_v29 = vpack.c.bf16 %v1386_v24, %v1385_v26 }
 0xc5a   :  { %v1390_v25 = vpop.permute.xlu0 %1389 }
 0xc5b   :  { %3334 = vmatpush1.bf16.msra.mxu0 %v3333_v23  ;;  %v1392_v30 = vmul.f32 %v4172_v49, %v1390_v25 }
 0xc5c   :  { %3335 = vmatprep.subr.bf16.mxu0 %v3554_v1 }
 0xc5d   :  { %v3339_v32 = vpack.c.bf16 %v1392_v30, %v1391_v31 }
 0xc5f   :  { %3337 = vmatpush1.bf16.msra.mxu0 %v3336_v29 }
 0xc60   :  { %3338 = vmatprep.subr.bf16.mxu0 %v3554_v1 }
 0xc63   :  { %3340 = vmatpush1.bf16.msra.mxu0 %v3339_v32 }
 0xc64   :  { %3368 = vmatprep.subr.bf16.mxu0 %v3554_v1 }
 0xc66   :  { %1474 = vmatmul.mubr.f32.vlgmr.msra.gmra.mrb[16].mxu0 %v2946_v4 }
 0xc67   :  { %2953 = vmatprep.mubr.msk.f32.mxu0 %vm194_vm0, %v2949_v34  ;;  %v1396_v36 = vpop.permute.xlu1 %1395 }
 0xc6a   :  { %1479 = vmatmul.mubr.f32.gmra.mrb[18].mxu0 %v2948_v35 }
 0xc6b   :  { %v1401_v44 = vpop.permute.xlu0 %1400 }
 0xd39   :  { %v1475_v37 = vpop.f32.mrb[16].mxu0 }
 0xd3a   :  { %v1476_v39 = vadd.f32 %v1475_v37, %v1396_v36  ;;  %v1477_v40 = vpop.f32.mrb[17].mxu0 }
 0xd3b   :  { %v2957_v40 = vld [vmem:[%s4889_s2 + $0x138] sm:$0xff] }
 0xd3c   :  { %v1484_v42 = vmax.f32 %v1476_v39, 0.0  ;;  %v2954_v39 = vld [vmem:[%s4889_s2 + $0x120] sm:$0xff] }
 0xd3d   :  { %v1480_v45 = vpop.f32.mrb[18].mxu0 }
 0xd3e   :  { %v1481_v46 = vadd.f32 %v1480_v45, %v1401_v44  ;;  %v1482_v47 = vpop.f32.mrb[19].mxu0  ;;  %1494 = vrot.lane.b32.xlu1 %v1484_v42, %s3555_s15  ;;  %v1518_v51 = vmul.f32 %v4023_v33, %v1484_v42 }
 0xd40   :  { %v1485_v50 = vmax.f32 %v1481_v46, 0.0 }
 0xd42   :  { %1496 = vrot.lane.b32.xlu0 %v1485_v50, %s3555_s15  ;;  %1500 = vrot.lane.b32.xlu1 %v1484_v42, %s3553_s29  ;;  %v1519_v52 = vmul.f32 %v4023_v33, %v1485_v50 }
 0xd44   :  { %v3354_v54 = vpack.c.bf16 %v1519_v52, %v1518_v51 }
 0xd46   :  { %1502 = vrot.lane.b32.xlu0 %v1485_v50, %s3553_s29  ;;  %1506 = vrot.lane.b32.xlu1 %v1484_v42, %s3556_s19 }
 0xd4a   :  { %1508 = vrot.lane.b32.xlu0 %v1485_v50, %s3556_s19  ;;  %1512 = vrot.lane.b32.xlu1 %v1484_v42, %s3557_s0 }
 0xd4e   :  { %1514 = vrot.lane.b32.xlu0 %v1485_v50, %s3557_s0  ;;  %1520 = vrot.lane.b32.xlu1 %v1484_v42, %s3558_s20 }
 0xd52   :  { %1522 = vrot.lane.b32.xlu0 %v1485_v50, %s3558_s20  ;;  %1526 = vrot.lane.b32.xlu1 %v1484_v42, %s3559_s21 }
 0xd56   :  { %1528 = vrot.lane.b32.xlu0 %v1485_v50, %s3559_s21  ;;  %1532 = vrot.lane.b32.xlu1 %v1484_v42, %s3560_s22 }
 0xd5a   :  { %1534 = vrot.lane.b32.xlu0 %v1485_v50, %s3560_s22  ;;  %1538 = vrot.lane.b32.xlu1 %v1484_v42, %s3561_s25  ;;  %v2956_v42 = vld [vmem:[%s4889_s2 + $0x130] sm:$0xff] }
 0xd5e   :  { %1540 = vrot.lane.b32.xlu0 %v1485_v50, %s3561_s25  ;;  %1546 = vperm.xlu1 %3484, %v2958_v57  }
 0xd62   :  { %1551 = vperm.xlu0 %3483, %v2959_v58  }
 0xdb0   :  { %v1495_v14 = vpop.permute.xlu1 %1494 }
 0xdb1   :  { %v1498_v15 = vmul.f32 %v4116_v41, %v1495_v14 }
 0xdb4   :  { %v1497_v59 = vpop.permute.xlu0 %1496  ;;  %v1501_v60 = vpop.permute.xlu1 %1500 }
 0xdb5   :  { %v1499_v62 = vmul.f32 %v4116_v41, %v1497_v59  ;;  %v1504_v3 = vmul.f32 %v4123_v48, %v1501_v60  ;;  %v2966_v60 = vld [vmem:[%s4890_s3 + $0xa0] sm:$0xff] }
 0xdb7   :  { %v3342_v63 = vpack.c.bf16 %v1499_v62, %v1498_v15  ;;  %v2967_v15 = vld [vmem:[%s4890_s3 + $0xa8] sm:$0xff] }
 0xdb8   :  { %v1503_v0 = vpop.permute.xlu0 %1502  ;;  %v1507_v20 = vpop.permute.xlu1 %1506 }
 0xdb9   :  { %v1505_v5 = vmul.f32 %v4123_v48, %v1503_v0  ;;  %3343 = vmatpush1.bf16.msra.mxu1 %v3342_v63  ;;  %v1510_v9 = vmul.f32 %v4131_v56, %v1507_v20 }
 0xdba   :  { %3344 = vmatprep.subr.bf16.mxu1 %v3554_v1 }
 0xdbb   :  { %v3345_v28 = vpack.c.bf16 %v1505_v5, %v1504_v3 }
 0xdbc   :  { %v1509_v6 = vpop.permute.xlu0 %1508  ;;  %v1513_v8 = vpop.permute.xlu1 %1512 }
 0xdbd   :  { %v1511_v10 = vmul.f32 %v4131_v56, %v1509_v6  ;;  %3346 = vmatpush1.bf16.msra.mxu1 %v3345_v28  ;;  %v1516_v16 = vmul.f32 %v4139_v61, %v1513_v8 }
 0xdbe   :  { %3347 = vmatprep.subr.bf16.mxu1 %v3554_v1 }
 0xdbf   :  { %v3348_v11 = vpack.c.bf16 %v1511_v10, %v1510_v9 }
 0xdc0   :  { %v1515_v12 = vpop.permute.xlu0 %1514  ;;  %v1521_v13 = vpop.permute.xlu1 %1520 }
 0xdc1   :  { %v1517_v17 = vmul.f32 %v4139_v61, %v1515_v12  ;;  %3349 = vmatpush1.bf16.msra.mxu1 %v3348_v11  ;;  %v1524_v22 = vmul.f32 %v4148_v2, %v1521_v13 }
 0xdc2   :  { %3350 = vmatprep.subr.bf16.mxu1 %v3554_v1 }
 0xdc3   :  { %v3351_v43 = vpack.c.bf16 %v1517_v17, %v1516_v16 }
 0xdc4   :  { %v1523_v18 = vpop.permute.xlu0 %1522  ;;  %v1527_v53 = vpop.permute.xlu1 %1526 }
 0xdc5   :  { %3352 = vmatpush1.bf16.msra.mxu1 %v3351_v43  ;;  %v1525_v19 = vmul.f32 %v4148_v2, %v1523_v18  ;;  %v1530_v27 = vmul.f32 %v4156_v7, %v1527_v53 }
 0xdc6   :  { %3353 = vmatprep.subr.bf16.mxu1 %v3554_v1 }
 0xdc7   :  { %v3357_v23 = vpack.c.bf16 %v1525_v19, %v1524_v22 }
 0xdc8   :  { %v1529_v21 = vpop.permute.xlu0 %1528  ;;  %v1533_v25 = vpop.permute.xlu1 %1532 }
 0xdc9   :  { %3355 = vmatpush1.bf16.msra.mxu1 %v3354_v54  ;;  %v1531_v24 = vmul.f32 %v4156_v7, %v1529_v21  ;;  %v1536_v32 = vmul.f32 %v4164_v38, %v1533_v25 }
 0xdca   :  { %3356 = vmatprep.subr.bf16.mxu1 %v3554_v1 }
 0xdcb   :  { %v3360_v29 = vpack.c.bf16 %v1531_v24, %v1530_v27 }
 0xdcc   :  { %v1535_v26 = vpop.permute.xlu0 %1534  ;;  %v1539_v4 = vpop.permute.xlu1 %1538 }
 0xdcd   :  { %3358 = vmatpush1.bf16.msra.mxu1 %v3357_v23  ;;  %v1537_v30 = vmul.f32 %v4164_v38, %v1535_v26  ;;  %v1542_v36 = vmul.f32 %v4172_v49, %v1539_v4 }
 0xdce   :  { %3359 = vmatprep.subr.bf16.mxu1 %v3554_v1 }
 0xdcf   :  { %v3363_v34 = vpack.c.bf16 %v1537_v30, %v1536_v32 }
 0xdd0   :  { %v1541_v31 = vpop.permute.xlu0 %1540 }
 0xdd1   :  { %3361 = vmatpush1.bf16.msra.mxu1 %v3360_v29  ;;  %v1543_v35 = vmul.f32 %v4172_v49, %v1541_v31 }
 0xdd2   :  { %3362 = vmatprep.subr.bf16.mxu1 %v3554_v1 }
 0xdd3   :  { %v3366_v37 = vpack.c.bf16 %v1543_v35, %v1542_v36  ;;  %v2962_v36 = vld [vmem:[%s4889_s2 + $0x140] sm:$0xff] }
 0xdd5   :  { %3364 = vmatpush1.bf16.msra.mxu1 %v3363_v34 }
 0xdd6   :  { %3365 = vmatprep.subr.bf16.mxu1 %v3554_v1 }
 0xdd9   :  { %3367 = vmatpush1.bf16.msra.mxu1 %v3366_v37 }
 0xdda   :  { %3395 = vmatprep.subr.bf16.mxu1 %v3554_v1 }
 0xddc   :  { %1625 = vmatmul.mubr.f32.vlgmr.msra.gmra.mrb[16].mxu1 %v2954_v39 }
 0xddd   :  { %2961 = vmatprep.mubr.msk.f32.mxu1 %vm194_vm0, %v2957_v40  ;;  %v1547_v44 = vpop.permute.xlu1 %1546 }
 0xde0   :  { %1630 = vmatmul.mubr.f32.gmra.mrb[18].mxu1 %v2956_v42 }
 0xde1   :  { %v1552_v51 = vpop.permute.xlu0 %1551 }
 0xeaf   :  { %v1626_v45 = vpop.f32.mrb[16].mxu1 }
 0xeb0   :  { %v1627_v46 = vadd.f32 %v1626_v45, %v1547_v44  ;;  %v1628_v47 = vpop.f32.mrb[17].mxu1 }
 0xeb2   :  { %v1635_v50 = vmax.f32 %v1627_v46, 0.0 }
 0xeb3   :  { %v1631_v52 = vpop.f32.mrb[18].mxu1 }
 0xeb4   :  { %v1632_v54 = vadd.f32 %v1631_v52, %v1552_v51  ;;  %v1633_v55 = vpop.f32.mrb[19].mxu1  ;;  %1645 = vrot.lane.b32.xlu1 %v1635_v50, %s3555_s15  ;;  %v1669_v58 = vmul.f32 %v4023_v33, %v1635_v50  ;;  %v3494_v52 = vld [vmem:[%s4888_s1 + $0x4] ss:$0 sm:$0xff] }
 0xeb6   :  { %v1636_v57 = vmax.f32 %v1632_v54, 0.0 }
 0xeb8   :  { %1647 = vrot.lane.b32.xlu0 %v1636_v57, %s3555_s15  ;;  %1651 = vrot.lane.b32.xlu1 %v1635_v50, %s3553_s29  ;;  %v1670_v14 = vmul.f32 %v4023_v33, %v1636_v57  ;;  %v2963_v33 = vld [vmem:[%s4889_s2 + $0x148] sm:$0xff] }
 0xeb9   :  { %2968 = vmatprep.mubr.msk.f32.mxu0 %vm194_vm0, %v2963_v33  ;;  %v2410_v33 = vld [vmem:[%s4892_s5] sm:$0xff] }
 0xeba   :  { %v3381_v59 = vpack.c.bf16 %v1670_v14, %v1669_v58  ;;  %v2971_v58 = vld [vmem:[%s4889_s2 + $0x168] sm:$0xff]  ;;  %v2974_v14 = vld [vmem:[%s4890_s3 + $0xb0] sm:$0xff] }
 0xebb   :  { %2976 = vmatprep.mubr.msk.f32.mxu1 %vm194_vm0, %v2971_v58  ;;  %v3500_v58 = vld [vmem:[%s4888_s1 + $0x6] ss:$0 sm:$0xff] }
 0xebc   :  { %1653 = vrot.lane.b32.xlu0 %v1636_v57, %s3553_s29  ;;  %1657 = vrot.lane.b32.xlu1 %v1635_v50, %s3556_s19 }
 0xec0   :  { %1659 = vrot.lane.b32.xlu0 %v1636_v57, %s3556_s19  ;;  %1663 = vrot.lane.b32.xlu1 %v1635_v50, %s3557_s0 }
 0xec4   :  { %1665 = vrot.lane.b32.xlu0 %v1636_v57, %s3557_s0  ;;  %1671 = vrot.lane.b32.xlu1 %v1635_v50, %s3558_s20 }
 0xec8   :  { %1673 = vrot.lane.b32.xlu0 %v1636_v57, %s3558_s20  ;;  %1677 = vrot.lane.b32.xlu1 %v1635_v50, %s3559_s21 }
 0xecc   :  { %1679 = vrot.lane.b32.xlu0 %v1636_v57, %s3559_s21  ;;  %1683 = vrot.lane.b32.xlu1 %v1635_v50, %s3560_s22 }
 0xed0   :  { %1685 = vrot.lane.b32.xlu0 %v1636_v57, %s3560_s22  ;;  %1689 = vrot.lane.b32.xlu1 %v1635_v50, %s3561_s25 }
 0xed4   :  { %1691 = vrot.lane.b32.xlu0 %v1636_v57, %s3561_s25  ;;  %1697 = vperm.xlu1 %3484, %v2966_v60   ;;  %v2411_v60 = vld [vmem:[%s4892_s5 + $0x8] sm:$0xff] }
 0xed8   :  { %1702 = vperm.xlu0 %3483, %v2967_v15   ;;  %v2412_v15 = vld [vmem:[%s4892_s5 + $0x10] sm:$0xff] }
 0xf26   :  { %v1646_v62 = vpop.permute.xlu1 %1645 }
 0xf27   :  { %v1649_v20 = vmul.f32 %v4116_v41, %v1646_v62  ;;  %v2413_v62 = vld [vmem:[%s4892_s5 + $0x18] sm:$0xff] }
 0xf2a   :  { %v1648_v63 = vpop.permute.xlu0 %1647  ;;  %v1652_v0 = vpop.permute.xlu1 %1651 }
 0xf2b   :  { %v1650_v3 = vmul.f32 %v4116_v41, %v1648_v63  ;;  %v1655_v8 = vmul.f32 %v4123_v48, %v1652_v0  ;;  %v2414_v63 = vld [vmem:[%s4892_s5 + $0x20] sm:$0xff]  ;;  %v2415_v0 = vld [vmem:[%s4892_s5 + $0x28] sm:$0xff] }
 0xf2d   :  { %v3369_v5 = vpack.c.bf16 %v1650_v3, %v1649_v20  ;;  %v2416_v20 = vld [vmem:[%s4892_s5 + $0x30] sm:$0xff]  ;;  %v2417_v3 = vld [vmem:[%s4892_s5 + $0x38] sm:$0xff] }
 0xf2e   :  { %v1654_v28 = vpop.permute.xlu0 %1653  ;;  %v1658_v6 = vpop.permute.xlu1 %1657 }
 0xf2f   :  { %v1656_v9 = vmul.f32 %v4123_v48, %v1654_v28  ;;  %3370 = vmatpush1.bf16.msra.mxu0 %v3369_v5  ;;  %v1661_v13 = vmul.f32 %v4131_v56, %v1658_v6  ;;  %v2579_v5 = vld [vmem:[%s4894_s7] sm:$0xff]  ;;  %v2580_v28 = vld [vmem:[%s4894_s7 + $0x8] sm:$0xff]  ;;  %v2581_v6 = vld [vmem:[%s4894_s7 + $0x10] sm:$0xff] }
 0xf30   :  { %3371 = vmatprep.subr.bf16.mxu0 %v3554_v1 }
 0xf31   :  { %v3372_v10 = vpack.c.bf16 %v1656_v9, %v1655_v8  ;;  %v2582_v8 = vld [vmem:[%s4894_s7 + $0x18] sm:$0xff]  ;;  %v2765_v9 = vld [vmem:[%s4895_s8] sm:$0xff] }
 0xf32   :  { %v1660_v11 = vpop.permute.xlu0 %1659  ;;  %v1664_v12 = vpop.permute.xlu1 %1663 }
 0xf33   :  { %v1662_v16 = vmul.f32 %v4131_v56, %v1660_v11  ;;  %3373 = vmatpush1.bf16.msra.mxu0 %v3372_v10  ;;  %v1667_v18 = vmul.f32 %v4139_v61, %v1664_v12  ;;  %v2766_v10 = vld [vmem:[%s4895_s8 + $0x8] sm:$0xff]  ;;  %v2583_v11 = vld [vmem:[%s4894_s7 + $0x20] sm:$0xff]  ;;  %v2767_v12 = vld [vmem:[%s4895_s8 + $0x10] sm:$0xff] }
 0xf34   :  { %3374 = vmatprep.subr.bf16.mxu0 %v3554_v1 }
 0xf35   :  { %v3375_v41 = vpack.c.bf16 %v1662_v16, %v1661_v13  ;;  %v2584_v13 = vld [vmem:[%s4894_s7 + $0x28] sm:$0xff]  ;;  %v2768_v16 = vld [vmem:[%s4895_s8 + $0x18] sm:$0xff] }
 0xf36   :  { %v1666_v17 = vpop.permute.xlu0 %1665  ;;  %v1672_v43 = vpop.permute.xlu1 %1671 }
 0xf37   :  { %v1668_v48 = vmul.f32 %v4139_v61, %v1666_v17  ;;  %3376 = vmatpush1.bf16.msra.mxu0 %v3375_v41  ;;  %v1675_v23 = vmul.f32 %v4148_v2, %v1672_v43  ;;  %v2585_v41 = vld [vmem:[%s4894_s7 + $0x30] sm:$0xff]  ;;  %v2769_v17 = vld [vmem:[%s4895_s8 + $0x20] sm:$0xff]  ;;  %v2586_v43 = vld [vmem:[%s4894_s7 + $0x38] sm:$0xff] }
 0xf38   :  { %3377 = vmatprep.subr.bf16.mxu0 %v3554_v1 }
 0xf39   :  { %v3378_v53 = vpack.c.bf16 %v1668_v48, %v1667_v18  ;;  %v2770_v18 = vld [vmem:[%s4895_s8 + $0x28] sm:$0xff]  ;;  %v2771_v48 = vld [vmem:[%s4895_s8 + $0x30] sm:$0xff] }
 0xf3a   :  { %v1674_v19 = vpop.permute.xlu0 %1673  ;;  %v1678_v21 = vpop.permute.xlu1 %1677 }
 0xf3b   :  { %3379 = vmatpush1.bf16.msra.mxu0 %v3378_v53  ;;  %v1676_v56 = vmul.f32 %v4148_v2, %v1674_v19  ;;  %v1681_v27 = vmul.f32 %v4156_v7, %v1678_v21  ;;  %v2772_v53 = vld [vmem:[%s4895_s8 + $0x38] sm:$0xff]  ;;  %v2843_v19 = vld [vmem:[#allocation2] sm:$0x1] }
 0xf3c   :  { %3380 = vmatprep.subr.bf16.mxu0 %v3554_v1 }
 0xf3d   :  { %v3384_v24 = vpack.c.bf16 %v1676_v56, %v1675_v23  ;;  %v3495_v23 = vld [vmem:[%s4888_s1] ss:$0 sm:$0xff] }
 0xf3e   :  { %v1680_v22 = vpop.permute.xlu0 %1679  ;;  %v1684_v25 = vpop.permute.xlu1 %1683 }
 0xf3f   :  { %3382 = vmatpush1.bf16.msra.mxu0 %v3381_v59  ;;  %v1682_v61 = vmul.f32 %v4156_v7, %v1680_v22  ;;  %v1687_v32 = vmul.f32 %v4164_v38, %v1684_v25  ;;  %v2975_v59 = vld [vmem:[%s4890_s3 + $0xb8] sm:$0xff] }
 0xf40   :  { %3383 = vmatprep.subr.bf16.mxu0 %v3554_v1 }
 0xf41   :  { %v3387_v29 = vpack.c.bf16 %v1682_v61, %v1681_v27 }
 0xf42   :  { %v1686_v26 = vpop.permute.xlu0 %1685  ;;  %v1690_v2 = vpop.permute.xlu1 %1689 }
 0xf43   :  { %3385 = vmatpush1.bf16.msra.mxu0 %v3384_v24  ;;  %v1688_v30 = vmul.f32 %v4164_v38, %v1686_v26  ;;  %v1693_v35 = vmul.f32 %v4172_v49, %v1690_v2  ;;  %v2965_v38 = vld [vmem:[%s4889_s2 + $0x158] sm:$0xff] }
 0xf44   :  { %3386 = vmatprep.subr.bf16.mxu0 %v3554_v1 }
 0xf45   :  { %v3390_v4 = vpack.c.bf16 %v1688_v30, %v1687_v32 }
 0xf46   :  { %v1692_v31 = vpop.permute.xlu0 %1691 }
 0xf47   :  { %3388 = vmatpush1.bf16.msra.mxu0 %v3387_v29  ;;  %v1694_v34 = vmul.f32 %v4172_v49, %v1692_v31  ;;  %v2964_v49 = vld [vmem:[%s4889_s2 + $0x150] sm:$0xff]  ;;  %v3496_v29 = vld [vmem:[%s4888_s1 + $0x1] ss:$0 sm:$0xff] }
 0xf48   :  { %3389 = vmatprep.subr.bf16.mxu0 %v3554_v1 }
 0xf49   :  { %v3393_v7 = vpack.c.bf16 %v1694_v34, %v1693_v35  ;;  %v3497_v34 = vld [vmem:[%s4888_s1 + $0x2] ss:$0 sm:$0xff] }
 0xf4b   :  { %3391 = vmatpush1.bf16.msra.mxu0 %v3390_v4 }
 0xf4c   :  { %3392 = vmatprep.subr.bf16.mxu0 %v3554_v1 }
 0xf4f   :  { %3394 = vmatpush1.bf16.msra.mxu0 %v3393_v7 }
 0xf52   :  { %1776 = vmatmul.mubr.f32.vlgmr.msra.gmra.mrb[20].mxu0 %v2962_v36 }
 0xf53   :  { %2969 = vmatprep.mubr.msk.f32.mxu0 %vm194_vm0, %v2965_v38  ;;  %v1698_v37 = vpop.permute.xlu1 %1697 }
 0xf56   :  { %1781 = vmatmul.mubr.f32.gmra.mrb[22].mxu0 %v2964_v49 }
 0xf57   :  { %v1703_v45 = vpop.permute.xlu0 %1702 }
0x1025   :  { %v1777_v39 = vpop.f32.mrb[20].mxu0 }
0x1026   :  { %v1778_v40 = vadd.f32 %v1777_v39, %v1698_v37  ;;  %v1779_v42 = vpop.f32.mrb[21].mxu0  ;;  %v3498_v37 = vld [vmem:[%s4888_s1 + $0x3] ss:$0 sm:$0xff] }
0x1028   :  { %v1786_v44 = vmax.f32 %v1778_v40, 0.0 }
0x1029   :  { %v1782_v46 = vpop.f32.mrb[22].mxu0 }
0x102a   :  { %v1783_v47 = vadd.f32 %v1782_v46, %v1703_v45  ;;  %v1784_v50 = vpop.f32.mrb[23].mxu0  ;;  %1796 = vrot.lane.b32.xlu1 %v1786_v44, %s3555_s15  ;;  %v4445_v54 = vmul.f32 %v3494_v52, %v1786_v44  ;;  %v3499_v46 = vld [vmem:[%s4888_s1 + $0x5] ss:$0 sm:$0xff] }
0x102c   :  { %v1787_v51 = vmax.f32 %v1783_v47, 0.0 }
0x102e   :  { %1798 = vrot.lane.b32.xlu0 %v1787_v51, %s3555_s15  ;;  %1802 = vrot.lane.b32.xlu1 %v1786_v44, %s3553_s29  ;;  %v4447_v55 = vmul.f32 %v3494_v52, %v1787_v51 }
0x1030   :  { %v3408_v57 = vpack.c.bf16 %v4447_v55, %v4445_v54  ;;  %v3501_v54 = vld [vmem:[%s4888_s1 + $0x7] ss:$0 sm:$0xff] }
0x1032   :  { %1804 = vrot.lane.b32.xlu0 %v1787_v51, %s3553_s29  ;;  %1808 = vrot.lane.b32.xlu1 %v1786_v44, %s3556_s19 }
0x1036   :  { %1810 = vrot.lane.b32.xlu0 %v1787_v51, %s3556_s19  ;;  %1814 = vrot.lane.b32.xlu1 %v1786_v44, %s3557_s0 }
0x103a   :  { %1816 = vrot.lane.b32.xlu0 %v1787_v51, %s3557_s0  ;;  %1822 = vrot.lane.b32.xlu1 %v1786_v44, %s3558_s20 }
0x103e   :  { %1824 = vrot.lane.b32.xlu0 %v1787_v51, %s3558_s20  ;;  %1828 = vrot.lane.b32.xlu1 %v1786_v44, %s3559_s21 }
0x1042   :  { %1830 = vrot.lane.b32.xlu0 %v1787_v51, %s3559_s21  ;;  %1834 = vrot.lane.b32.xlu1 %v1786_v44, %s3560_s22 }
0x1046   :  { %1836 = vrot.lane.b32.xlu0 %v1787_v51, %s3560_s22  ;;  %1840 = vrot.lane.b32.xlu1 %v1786_v44, %s3561_s25 }
0x104a   :  { %1842 = vrot.lane.b32.xlu0 %v1787_v51, %s3561_s25  ;;  %1848 = vperm.xlu1 %3484, %v2974_v14  }
0x104e   :  { %1853 = vperm.xlu0 %3483, %v2975_v59   ;;  %2420 = vperm.xlu1 %3484, %v2410_v33  }
0x1052   :  { %2425 = vperm.xlu0 %3483, %v2411_v60   ;;  %2430 = vperm.xlu1 %3484, %v2412_v15  }
0x1056   :  { %2435 = vperm.xlu0 %3483, %v2413_v62   ;;  %2440 = vperm.xlu1 %3484, %v2414_v63  }
0x105a   :  { %2445 = vperm.xlu0 %3483, %v2415_v0   ;;  %2450 = vperm.xlu1 %3484, %v2416_v20   ;;  %v3502_v20 = vld [vmem:[%s4888_s1 + $0x8] ss:$0 sm:$0xff] }
0x105e   :  { %2455 = vperm.xlu0 %3483, %v2417_v3   ;;  %2589 = vperm.xlu1 %3484, %v2579_v5  }
0x1062   :  { %2594 = vperm.xlu0 %3483, %v2580_v28   ;;  %2599 = vperm.xlu1 %3484, %v2581_v6   ;;  %v2970_v6 = vld [vmem:[%s4889_s2 + $0x160] sm:$0xff] }
0x1066   :  { %2604 = vperm.xlu0 %3483, %v2582_v8   ;;  %2775 = vperm.xlu1 %3484, %v2765_v9   ;;  %v2973_v8 = vld [vmem:[%s4889_s2 + $0x178] sm:$0xff]  ;;  %v2972_v9 = vld [vmem:[%s4889_s2 + $0x170] sm:$0xff] }
0x106a   :  { %2780 = vperm.xlu0 %3483, %v2766_v10   ;;  %2609 = vperm.xlu1 %3484, %v2583_v11   ;;  %v2395_v10 = vld [vmem:[%s4897_s10 + $0x8] sm:$0xff] }
0x106e   :  { %2785 = vperm.xlu0 %3483, %v2767_v12   ;;  %2614 = vperm.xlu1 %3484, %v2584_v13   ;;  %v2396_v12 = vld [vmem:[%s4897_s10 + $0x10] sm:$0xff]  ;;  %v2397_v13 = vld [vmem:[%s4897_s10 + $0x18] sm:$0xff] }
0x1072   :  { %2790 = vperm.xlu0 %3483, %v2768_v16   ;;  %2619 = vperm.xlu1 %3484, %v2585_v41   ;;  %v2398_v16 = vld [vmem:[%s4897_s10 + $0x20] sm:$0xff]  ;;  %v3426_v41 = vpack.c.bf16 %v2397_v13, %v2396_v12  ;;  %v1990_v13 = vld [vmem:[#allocation3 + $0x88] sm:$0xff] }
0x1073   :  { %v2134_v12 = vld [vmem:[#allocation3 + $0x1c0] sm:$0xff] }
0x1076   :  { %2795 = vperm.xlu0 %3483, %v2769_v17   ;;  %2624 = vperm.xlu1 %3484, %v2586_v43   ;;  %v2399_v17 = vld [vmem:[%s4897_s10 + $0x28] sm:$0xff] }
0x1077   :  { %v3430_v43 = vpack.c.bf16 %v2399_v17, %v2398_v16  ;;  %v2019_v17 = vld [vmem:[#allocation3 + $0xc8] sm:$0xff] }
0x107a   :  { %2800 = vperm.xlu0 %3483, %v2770_v18   ;;  %2805 = vperm.xlu1 %3484, %v2771_v48   ;;  %v2400_v18 = vld [vmem:[%s4897_s10 + $0x30] sm:$0xff]  ;;  %v2401_v48 = vld [vmem:[%s4897_s10 + $0x38] sm:$0xff] }
0x107e   :  { %2810 = vperm.xlu0 %3483, %v2772_v53   ;;  %2846 = vperm.xlu1 %3484, %v2843_v19   ;;  %v3434_v53 = vpack.c.bf16 %v2401_v48, %v2400_v18  ;;  %v2402_v19 = vld [vmem:[%s4897_s10 + $0x40] sm:$0xff] }
0x109c   :  { %v1797_v21 = vpop.permute.xlu1 %1796 }
0x109d   :  { %v1800_v24 = vmul.f32 %v3495_v23, %v1797_v21  ;;  %v2403_v21 = vld [vmem:[%s4897_s10 + $0x48] sm:$0xff] }
0x10a0   :  { %v1799_v56 = vpop.permute.xlu0 %1798  ;;  %v1803_v22 = vpop.permute.xlu1 %1802 }
0x10a1   :  { %v1801_v61 = vmul.f32 %v3495_v23, %v1799_v56  ;;  %v1806_v30 = vmul.f32 %v3496_v29, %v1803_v22  ;;  %v3438_v56 = vpack.c.bf16 %v2403_v21, %v2402_v19  ;;  %v2404_v22 = vld [vmem:[%s4897_s10 + $0x50] sm:$0xff]  ;;  %v2405_v23 = vld [vmem:[%s4897_s10 + $0x58] sm:$0xff] }
0x10a2   :  { %v2048_v19 = vld [vmem:[#allocation3 + $0x108] sm:$0xff] }
0x10a3   :  { %v3396_v25 = vpack.c.bf16 %v1801_v61, %v1800_v24  ;;  %v3442_v24 = vpack.c.bf16 %v2405_v23, %v2404_v22  ;;  %v2406_v61 = vld [vmem:[%s4897_s10 + $0x60] sm:$0xff] }
0x10a4   :  { %v1805_v26 = vpop.permute.xlu0 %1804  ;;  %v1809_v27 = vpop.permute.xlu1 %1808  ;;  %v2163_v22 = vld [vmem:[#allocation3 + $0x200] sm:$0xff] }
0x10a5   :  { %v1807_v31 = vmul.f32 %v3496_v29, %v1805_v26  ;;  %3397 = vmatpush1.bf16.msra.mxu1 %v3396_v25  ;;  %v1812_v35 = vmul.f32 %v3497_v34, %v1809_v27  ;;  %v2407_v25 = vld [vmem:[%s4897_s10 + $0x68] sm:$0xff]  ;;  %v2408_v27 = vld [vmem:[%s4897_s10 + $0x70] sm:$0xff]  ;;  %v2409_v29 = vld [vmem:[%s4897_s10 + $0x78] sm:$0xff] }
0x10a6   :  { %3398 = vmatprep.subr.bf16.mxu1 %v3554_v1  ;;  %v3446_v26 = vpack.c.bf16 %v2407_v25, %v2406_v61 }
0x10a7   :  { %v3399_v32 = vpack.c.bf16 %v1807_v31, %v1806_v30  ;;  %v3450_v30 = vpack.c.bf16 %v2409_v29, %v2408_v27  ;;  %v1947_v31 = vlaneseq  ;;  %v2192_v27 = vld [vmem:[#allocation3 + $0x240] sm:$0xff] }
0x10a8   :  { %v1811_v2 = vpop.permute.xlu0 %1810  ;;  %v1815_v4 = vpop.permute.xlu1 %1814 }
0x10a9   :  { %v1813_v7 = vmul.f32 %v3497_v34, %v1811_v2  ;;  %3400 = vmatpush1.bf16.msra.mxu1 %v3399_v32  ;;  %v1818_v39 = vmul.f32 %v3498_v37, %v1815_v4  ;;  %v4639_v32 = vshrl.u32 %v1947_v31, 7  ;;  %v1962_v31 = vld [vmem:[#allocation3 + $0x50] sm:$0xff] }
0x10aa   :  { %3401 = vmatprep.subr.bf16.mxu1 %v3554_v1 }
0x10ab   :  { %v3402_v36 = vpack.c.bf16 %v1813_v7, %v1812_v35  ;;  %v1970_v35 = vsub.s32 1, %v4639_v32 }
0x10ac   :  { %v1817_v38 = vpop.permute.xlu0 %1816  ;;  %v1823_v49 = vpop.permute.xlu1 %1822 }
0x10ad   :  { %v1819_v40 = vmul.f32 %v3498_v37, %v1817_v38  ;;  %3403 = vmatpush1.bf16.msra.mxu1 %v3402_v36  ;;  %v1826_v51 = vmul.f32 %v3499_v46, %v1823_v49  ;;  %v4643_v36 = vsub.s32 0, %v4639_v32  ;;  %v1999_v49 = vsub.s32 2, %v4639_v32 }
0x10ae   :  { %3404 = vmatprep.subr.bf16.mxu1 %v3554_v1 }
0x10af   :  { %v3405_v42 = vpack.c.bf16 %v1819_v40, %v1818_v39  ;;  %v1939_v39 = vld [vmem:[#allocation3] sm:$0xff] }
0x10b0   :  { %v1825_v44 = vpop.permute.xlu0 %1824  ;;  %v1829_v45 = vpop.permute.xlu1 %1828  ;;  %v1960_v40 = vld [vmem:[#allocation3 + $0x40] sm:$0xff] }
0x10b1   :  { %3406 = vmatpush1.bf16.msra.mxu1 %v3405_v42  ;;  %v1827_v47 = vmul.f32 %v3499_v46, %v1825_v44  ;;  %v1832_v60 = vmul.f32 %v3500_v58, %v1829_v45  ;;  %v2028_v45 = vsub.s32 3, %v4639_v32 }
0x10b2   :  { %3407 = vmatprep.subr.bf16.mxu1 %v3554_v1 }
0x10b3   :  { %v3411_v52 = vpack.c.bf16 %v1827_v47, %v1826_v51  ;;  %v2086_v51 = vsub.s32 5, %v4639_v32 }
0x10b4   :  { %v1831_v50 = vpop.permute.xlu0 %1830  ;;  %v1835_v59 = vpop.permute.xlu1 %1834 }
0x10b5   :  { %3409 = vmatpush1.bf16.msra.mxu1 %v3408_v57  ;;  %v1833_v14 = vmul.f32 %v3500_v58, %v1831_v50  ;;  %v1838_v62 = vmul.f32 %v3501_v54, %v1835_v59  ;;  %v2057_v50 = vsub.s32 4, %v4639_v32  ;;  %v2144_v58 = vsub.s32 7, %v4639_v32 }
0x10b6   :  { %3410 = vmatprep.subr.bf16.mxu1 %v3554_v1 }
0x10b7   :  { %v3414_v15 = vpack.c.bf16 %v1833_v14, %v1832_v60 }
0x10b8   :  { %v1837_v33 = vpop.permute.xlu0 %1836  ;;  %v1841_v63 = vpop.permute.xlu1 %1840 }
0x10b9   :  { %3412 = vmatpush1.bf16.msra.mxu1 %v3411_v52  ;;  %v1839_v55 = vmul.f32 %v3501_v54, %v1837_v33  ;;  %v1844_v5 = vmul.f32 %v3502_v20, %v1841_v63  ;;  %v2115_v52 = vsub.s32 6, %v4639_v32  ;;  %v1940_v54 = vld [vmem:[#allocation3 + $0x8] sm:$0xff] }
0x10ba   :  { %3413 = vmatprep.subr.bf16.mxu1 %v3554_v1 }
0x10bb   :  { %v3417_v0 = vpack.c.bf16 %v1839_v55, %v1838_v62  ;;  %v1961_v55 = vld [vmem:[#allocation3 + $0x48] sm:$0xff] }
0x10bc   :  { %v1843_v57 = vpop.permute.xlu0 %1842 }
0x10bd   :  { %3415 = vmatpush1.bf16.msra.mxu1 %v3414_v15  ;;  %v1845_v3 = vmul.f32 %v3502_v20, %v1843_v57  ;;  %v1989_v15 = vld [vmem:[#allocation3 + $0x80] sm:$0xff] }
0x10be   :  { %3416 = vmatprep.subr.bf16.mxu1 %v3554_v1 }
0x10bf   :  { %v3420_v28 = vpack.c.bf16 %v1845_v3, %v1844_v5  ;;  %v2018_v5 = vld [vmem:[#allocation3 + $0xc0] sm:$0xff] }
0x10c1   :  { %3418 = vmatpush1.bf16.msra.mxu1 %v3417_v0 }
0x10c2   :  { %3419 = vmatprep.subr.bf16.mxu1 %v3554_v1  ;;  %v2394_v1 = vld [vmem:[%s4897_s10] sm:$0xff] }
0x10c3   :  { %v3422_v11 = vpack.c.bf16 %v2395_v10, %v2394_v1  ;;  %v2105_v1 = vld [vmem:[#allocation3 + $0x180] sm:$0xff] }
0x10c5   :  { %3421 = vmatpush1.bf16.msra.mxu1 %v3420_v28  ;;  %3423 = vmatprep.subr.bf16.mxu0 %v3422_v11 }
0x10c6   :  { %3425 = vmatpush3.bf16.msra.mxu0 %v3422_v11 }
0x10c7   :  { %3427 = vmatprep.subr.bf16.mxu0 %v3426_v41 }
0x10c8   :  { %1927 = vmatmul.mubr.f32.vlgmr.msra.gmra.mrb[20].mxu1 %v2970_v6 }
0x10c9   :  { %2977 = vmatprep.mubr.msk.f32.mxu1 %vm194_vm0, %v2973_v8  ;;  %v1849_v2 = vpop.permute.xlu1 %1848  ;;  %v2047_v8 = vld [vmem:[#allocation3 + $0x100] sm:$0xff] }
0x10ca   :  { %3429 = vmatpush3.bf16.msra.mxu0 %v3426_v41 }
0x10cb   :  { %3431 = vmatprep.subr.bf16.mxu0 %v3430_v43 }
0x10cc   :  { %1932 = vmatmul.mubr.f32.gmra.mrb[22].mxu1 %v2972_v9  ;;  %v2076_v9 = vld [vmem:[#allocation3 + $0x140] sm:$0xff] }
0x10cd   :  { %v1854_v47 = vpop.permute.xlu0 %1853 }
0x10ce   :  { %3433 = vmatpush3.bf16.msra.mxu0 %v3430_v43 }
0x10cf   :  { %3435 = vmatprep.subr.bf16.mxu0 %v3434_v53 }
0x10d2   :  { %3437 = vmatpush3.bf16.msra.mxu0 %v3434_v53 }
0x10d3   :  { %3439 = vmatprep.subr.bf16.mxu0 %v3438_v56 }
0x10d6   :  { %3441 = vmatpush3.bf16.msra.mxu0 %v3438_v56 }
0x10d7   :  { %3443 = vmatprep.subr.bf16.mxu0 %v3442_v24 }
0x10da   :  { %3445 = vmatpush3.bf16.msra.mxu0 %v3442_v24 }
0x10db   :  { %3447 = vmatprep.subr.bf16.mxu0 %v3446_v26 }
0x10de   :  { %3449 = vmatpush3.bf16.msra.mxu0 %v3446_v26 }
0x10df   :  { %3451 = vmatprep.subr.bf16.mxu0 %v3450_v30 }
0x10e2   :  { %3453 = vmatpush3.bf16.msra.mxu0 %v3450_v30  ;;  %v1941_v30 = vld [vmem:[#allocation3 + $0x10] sm:$0xff] }
0x119b   :  { %v1928_v4 = vpop.f32.mrb[20].mxu1 }
0x119c   :  { %v1929_v34 = vadd.f32 %v1928_v4, %v1849_v2  ;;  %v1930_v7 = vpop.f32.mrb[21].mxu1  ;;  %v2221_v4 = vld [vmem:[#allocation3 + $0x280] sm:$0xff] }
0x119e   :  { %v1937_v38 = vmax.f32 %v1929_v34, 0.0  ;;  %v2250_v34 = vld [vmem:[#allocation3 + $0x2c0] sm:$0xff] }
0x119f   :  { %v1933_v37 = vpop.f32.mrb[22].mxu1 }
0x11a0   :  { %v4647_v42 = vrot.slane %v1937_v38, %v4643_v36  ;;  %v4649_v44 = vrot.slane %v1937_v38, %v1970_v35  ;;  %v1935_v46 = vpop.f32.mrb[23].mxu1  ;;  %v4656_v14 = vrot.slane %v1937_v38, %v1999_v49  ;;  %v1934_v59 = vadd.f32 %v1933_v37, %v1854_v47  ;;  %v2077_v37 = vld [vmem:[#allocation3 + $0x148] sm:$0xff] }
0x11a1   :  { %v4660_v57 = vrot.slane %v1937_v38, %v2028_v45  ;;  %v4662_v63 = vrot.slane %v1937_v38, %v2057_v50  ;;  %v4664_v0 = vrot.slane %v1937_v38, %v2086_v51  ;;  %v4666_v20 = vrot.slane %v1937_v38, %v2115_v52  ;;  %v1991_v46 = vld [vmem:[#allocation3 + $0x90] sm:$0xff] }
0x11a2   :  { %v1951_v33 = vmul.f32 %v4647_v42, %v1939_v39  ;;  %v1972_v60 = vmul.f32 %v4649_v44, %v1960_v40  ;;  %v1938_v3 = vmax.f32 %v1934_v59, 0.0  ;;  %v4668_v28 = vrot.slane %v1937_v38, %v2144_v58  ;;  %v2337_v59 = vld [vmem:[#allocation3 + $0x380] sm:$0xff] }
0x11a3   :  { %v2001_v6 = vmul.f32 %v4656_v14, %v1989_v15  ;;  %v1952_v10 = vmul.f32 %v4647_v42, %v1940_v54  ;;  %v1973_v11 = vmul.f32 %v4649_v44, %v1961_v55  ;;  %v2030_v41 = vmul.f32 %v4660_v57, %v2018_v5  ;;  %v2366_v55 = vld [vmem:[#allocation3 + $0x3c0] sm:$0xff] }
0x11a4   :  { %v1980_v62 = vadd.f32 %v1972_v60, %v1951_v33  ;;  %v4675_v43 = vrot.slane %v1938_v3, %v4643_v36  ;;  %v2059_v18 = vmul.f32 %v4662_v63, %v2047_v8  ;;  %v2088_v48 = vmul.f32 %v4664_v0, %v2076_v9  ;;  %v2106_v60 = vld [vmem:[#allocation3 + $0x188] sm:$0xff] }
0x11a5   :  { %v2117_v53 = vmul.f32 %v4666_v20, %v2105_v1  ;;  %v2146_v56 = vmul.f32 %v4668_v28, %v2134_v12  ;;  %v1981_v23 = vadd.f32 %v1973_v11, %v1952_v10  ;;  %v2002_v24 = vmul.f32 %v4656_v14, %v1990_v13  ;;  %v2135_v8 = vld [vmem:[#allocation3 + $0x1c8] sm:$0xff]  ;;  %v2049_v11 = vld [vmem:[#allocation3 + $0x110] sm:$0xff] }
0x11a6   :  { %v2009_v16 = vadd.f32 %v2001_v6, %v1980_v62  ;;  %v4682_v61 = vrot.slane %v1938_v3, %v1970_v35  ;;  %v4684_v25 = vrot.slane %v1938_v3, %v1999_v49  ;;  %v4686_v26 = vrot.slane %v1938_v3, %v2028_v45  ;;  %v2279_v45 = vld [vmem:[#allocation3 + $0x300] sm:$0xff]  ;;  %v2164_v9 = vld [vmem:[#allocation3 + $0x208] sm:$0xff] }
0x11a7   :  { %v2031_v29 = vmul.f32 %v4660_v57, %v2019_v17  ;;  %v4689_v32 = vrot.slane %v1938_v3, %v2057_v50  ;;  %v2010_v7 = vadd.f32 %v2002_v24, %v1981_v23  ;;  %v2060_v38 = vmul.f32 %v4662_v63, %v2048_v19  ;;  %v2308_v50 = vld [vmem:[#allocation3 + $0x340] sm:$0xff]  ;;  %v2193_v17 = vld [vmem:[#allocation3 + $0x248] sm:$0xff]  ;;  %v1963_v24 = vld [vmem:[#allocation3 + $0x58] sm:$0xff] }
0x11a8   :  { %v2038_v21 = vadd.f32 %v2030_v41, %v2009_v16  ;;  %v4692_v35 = vrot.slane %v1938_v3, %v2086_v51  ;;  %v4694_v49 = vrot.slane %v1938_v3, %v2115_v52  ;;  %v4696_v39 = vrot.slane %v1938_v3, %v2144_v58  ;;  %v2020_v3 = vld [vmem:[#allocation3 + $0xd0] sm:$0xff]  ;;  %v2222_v19 = vld [vmem:[#allocation3 + $0x288] sm:$0xff] }
0x11a9   :  { %v2175_v40 = vmul.f32 %v4675_v43, %v2163_v22  ;;  %v2039_v33 = vadd.f32 %v2031_v29, %v2010_v7  ;;  %v1953_v15 = vmul.f32 %v4647_v42, %v1941_v30  ;;  %v1974_v54 = vmul.f32 %v4649_v44, %v1962_v31  ;;  %v2309_v7 = vld [vmem:[#allocation3 + $0x348] sm:$0xff] }
0x11aa   :  { %v2067_v2 = vadd.f32 %v2059_v18, %v2038_v21  ;;  %v2204_v51 = vmul.f32 %v4682_v61, %v2192_v27  ;;  %v2233_v52 = vmul.f32 %v4684_v25, %v2221_v4  ;;  %v4704_v58 = vmul.f32 %v4686_v26, %v2250_v34  ;;  %v1942_v18 = vld [vmem:[#allocation3 + $0x18] sm:$0xff]  ;;  %v2251_v21 = vld [vmem:[#allocation3 + $0x2c8] sm:$0xff] }
0x11ab   :  { %v2089_v62 = vmul.f32 %v4664_v0, %v2077_v37  ;;  %v2068_v6 = vadd.f32 %v2060_v38, %v2039_v33  ;;  %v1982_v1 = vadd.f32 %v1974_v54, %v1953_v15  ;;  %v2003_v10 = vmul.f32 %v4656_v14, %v1991_v46  ;;  %v2338_v54 = vld [vmem:[#allocation3 + $0x388] sm:$0xff] }
0x11ac   :  { %v2096_v47 = vadd.f32 %v2088_v48, %v2067_v2  ;;  %v4709_v12 = vmul.f32 %v4689_v32, %v2279_v45  ;;  %v4712_v13 = vmul.f32 %v4692_v35, %v2308_v50  ;;  %v4715_v16 = vmul.f32 %v4694_v49, %v2337_v59  ;;  %v2078_v2 = vld [vmem:[#allocation3 + $0x150] sm:$0xff]  ;;  %v1992_v45 = vld [vmem:[#allocation3 + $0x98] sm:$0xff] }
0x11ad   :  { %v2118_v41 = vmul.f32 %v4666_v20, %v2106_v60  ;;  %v2011_v22 = vadd.f32 %v2003_v10, %v1982_v1  ;;  %v2032_v23 = vmul.f32 %v4660_v57, %v2020_v3  ;;  %v4720_v27 = vmul.f32 %v4696_v39, %v2366_v55  ;;  %v2107_v59 = vld [vmem:[#allocation3 + $0x190] sm:$0xff]  ;;  %v2021_v3 = vld [vmem:[#allocation3 + $0xd8] sm:$0xff] }
0x11ae   :  { %v2125_v5 = vadd.f32 %v2117_v53, %v2096_v47  ;;  %v2097_v53 = vadd.f32 %v2089_v62, %v2068_v6  ;;  %v2147_v29 = vmul.f32 %v4668_v28, %v2135_v8  ;;  %v2176_v30 = vmul.f32 %v4675_v43, %v2164_v9  ;;  %v2136_v8 = vld [vmem:[#allocation3 + $0x1d0] sm:$0xff] }
0x11af   :  { %v2061_v31 = vmul.f32 %v4662_v63, %v2049_v11  ;;  %v2040_v38 = vadd.f32 %v2032_v23, %v2011_v22  ;;  %v1954_v37 = vmul.f32 %v4647_v42, %v1942_v18  ;;  %v2205_v46 = vmul.f32 %v4682_v61, %v2193_v17  ;;  %v2165_v17 = vld [vmem:[#allocation3 + $0x210] sm:$0xff]  ;;  %v2050_v18 = vld [vmem:[#allocation3 + $0x118] sm:$0xff]  ;;  %v1964_v23 = vld [vmem:[#allocation3 + $0x60] sm:$0xff] }
0x11b0   :  { %v2154_v48 = vadd.f32 %v2146_v56, %v2125_v5  ;;  %v2126_v34 = vadd.f32 %v2118_v41, %v2097_v53  ;;  %v2280_v56 = vld [vmem:[#allocation3 + $0x308] sm:$0xff]  ;;  %v2234_v47 = vmul.f32 %v4684_v25, %v2222_v19  ;;  %v2263_v50 = vmul.f32 %v4686_v26, %v2251_v21 }
0x11b1   :  { %v1975_v33 = vmul.f32 %v4649_v44, %v1963_v24  ;;  %v2069_v55 = vadd.f32 %v2061_v31, %v2040_v38  ;;  %v2090_v62 = vmul.f32 %v4664_v0, %v2078_v2  ;;  %v2292_v5 = vmul.f32 %v4689_v32, %v2280_v56  ;;  %v2194_v31 = vld [vmem:[#allocation3 + $0x250] sm:$0xff]  ;;  %v2079_v2 = vld [vmem:[#allocation3 + $0x158] sm:$0xff] }
0x11b2   :  { %v2183_v4 = vadd.f32 %v2175_v40, %v2154_v48  ;;  %v2155_v15 = vadd.f32 %v2147_v29, %v2126_v34  ;;  %v2367_v40 = vld [vmem:[#allocation3 + $0x3c8] sm:$0xff]  ;;  %v2321_v6 = vmul.f32 %v4692_v35, %v2309_v7  ;;  %v2004_v1 = vmul.f32 %v4656_v14, %v1992_v45  ;;  %v1943_v48 = vld [vmem:[#allocation3 + $0x20] sm:$0xff] }
0x11b3   :  { %v1983_v9 = vadd.f32 %v1975_v33, %v1954_v37  ;;  %v2098_v41 = vadd.f32 %v2090_v62, %v2069_v55  ;;  %v4736_v53 = vmul.f32 %v4694_v49, %v2338_v54  ;;  %v4739_v19 = vmul.f32 %v4696_v39, %v2367_v40  ;;  %v2223_v33 = vld [vmem:[#allocation3 + $0x290] sm:$0xff] }
0x11b4   :  { %v2212_v60 = vadd.f32 %v2204_v51, %v2183_v4  ;;  %v2184_v11 = vadd.f32 %v2176_v30, %v2155_v15  ;;  %v2119_v51 = vmul.f32 %v4666_v20, %v2107_v59  ;;  %v2033_v22 = vmul.f32 %v4660_v57, %v2021_v3  ;;  %v1993_v4 = vld [vmem:[#allocation3 + $0xa0] sm:$0xff] }
0x11b5   :  { %v2012_v21 = vadd.f32 %v2004_v1, %v1983_v9  ;;  %v2148_v30 = vmul.f32 %v4668_v28, %v2136_v8  ;;  %v2177_v34 = vmul.f32 %v4675_v43, %v2165_v17  ;;  %v2062_v7 = vmul.f32 %v4662_v63, %v2050_v18  ;;  %v2252_v9 = vld [vmem:[#allocation3 + $0x2d0] sm:$0xff]  ;;  %v2051_v1 = vld [vmem:[#allocation3 + $0x120] sm:$0xff] }
0x11b6   :  { %v2241_v10 = vadd.f32 %v2233_v52, %v2212_v60  ;;  %v2213_v52 = vadd.f32 %v2205_v46, %v2184_v11  ;;  %v2127_v29 = vadd.f32 %v2119_v51, %v2098_v41  ;;  %v1955_v38 = vmul.f32 %v4647_v42, %v1943_v48  ;;  %v2022_v60 = vld [vmem:[#allocation3 + $0xe0] sm:$0xff] }
0x11b7   :  { %v2041_v56 = vadd.f32 %v2033_v22, %v2012_v21  ;;  %v1976_v46 = vmul.f32 %v4649_v44, %v1964_v23  ;;  %v2206_v15 = vmul.f32 %v4682_v61, %v2194_v31  ;;  %v2091_v40 = vmul.f32 %v4664_v0, %v2079_v2  ;;  %v2281_v21 = vld [vmem:[#allocation3 + $0x310] sm:$0xff] }
0x11b8   :  { %v2270_v24 = vadd.f32 %v4704_v58, %v2241_v10  ;;  %v2242_v45 = vadd.f32 %v2234_v47, %v2213_v52  ;;  %v2156_v59 = vadd.f32 %v2148_v30, %v2127_v29  ;;  %v2108_v58 = vld [vmem:[#allocation3 + $0x198] sm:$0xff]  ;;  %v2005_v55 = vmul.f32 %v4656_v14, %v1993_v4  ;;  %v2310_v22 = vld [vmem:[#allocation3 + $0x350] sm:$0xff]  ;;  %v2080_v30 = vld [vmem:[#allocation3 + $0x160] sm:$0xff] }
0x11b9   :  { %v2070_v54 = vadd.f32 %v2062_v7, %v2041_v56  ;;  %v1984_v47 = vadd.f32 %v1976_v46, %v1955_v38  ;;  %v2235_v10 = vmul.f32 %v4684_v25, %v2223_v33  ;;  %v2120_v41 = vmul.f32 %v4666_v20, %v2108_v58  ;;  %v1965_v56 = vld [vmem:[#allocation3 + $0x68] sm:$0xff]  ;;  %v2224_v46 = vld [vmem:[#allocation3 + $0x298] sm:$0xff] }
0x11ba   :  { %v2299_v37 = vadd.f32 %v4709_v12, %v2270_v24  ;;  %v2271_v3 = vadd.f32 %v2263_v50, %v2242_v45  ;;  %v2185_v8 = vadd.f32 %v2177_v34, %v2156_v59  ;;  %v2137_v12 = vld [vmem:[#allocation3 + $0x1d8] sm:$0xff]  ;;  %v2034_v51 = vmul.f32 %v4660_v57, %v2022_v60  ;;  %v2109_v59 = vld [vmem:[#allocation3 + $0x1a0] sm:$0xff]  ;;  %v1994_v60 = vld [vmem:[#allocation3 + $0xa8] sm:$0xff] }
0x11bb   :  { %v2099_v11 = vadd.f32 %v2091_v40, %v2070_v54  ;;  %v2013_v50 = vadd.f32 %v2005_v55, %v1984_v47  ;;  %v2264_v23 = vmul.f32 %v4686_v26, %v2252_v9  ;;  %v2149_v52 = vmul.f32 %v4668_v28, %v2137_v12  ;;  %v2195_v34 = vld [vmem:[#allocation3 + $0x258] sm:$0xff]  ;;  %v2138_v55 = vld [vmem:[#allocation3 + $0x1e0] sm:$0xff] }
0x11bc   :  { %v2328_v62 = vadd.f32 %v4712_v13, %v2299_v37  ;;  %v2300_v18 = vadd.f32 %v2292_v5, %v2271_v3  ;;  %v2214_v48 = vadd.f32 %v2206_v15, %v2185_v8  ;;  %v2166_v13 = vld [vmem:[#allocation3 + $0x218] sm:$0xff]  ;;  %v2063_v29 = vmul.f32 %v4662_v63, %v2051_v1  ;;  %v1944_v5 = vld [vmem:[#allocation3 + $0x28] sm:$0xff]  ;;  %v2339_v15 = vld [vmem:[#allocation3 + $0x390] sm:$0xff] }
0x11bd   :  { %v2128_v24 = vadd.f32 %v2120_v41, %v2099_v11  ;;  %v2293_v7 = vmul.f32 %v4689_v32, %v2281_v21  ;;  %v2322_v38 = vmul.f32 %v4692_v35, %v2310_v22  ;;  %v2178_v45 = vmul.f32 %v4675_v43, %v2166_v13  ;;  %v2253_v12 = vld [vmem:[#allocation3 + $0x2d8] sm:$0xff]  ;;  %v2023_v1 = vld [vmem:[#allocation3 + $0xe8] sm:$0xff] }
0x11be   :  { %v2357_v17 = vadd.f32 %v4715_v16, %v2328_v62  ;;  %v2329_v2 = vadd.f32 %v2321_v6, %v2300_v18  ;;  %v2243_v4 = vadd.f32 %v2235_v10, %v2214_v48  ;;  %v2042_v16 = vadd.f32 %v2034_v51, %v2013_v50  ;;  %v2368_v10 = vld [vmem:[#allocation3 + $0x3d0] sm:$0xff]  ;;  %v2167_v51 = vld [vmem:[#allocation3 + $0x220] sm:$0xff]  ;;  %v2282_v22 = vld [vmem:[#allocation3 + $0x318] sm:$0xff] }
0x11bf   :  { %v2157_v37 = vadd.f32 %v2149_v52, %v2128_v24  ;;  %v2092_v6 = vmul.f32 %v4664_v0, %v2080_v30  ;;  %v2207_v40 = vmul.f32 %v4682_v61, %v2195_v34  ;;  %v1956_v62 = vmul.f32 %v4647_v42, %v1944_v5  ;;  %v2052_v50 = vld [vmem:[#allocation3 + $0x128] sm:$0xff]  ;;  %v2311_v52 = vld [vmem:[#allocation3 + $0x358] sm:$0xff] }
0x11c0   :  { %v2386_v31 = vadd.f32 %v4720_v27, %v2357_v17  ;;  %v2358_v33 = vadd.f32 %v4736_v53, %v2329_v2  ;;  %v2272_v58 = vadd.f32 %v2264_v23, %v2243_v4  ;;  %v2071_v27 = vadd.f32 %v2063_v29, %v2042_v16  ;;  %v2196_v29 = vld [vmem:[#allocation3 + $0x260] sm:$0xff]  ;;  %v2081_v5 = vld [vmem:[#allocation3 + $0x168] sm:$0xff] }
0x11c1   :  { %v2186_v54 = vadd.f32 %v2178_v45, %v2157_v37  ;;  %v1977_v3 = vmul.f32 %v4649_v44, %v1965_v56  ;;  %v2121_v47 = vmul.f32 %v4666_v20, %v2109_v59  ;;  %v2236_v41 = vmul.f32 %v4684_v25, %v2224_v46  ;;  %v1945_v56 = vld [vmem:[#allocation3 + $0x30] sm:$0xff]  ;;  %v2225_v37 = vld [vmem:[#allocation3 + $0x2a0] sm:$0xff] }
0x11c2   :  { %3058 = vmatprep.mubr.f32.mxu0 %v2386_v31  ;;  %v2387_v8 = vadd.f32 %v4739_v19, %v2358_v33  ;;  %v2301_v9 = vadd.f32 %v2293_v7, %v2272_v58  ;;  %v2100_v53 = vadd.f32 %v2092_v6, %v2071_v27  ;;  %v2006_v18 = vmul.f32 %v4656_v14, %v1994_v60  ;;  %v1966_v33 = vld [vmem:[#allocation3 + $0x70] sm:$0xff]  ;;  %v2340_v27 = vld [vmem:[#allocation3 + $0x398] sm:$0xff] }
0x11c3   :  { %v2215_v11 = vadd.f32 %v2207_v40, %v2186_v54  ;;  %v1985_v17 = vadd.f32 %v1977_v3, %v1956_v62  ;;  %v2351_v21 = vmul.f32 %v4694_v49, %v2339_v15  ;;  %v2150_v13 = vmul.f32 %v4668_v28, %v2138_v55  ;;  %v2110_v15 = vld [vmem:[#allocation3 + $0x1a8] sm:$0xff]  ;;  %v2254_v40 = vld [vmem:[#allocation3 + $0x2e0] sm:$0xff] }
0x11c4   :  { %3059 = vmatmul.mubr.f32.vlgmr.msra.gmra.mrb[24].mxu0 %v2387_v8  ;;  %v2330_v48 = vadd.f32 %v2322_v38, %v2301_v9  ;;  %v2129_v19 = vadd.f32 %v2121_v47, %v2100_v53  ;;  %v2265_v24 = vmul.f32 %v4686_v26, %v2253_v12  ;;  %v2035_v31 = vmul.f32 %v4660_v57, %v2023_v1  ;;  %v1995_v8 = vld [vmem:[#allocation3 + $0xb0] sm:$0xff]  ;;  %v2369_v9 = vld [vmem:[#allocation3 + $0x3d8] sm:$0xff]  ;;  %v2139_v47 = vld [vmem:[#allocation3 + $0x1e8] sm:$0xff] }
0x11c5   :  { %v2244_v23 = vadd.f32 %v2236_v41, %v2215_v11  ;;  %v2014_v30 = vadd.f32 %v2006_v18, %v1985_v17  ;;  %v2380_v4 = vmul.f32 %v4696_v39, %v2368_v10  ;;  %v2179_v16 = vmul.f32 %v4675_v43, %v2167_v51  ;;  %v2283_v41 = vld [vmem:[#allocation3 + $0x320] sm:$0xff]  ;;  %v2024_v18 = vld [vmem:[#allocation3 + $0xf0] sm:$0xff] }
0x11c6   :  { %v2359_v2 = vadd.f32 %v2351_v21, %v2330_v48  ;;  %v2158_v34 = vadd.f32 %v2150_v13, %v2129_v19  ;;  %v2294_v38 = vmul.f32 %v4689_v32, %v2282_v22  ;;  %v2064_v59 = vmul.f32 %v4662_v63, %v2052_v50  ;;  %v2168_v22 = vld [vmem:[#allocation3 + $0x228] sm:$0xff] }
0x11c7   :  { %v2273_v7 = vadd.f32 %v2265_v24, %v2244_v23  ;;  %v2043_v45 = vadd.f32 %v2035_v31, %v2014_v30  ;;  %v2323_v46 = vmul.f32 %v4692_v35, %v2311_v52  ;;  %v2208_v60 = vmul.f32 %v4682_v61, %v2196_v29  ;;  %v2312_v24 = vld [vmem:[#allocation3 + $0x360] sm:$0xff]  ;;  %v2053_v30 = vld [vmem:[#allocation3 + $0x130] sm:$0xff] }
0x11c8   :  { %v2388_v58 = vadd.f32 %v2380_v4, %v2359_v2  ;;  %v2187_v6 = vadd.f32 %v2179_v16, %v2158_v34  ;;  %v2093_v62 = vmul.f32 %v4664_v0, %v2081_v5  ;;  %v1957_v3 = vmul.f32 %v4647_v42, %v1945_v56  ;;  %v2197_v4 = vld [vmem:[#allocation3 + $0x268] sm:$0xff]  ;;  %v1946_v5 = vld [vmem:[#allocation3 + $0x38] sm:$0xff] }
0x11c9   :  { %v2302_v54 = vadd.f32 %v2294_v38, %v2273_v7  ;;  %v2072_v55 = vadd.f32 %v2064_v59, %v2043_v45  ;;  %v2237_v53 = vmul.f32 %v4684_v25, %v2225_v37  ;;  %v1978_v1 = vmul.f32 %v4649_v44, %v1966_v33  ;;  %v1967_v56 = vld [vmem:[#allocation3 + $0x78] sm:$0xff]  ;;  %v2341_v38 = vld [vmem:[#allocation3 + $0x3a0] sm:$0xff]  ;;  %v2082_v59 = vld [vmem:[#allocation3 + $0x170] sm:$0xff] }
0x11ca   :  { %3061 = vmatprep.mubr.f32.mxu0 %v2388_v58  ;;  %v2216_v12 = vadd.f32 %v2208_v60, %v2187_v6  ;;  %v2352_v11 = vmul.f32 %v4694_v49, %v2340_v27  ;;  %v2122_v17 = vmul.f32 %v4666_v20, %v2110_v15  ;;  %v2266_v21 = vmul.f32 %v4686_v26, %v2254_v40  ;;  %v1996_v60 = vld [vmem:[#allocation3 + $0xb8] sm:$0xff]  ;;  %v2370_v15 = vld [vmem:[#allocation3 + $0x3e0] sm:$0xff] }
0x11cb   :  { %v2331_v10 = vadd.f32 %v2323_v46, %v2302_v54  ;;  %v2101_v51 = vadd.f32 %v2093_v62, %v2072_v55  ;;  %v1986_v19 = vadd.f32 %v1978_v1, %v1957_v3  ;;  %v2007_v13 = vmul.f32 %v4656_v14, %v1995_v8  ;;  %v2226_v46 = vld [vmem:[#allocation3 + $0x2a8] sm:$0xff]  ;;  %v2111_v55 = vld [vmem:[#allocation3 + $0x1b0] sm:$0xff]  ;;  %v2025_v1 = vld [vmem:[#allocation3 + $0xf8] sm:$0xff] }
0x11cc   :  { %v2245_v48 = vadd.f32 %v2237_v53, %v2216_v12  ;;  %v2381_v23 = vmul.f32 %v4696_v39, %v2369_v9  ;;  %v2151_v29 = vmul.f32 %v4668_v28, %v2139_v47  ;;  %v2295_v2 = vmul.f32 %v4689_v32, %v2283_v41  ;;  %v2255_v12 = vld [vmem:[#allocation3 + $0x2e8] sm:$0xff]  ;;  %v2140_v41 = vld [vmem:[#allocation3 + $0x1f0] sm:$0xff] }
0x11cd   :  { %v2360_v50 = vadd.f32 %v2352_v11, %v2331_v10  ;;  %v2130_v52 = vadd.f32 %v2122_v17, %v2101_v51  ;;  %v2015_v34 = vadd.f32 %v2007_v13, %v1986_v19  ;;  %v2036_v16 = vmul.f32 %v4660_v57, %v2024_v18 }
0x11ce   :  { %v2274_v31 = vadd.f32 %v2266_v21, %v2245_v48  ;;  %v2180_v45 = vmul.f32 %v4675_v43, %v2168_v22  ;;  %v2324_v58 = vmul.f32 %v4692_v35, %v2312_v24  ;;  %v2065_v6 = vmul.f32 %v4662_v63, %v2053_v30  ;;  %v2284_v48 = vld [vmem:[#allocation3 + $0x328] sm:$0xff]  ;;  %v2054_v22 = vld [vmem:[#allocation3 + $0x138] sm:$0xff] }
0x11cf   :  { %v2389_v7 = vadd.f32 %v2381_v23, %v2360_v50  ;;  %v2159_v37 = vadd.f32 %v2151_v29, %v2130_v52  ;;  %v2044_v27 = vadd.f32 %v2036_v16, %v2015_v34  ;;  %v2209_v40 = vmul.f32 %v4682_v61, %v2197_v4  ;;  %v2169_v50 = vld [vmem:[#allocation3 + $0x230] sm:$0xff]  ;;  %v2313_v29 = vld [vmem:[#allocation3 + $0x368] sm:$0xff] }
0x11d0   :  { %v2303_v33 = vadd.f32 %v2295_v2, %v2274_v31  ;;  %v1958_v62 = vmul.f32 %v4647_v42, %v1946_v5  ;;  %v1979_v3 = vmul.f32 %v4649_v44, %v1967_v56  ;;  %v2353_v9 = vmul.f32 %v4694_v49, %v2341_v38  ;;  %v2083_v31 = vld [vmem:[#allocation3 + $0x178] sm:$0xff]  ;;  %v2198_v34 = vld [vmem:[#allocation3 + $0x270] sm:$0xff]  ;;  %v2342_v56 = vld [vmem:[#allocation3 + $0x3a8] sm:$0xff] }
0x11d1   :  { %3062 = vmatmul.mubr.f32.gmra.mrb[26].mxu0 %v2389_v7  ;;  %v2188_v54 = vadd.f32 %v2180_v45, %v2159_v37  ;;  %v2073_v53 = vadd.f32 %v2065_v6, %v2044_v27  ;;  %v2094_v47 = vmul.f32 %v4664_v0, %v2082_v59  ;;  %v2238_v11 = vmul.f32 %v4684_v25, %v2226_v46  ;;  %v2112_v37 = vld [vmem:[#allocation3 + $0x1b8] sm:$0xff]  ;;  %v2227_v59 = vld [vmem:[#allocation3 + $0x2b0] sm:$0xff]  ;;  %v2371_v46 = vld [vmem:[#allocation3 + $0x3e8] sm:$0xff] }
0x11d2   :  { %v2332_v8 = vadd.f32 %v2324_v58, %v2303_v33  ;;  %v1987_v51 = vadd.f32 %v1979_v3, %v1958_v62  ;;  %v2008_v17 = vmul.f32 %v4656_v14, %v1996_v60  ;;  %v2382_v42 = vmul.f32 %v4696_v39, %v2370_v15  ;;  %v2141_v60 = vld [vmem:[#allocation3 + $0x1f8] sm:$0xff] }
0x11d3   :  { %v2217_v10 = vadd.f32 %v2209_v40, %v2188_v54  ;;  %v2102_v44 = vadd.f32 %v2094_v47, %v2073_v53  ;;  %v2123_v21 = vmul.f32 %v4666_v20, %v2111_v55  ;;  %v2267_v13 = vmul.f32 %v4686_v26, %v2255_v12  ;;  %v2256_v54 = vld [vmem:[#allocation3 + $0x2f0] sm:$0xff] }
0x11d4   :  { %v2361_v18 = vadd.f32 %v2353_v9, %v2332_v8  ;;  %v2016_v23 = vadd.f32 %v2008_v17, %v1987_v51  ;;  %v2037_v24 = vmul.f32 %v4660_v57, %v2025_v1  ;;  %v2152_v14 = vmul.f32 %v4668_v28, %v2140_v41  ;;  %v2170_v8 = vld [vmem:[#allocation3 + $0x238] sm:$0xff]  ;;  %v2314_v51 = vld [vmem:[#allocation3 + $0x370] sm:$0xff] }
0x11d5   :  { %v2246_v19 = vadd.f32 %v2238_v11, %v2217_v10  ;;  %v2131_v30 = vadd.f32 %v2123_v21, %v2102_v44  ;;  %v2296_v4 = vmul.f32 %v4689_v32, %v2284_v48  ;;  %v2066_v5 = vmul.f32 %v4662_v63, %v2054_v22  ;;  %v2199_v11 = vld [vmem:[#allocation3 + $0x278] sm:$0xff]  ;;  %v2343_v44 = vld [vmem:[#allocation3 + $0x3b0] sm:$0xff] }
0x11d6   :  { %v2390_v52 = vadd.f32 %v2382_v42, %v2361_v18  ;;  %v2045_v16 = vadd.f32 %v2037_v24, %v2016_v23  ;;  %v2181_v38 = vmul.f32 %v4675_v43, %v2169_v50  ;;  %v2325_v45 = vmul.f32 %v4692_v35, %v2313_v29  ;;  %v2228_v48 = vld [vmem:[#allocation3 + $0x2b8] sm:$0xff]  ;;  %v2372_v50 = vld [vmem:[#allocation3 + $0x3f0] sm:$0xff] }
0x11d7   :  { %v2275_v2 = vadd.f32 %v2267_v13, %v2246_v19  ;;  %v2160_v7 = vadd.f32 %v2152_v14, %v2131_v30  ;;  %v2095_v58 = vmul.f32 %v4664_v0, %v2083_v31  ;;  %v2210_v6 = vmul.f32 %v4682_v61, %v2198_v34  ;;  %v2285_v0 = vld [vmem:[#allocation3 + $0x330] sm:$0xff]  ;;  %v2257_v13 = vld [vmem:[#allocation3 + $0x2f8] sm:$0xff] }
0x11d8   :  { %3064 = vmatprep.mubr.f32.mxu0 %v2390_v52  ;;  %v2074_v33 = vadd.f32 %v2066_v5, %v2045_v16  ;;  %v2354_v63 = vmul.f32 %v4694_v49, %v2342_v56  ;;  %v2124_v55 = vmul.f32 %v4666_v20, %v2112_v37  ;;  %v2239_v3 = vmul.f32 %v4684_v25, %v2227_v59  ;;  %v2286_v29 = vld [vmem:[#allocation3 + $0x338] sm:$0xff] }
0x11d9   :  { %v2304_v57 = vadd.f32 %v2296_v4, %v2275_v2  ;;  %v2189_v27 = vadd.f32 %v2181_v38, %v2160_v7  ;;  %v2383_v12 = vmul.f32 %v4696_v39, %v2371_v46  ;;  %v2153_v47 = vmul.f32 %v4668_v28, %v2141_v60  ;;  %v2315_v4 = vld [vmem:[#allocation3 + $0x378] sm:$0xff] }
0x11da   :  { %v2103_v40 = vadd.f32 %v2095_v58, %v2074_v33  ;;  %v2268_v10 = vmul.f32 %v4686_v26, %v2256_v54  ;;  %v2182_v20 = vmul.f32 %v4675_v43, %v2170_v8  ;;  %v2297_v42 = vmul.f32 %v4689_v32, %v2285_v0  ;;  %v2344_v5 = vld [vmem:[#allocation3 + $0x3b8] sm:$0xff] }
0x11db   :  { %v2333_v15 = vadd.f32 %v2325_v45, %v2304_v57  ;;  %v2218_v62 = vadd.f32 %v2210_v6, %v2189_v27  ;;  %v2211_v22 = vmul.f32 %v4682_v61, %v2199_v11  ;;  %v2326_v28 = vmul.f32 %v4692_v35, %v2314_v51  ;;  %v2571_v59 = vld [vmem:[%s4893_s6] sm:$0xff] }
0x11dc   :  { %v2132_v53 = vadd.f32 %v2124_v55, %v2103_v40  ;;  %v2240_v24 = vmul.f32 %v4684_v25, %v2228_v48  ;;  %v2355_v43 = vmul.f32 %v4694_v49, %v2343_v44  ;;  %v2269_v14 = vmul.f32 %v4686_v26, %v2257_v13  ;;  %v2373_v25 = vld [vmem:[#allocation3 + $0x3f8] sm:$0xff]  ;;  %3086 = vmatprep.mubr.msk.f32.mxu1 %vm2627_vm1, %v2571_v59 }
0x11dd   :  { %v2362_v9 = vadd.f32 %v2354_v63, %v2333_v15  ;;  %v2247_v1 = vadd.f32 %v2239_v3, %v2218_v62  ;;  %v2384_v2 = vmul.f32 %v4696_v39, %v2372_v50  ;;  %v2298_v34 = vmul.f32 %v4689_v32, %v2286_v29  ;;  %v2426_v32 = vpop.permute.xlu0 %2425  ;;  %v2574_v13 = vld [vmem:[%s4893_s6 + $0x18] sm:$0xff]  ;;  %v2575_v50 = vld [vmem:[%s4893_s6 + $0x20] sm:$0xff] }
0x11de   :  { %v2161_v17 = vadd.f32 %v2153_v47, %v2132_v53  ;;  %v2327_v7 = vmul.f32 %v4692_v35, %v2315_v4  ;;  %v2356_v37 = vmul.f32 %v4694_v49, %v2344_v5  ;;  %v2385_v26 = vmul.f32 %v4696_v39, %v2373_v25  ;;  %v2421_v35 = vpop.permute.xlu1 %2420 }
0x11df   :  { %v2391_v41 = vadd.f32 %v2383_v12, %v2362_v9  ;;  %v2276_v18 = vadd.f32 %v2268_v10, %v2247_v1 }
0x11e0   :  { %v2190_v21 = vadd.f32 %v2182_v20, %v2161_v17 }
0x11e1   :  { %3065 = vmatmul.mubr.f32.gmra.mrb[28].mxu0 %v2391_v41  ;;  %v2305_v19 = vadd.f32 %v2297_v42, %v2276_v18  ;;  %v2436_v39 = vpop.permute.xlu0 %2435 }
0x11e2   :  { %v2219_v23 = vadd.f32 %v2211_v22, %v2190_v21  ;;  %v2431_v63 = vpop.permute.xlu1 %2430 }
0x11e3   :  { %v2334_v52 = vadd.f32 %v2326_v28, %v2305_v19  ;;  %v2572_v19 = vld [vmem:[%s4893_s6 + $0x8] sm:$0xff]  ;;  %v2573_v28 = vld [vmem:[%s4893_s6 + $0x10] sm:$0xff] }
0x11e4   :  { %v2248_v30 = vadd.f32 %v2240_v24, %v2219_v23  ;;  %v2576_v23 = vld [vmem:[%s4893_s6 + $0x28] sm:$0xff]  ;;  %v2577_v24 = vld [vmem:[%s4893_s6 + $0x30] sm:$0xff] }
0x11e5   :  { %v2363_v31 = vadd.f32 %v2355_v43, %v2334_v52  ;;  %v2446_v9 = vpop.permute.xlu0 %2445  ;;  %v2578_v52 = vld [vmem:[%s4893_s6 + $0x38] sm:$0xff]  ;;  %s3563_s6 = smov [#allocation6]  }
0x11e6   :  { %v2277_v61 = vadd.f32 %v2269_v14, %v2248_v30  ;;  %v2441_v0 = vpop.permute.xlu1 %2440  ;;  %s2862_s13 = sshll.u32 %s3563_s6, 4  ;;  %s2863_s13 = int_to_ptr.vmem [resolvable:$true] %s2862_s13 }
0x11e7   :  { %v2392_v16 = vadd.f32 %v2384_v2, %v2363_v31  ;;  %s3525_s14 = scalar_lea.vmem %s2863_s13, 16  ;;  %s3529_s16 = scalar_lea.vmem %s2863_s13, 32 }
0x11e8   :  { %v2306_v56 = vadd.f32 %v2298_v34, %v2277_v61  ;;  %p3526_p8 = scmp.ne.s32.totalorder %s2863_s13, %s3525_s14  ;;  %p3530_p9 = scmp.lt.s32.totalorder %s2863_s13, %s2863_s13 }
0x11e9   :  { %3067 = vmatprep.mubr.f32.mxu0 %v2392_v16  ;;  %v2456_v51 = vpop.permute.xlu0 %2455  ;;  %p3531_p10 = scmp.lt.s32.totalorder %s3529_s16, %s3525_s14 }
0x11ea   :  { %v2335_v38 = vadd.f32 %v2327_v7, %v2306_v56  ;;  %v2451_v20 = vpop.permute.xlu1 %2450 }
0x11eb   :  { %p3532_p11 = por %p3531_p10, %p3530_p9 }
0x11ec   :  { %v2364_v57 = vadd.f32 %v2356_v37, %v2335_v38 }
0x11ed   :  { %v2595_v29 = vpop.permute.xlu0 %2594  ;;  %p3533_p12 = pnand %p3532_p11, %p3526_p8 }
0x11ee   :  { %v2393_v45 = vadd.f32 %v2385_v26, %v2364_v57  ;;  %v2590_v43 = vpop.permute.xlu1 %2589 }
0x11f0   :  { %3068 = vmatmul.mubr.f32.gmra.mrb[30].mxu0 %v2393_v45 }
0x11f1   :  { %v2605_v14 = vpop.permute.xlu0 %2604 }
0x11f2   :  { %v2600_v30 = vpop.permute.xlu1 %2599 }
0x11f5   :  { %v2781_v2 = vpop.permute.xlu0 %2780 }
0x11f6   :  { %v2776_v31 = vpop.permute.xlu1 %2775 }
0x11f9   :  { %v2786_v61 = vpop.permute.xlu0 %2785 }
0x11fa   :  { %v2610_v4 = vpop.permute.xlu1 %2609 }
0x11fd   :  { %v2791_v16 = vpop.permute.xlu0 %2790 }
0x11fe   :  { %v2615_v34 = vpop.permute.xlu1 %2614 }
0x1201   :  { %v2796_v45 = vpop.permute.xlu0 %2795 }
0x1202   :  { %v2620_v37 = vpop.permute.xlu1 %2619 }
0x1297   :  { %v3060_v33 = vpop.f32.mrb[24].mxu0 }
0x1298   :  { %v2530_v58 = vadd.f32 %v3060_v33, %v2426_v32  ;;  %v2524_v46 = vpop.f32.mrb[25].mxu0 }
0x1299   :  { %v2525_v27 = vadd.f32 %v2524_v46, %v2421_v35 }
0x129a   :  { %v2564_v6 = vmax.f32 %v2530_v58, 0.0 }
0x129b   :  { %v2563_v49 = vmax.f32 %v2525_v27, 0.0 }
0x129d   :  { %v3454_v60 = vpack.c.bf16 %v2564_v6, %v2563_v49 }
0x129f   :  { %3455 = vmatprep.subr.bf16.mxu1 %v3454_v60 }
0x12a0   :  { %3457 = vmatpush3.bf16.msra.mxu1 %v3454_v60 }
0x12a4   :  { %v3063_v15 = vpop.f32.mrb[26].mxu0 }
0x12a5   :  { %v2540_v54 = vadd.f32 %v3063_v15, %v2436_v39  ;;  %v2534_v40 = vpop.f32.mrb[27].mxu0 }
0x12a6   :  { %v2535_v55 = vadd.f32 %v2534_v40, %v2431_v63 }
0x12a7   :  { %v2566_v62 = vmax.f32 %v2540_v54, 0.0 }
0x12a8   :  { %v2565_v3 = vmax.f32 %v2535_v55, 0.0 }
0x12aa   :  { %v3458_v8 = vpack.c.bf16 %v2566_v62, %v2565_v3  ;;  %v2625_v62 = vpop.permute.xlu1 %2624  ;;  %v2801_v3 = vpop.permute.xlu0 %2800 }
0x12ac   :  { %3459 = vmatprep.subr.bf16.mxu1 %v3458_v8 }
0x12ad   :  { %3461 = vmatpush3.bf16.msra.mxu1 %v3458_v8 }
0x12b4   :  { %v3066_v12 = vpop.f32.mrb[28].mxu0 }
0x12b5   :  { %v2550_v53 = vadd.f32 %v3066_v12, %v2446_v9  ;;  %v2544_v47 = vpop.f32.mrb[29].mxu0 }
0x12b6   :  { %v2545_v1 = vadd.f32 %v2544_v47, %v2441_v0 }
0x12b7   :  { %v2568_v10 = vmax.f32 %v2550_v53, 0.0 }
0x12b8   :  { %v2567_v11 = vmax.f32 %v2545_v1, 0.0 }
0x12ba   :  { %v3462_v41 = vpack.c.bf16 %v2568_v10, %v2567_v11 }
0x12bc   :  { %3463 = vmatprep.subr.bf16.mxu1 %v3462_v41 }
0x12bd   :  { %3465 = vmatpush3.bf16.msra.mxu1 %v3462_v41 }
0x12c3   :  { %v3069_v17 = vpop.f32.mrb[30].mxu0 }
0x12c4   :  { %v2560_v18 = vadd.f32 %v3069_v17, %v2456_v51  ;;  %v2554_v42 = vpop.f32.mrb[31].mxu0 }
0x12c5   :  { %v2555_v48 = vadd.f32 %v2554_v42, %v2451_v20 }
0x12c6   :  { %v2570_v44 = vmax.f32 %v2560_v18, 0.0 }
0x12c7   :  { %v2569_v21 = vmax.f32 %v2555_v48, 0.0  ;;  %v2806_v48 = vpop.permute.xlu1 %2805 }
0x12c9   :  { %v3466_v22 = vpack.c.bf16 %v2570_v44, %v2569_v21  ;;  %v2811_v44 = vpop.permute.xlu0 %2810 }
0x12cb   :  { %3467 = vmatprep.subr.bf16.mxu1 %v3466_v22 }
0x12cc   :  { %3469 = vmatpush3.bf16.msra.mxu1 %v3466_v22 }
0x12cf   :  { %3087 = vmatmul.mubr.msk.f32.vlgmr.msra.gmra.mrb[24].mxu1 %vm2627_vm1, %v2572_v19 }
0x12d0   :  { %3089 = vmatprep.mubr.msk.f32.mxu1 %vm2627_vm1, %v2573_v28 }
0x12d3   :  { %3090 = vmatmul.mubr.msk.f32.gmra.mrb[26].mxu1 %vm2627_vm1, %v2574_v13 }
0x12d4   :  { %3092 = vmatprep.mubr.msk.f32.mxu1 %vm2627_vm1, %v2575_v50 }
0x12d7   :  { %3093 = vmatmul.mubr.msk.f32.gmra.mrb[28].mxu1 %vm2627_vm1, %v2576_v23 }
0x12d8   :  { %3095 = vmatprep.mubr.msk.f32.mxu1 %vm2627_vm1, %v2577_v24 }
0x12db   :  { %3096 = vmatmul.mubr.msk.f32.gmra.mrb[30].mxu1 %vm2627_vm1, %v2578_v52 }
0x13a2   :  { %v3088_v5 = vpop.f32.mrb[24].mxu1 }
0x13a3   :  { %v2724_v56 = vadd.f32 %v3088_v5, %v2595_v29  ;;  %v2718_v7 = vpop.f32.mrb[25].mxu1 }
0x13a4   :  { %v2719_v25 = vadd.f32 %v2718_v7, %v2590_v43 }
0x13a5   :  { %v2758_v38 = vmax.f32 %v2724_v56, 0.0 }
0x13a6   :  { %v2757_v57 = vmax.f32 %v2719_v25, 0.0  ;;  %v3091_v26 = vpop.f32.mrb[26].mxu1 }
0x13a7   :  { %v2814_v59 = vmul.f32 %v2781_v2, %v2758_v38  ;;  %v2734_v32 = vadd.f32 %v3091_v26, %v2605_v14  ;;  %v2728_v33 = vpop.f32.mrb[27].mxu1 }
0x13a8   :  { %v2813_v35 = vmul.f32 %v2776_v31, %v2757_v57  ;;  %v2729_v58 = vadd.f32 %v2728_v33, %v2600_v30  ;;  %v2847_v31 = vpop.permute.xlu1 %2846 }
0x13a9   :  { %v2823_v46 = vsel %vm2821_vm2, %v2814_v59, 0.0  ;;  %v2760_v27 = vmax.f32 %v2734_v32, 0.0 }
0x13aa   :  { %v2822_v6 = vsel %vm2821_vm2, %v2813_v35, 0.0  ;;  %v2759_v49 = vmax.f32 %v2729_v58, 0.0  ;;  %v3094_v60 = vpop.f32.mrb[28].mxu1 }
0x13ab   :  { %v2824_v39 = vadd.f32 %v2823_v46, %v2822_v6  ;;  %v2744_v15 = vadd.f32 %v3094_v60, %v2615_v34  ;;  %v2738_v63 = vpop.f32.mrb[29].mxu1  ;;  %v2816_v54 = vmul.f32 %v2791_v16, %v2760_v27 }
0x13ac   :  { %v2815_v40 = vmul.f32 %v2786_v61, %v2759_v49  ;;  %v2739_v55 = vadd.f32 %v2738_v63, %v2610_v4  ;;  %v2852_v4 = vrot.slane %v2847_v31, %v4643_v36 }
0x13ad   :  { %v2762_v8 = vmax.f32 %v2744_v15, 0.0  ;;  %v2827_v10 = vsel %vm2821_vm2, %v2816_v54, 0.0 }
0x13ae   :  { %v2825_v9 = vsel %vm2821_vm2, %v2815_v40, 0.0  ;;  %v2761_v12 = vmax.f32 %v2739_v55, 0.0  ;;  %v3097_v0 = vpop.f32.mrb[30].mxu1 }
0x13af   :  { %v2826_v53 = vadd.f32 %v2825_v9, %v2824_v39  ;;  %v2754_v47 = vadd.f32 %v3097_v0, %v2625_v62  ;;  %v2748_v1 = vpop.f32.mrb[31].mxu1  ;;  %v2818_v11 = vmul.f32 %v2801_v3, %v2762_v8 }
0x13b0   :  { %v2817_v41 = vmul.f32 %v2796_v45, %v2761_v12  ;;  %v2749_v51 = vadd.f32 %v2748_v1, %v2620_v37 }
0x13b1   :  { %v2828_v17 = vadd.f32 %v2827_v10, %v2826_v53  ;;  %v2764_v20 = vmax.f32 %v2754_v47, 0.0  ;;  %v2831_v22 = vsel %vm2821_vm2, %v2818_v11, 0.0 }
0x13b2   :  { %v2829_v18 = vsel %vm2821_vm2, %v2817_v41, 0.0  ;;  %v2763_v42 = vmax.f32 %v2749_v51, 0.0 }
0x13b3   :  { %v2830_v21 = vadd.f32 %v2829_v18, %v2828_v17  ;;  %v2820_v19 = vmul.f32 %v2811_v44, %v2764_v20 }
0x13b4   :  { %v2819_v28 = vmul.f32 %v2806_v48, %v2763_v42 }
0x13b5   :  { %v2832_v13 = vadd.f32 %v2831_v22, %v2830_v21  ;;  %v2835_v24 = vsel %vm2821_vm2, %v2820_v19, 0.0 }
0x13b6   :  { %v2833_v50 = vsel %vm2821_vm2, %v2819_v28, 0.0 }
0x13b7   :  { %v2834_v23 = vadd.f32 %v2833_v50, %v2832_v13 }
0x13b9   :  { %v2836_v52 = vadd.f32 %v2835_v24, %v2834_v23 }
0x13bb   :  { %v2837_v43 = vrot.slane %v2836_v52, 4 }
0x13bd   :  { %v2838_v29 = vadd.f32 %v2837_v43, %v2836_v52 }
0x13bf   :  { %v2839_v30 = vrot.slane %v2838_v29, 2 }
0x13c1   :  { %v2840_v14 = vadd.f32 %v2839_v30, %v2838_v29 }
0x13c3   :  { %v2841_v2 = vrot.slane %v2840_v14, 1 }
0x13c5   :  { %v2842_v61 = vadd.f32 %v2841_v2, %v2840_v14 }
0x13c7   :  { %v2853_v34 = vadd.f32 %v2852_v4, %v2842_v61 }
0x13c9   :  { %2855 = vst.msk [vmem:[#allocation6] sm:$0x1] %vm2854_vm3, %v2853_v34 }
0x13ca   :  { %3536 = shalt.err (!%p3533_p12)
}
0x13cb   :  { %s3537_s18 = scalar_lea.hbm %s4898_s11, 16 }
0x13cc   :  { %p3538_p13 = scmp.ne.s32.totalorder %s4898_s11, %s3537_s18  ;;  %p3541_p0 = scmp.lt.u32.totalorder %s3537_s18, %s4898_s11 }
0x13ce   :  { %p3543_p1 = pnand %p3541_p0, %p3538_p13 }
0x13d0   :  { %3546 = shalt.err (!%p3543_p1)
}
0x13d1   :  { %2865 = dma.vmem_to_hbm [thread:$0]  %s2863_s13, 16, %s4898_s11, [#allocation5]  }
0x13d2   :  { %3549 = dma.done.wait [#allocation5], 16  }
0x13d3   :  { %3550 = vsyncadd [#allocation5], 4294967280 }
0x13d4   :  { %2869 = vsyncpa [#allocation4], 1 }
0x13d5   :  { %2870 = vsyncpa [#allocation5], 1 }

</bundles_post_ra>
